<compile_context>
chip_gen: v7x
topology: tpu7x:2x2x1
jax: 0.10.0
libtpu: 0.0.40
codegen_flags: <defaults>
</compile_context>

<pallas_src>
import jax
import jax.numpy as jnp
from jax.experimental import pallas as pl
from jax.experimental.pallas import tpu as pltpu

HIDDEN = 50
LN_EPS = 1e-5
_HP = jax.lax.Precision.HIGHEST


def _layernorm_cols(h, gamma, beta):
    # LayerNorm over the feature (sublane) axis of an (H, TM) tile.
    # E[x] and E[x^2] are independent reductions -> single XLU round.  Clamp the
    # one-pass variance at 0 (can go epsilon-negative for near-constant columns
    # such as the zero-padded tail); biased variance + eps matches torch LN.
    mu = jnp.mean(h, axis=0, keepdims=True)       # (1, TM)
    ms = jnp.mean(h * h, axis=0, keepdims=True)   # (1, TM)
    var = jnp.maximum(ms - mu * mu, 0.0)
    return (h - mu) * jax.lax.rsqrt(var + LN_EPS) * gamma + beta


def subnet_kernel(x_ref, w1_ref, b1_ref, g1_ref, be1_ref,
                  w2_ref, b2_ref, g2_ref, be2_ref,
                  w3_ref, b3_ref, o_ref):
    x = x_ref[...]                                           # (1, TM)

    # Linear(1, 50): K=1 -> broadcast multiply on the VPU, (H,1)*(1,TM).
    h = w1_ref[...] * x + b1_ref[...]                        # (H, TM)
    h = _layernorm_cols(h, g1_ref[...], be1_ref[...])
    h = jnp.sin(h)
    # TODO(synk): if bundle dump shows VALU/XLU (not EUP) saturates, fold LN1's
    # mean analytically (mean(w1)*x + mean(b1)) and LN2's E[x] into the W2
    # matmul (append a ones/50 row) to free XLU reduce rounds.

    # Linear(50, 50): W2 (out,in) @ h (in, TM) on the MXU; N=TM is lane-full.
    h = jnp.dot(w2_ref[...], h, preferred_element_type=jnp.float32,
                precision=_HP) + b2_ref[...]
    h = _layernorm_cols(h, g2_ref[...], be2_ref[...])
    h = jnp.sin(h)

    # Linear(50, rank) + Tanh.
    h = jnp.dot(w3_ref[...], h, preferred_element_type=jnp.float32,
                precision=_HP) + b3_ref[...]
    o_ref[...] = jnp.tanh(h).astype(o_ref.dtype)             # (rank, TM)


def _choose_tile(n, cap=2048):
    """Row-tile (lane) size: multiple of 128, adaptive to N.

    - Small N: pad only to the 128-lane minimum (don't waste VPU/EUP lanes).
    - Whenever N spans >128 lanes, pick tm so the parallel grid has >=2 steps
      (v7x shards the parallel axis over its 2 TensorCores; an extra grid step
      costs ~0.35 us on single-TC chips).
    - Cap at 2048 so (50,tm) f32 temporaries + double-buffered blocks stay far
      inside the default scoped VMEM on v5e/v6e/v7x.
    """
    n128 = max(128, ((n + 127) // 128) * 128)
    if n128 <= 128:
        return 128
    if n128 <= 2 * cap:
        half = (((n128 + 1) // 2) + 127) // 128 * 128
        return max(128, half)
    return cap


@jax.jit
def default_subnet_forward(x, params):
    """x: [N, 1] float32, returns [N, rank] float32."""
    n = x.shape[0]
    rank = params["w3"].shape[0]
    tm = _choose_tile(n)
    n_pad = ((n + tm - 1) // tm) * tm

    # Batch onto lanes: (N, 1) -> (1, n_pad), zero-padded.  Padded columns go
    # through LN as near-constant columns (rsqrt(~0 + eps) ~ 316, stays finite)
    # and are sliced off after the call.
    xt = jnp.pad(x[:, 0], (0, n_pad - n)).reshape(1, n_pad)

    full = lambda arr: pl.BlockSpec(arr.shape, lambda i: (0, 0))
    grid_spec = pltpu.PrefetchScalarGridSpec(
        num_scalar_prefetch=0,
        grid=(n_pad // tm,),
        in_specs=[
            pl.BlockSpec((1, tm), lambda i: (0, i)),         # x tile (lanes = batch)
            full(params["w1"]), full(params["b1"]),
            full(params["g1"]), full(params["be1"]),
            full(params["w2"]), full(params["b2"]),
            full(params["g2"]), full(params["be2"]),
            full(params["w3"]), full(params["b3"]),
        ],
        out_specs=pl.BlockSpec((rank, tm), lambda i: (0, i)),  # lane-dense store
    )
    out_t = pl.pallas_call(
        subnet_kernel,
        out_shape=jax.ShapeDtypeStruct((rank, n_pad), jnp.float32),
        grid_spec=grid_spec,
        compiler_params=pltpu.CompilerParams(
            dimension_semantics=("parallel",)),
    )(xt, params["w1"], params["b1"], params["g1"], params["be1"],
      params["w2"], params["b2"], params["g2"], params["be2"],
      params["w3"], params["b3"])
    # Module contract is (N, rank); consumers that can accept (rank, N) should
    # use out_t[:, :n] directly and skip this extra XLA transpose + HBM pass.
    return out_t[:, :n].T


def init_params(rank, key):
    """Deterministic synthetic init, PyTorch (out_features, in_features) layout."""
    ks = jax.random.split(key, 6)

    def lin(kw, kb, fan_in, fan_out):
        bound = 1.0 / jnp.sqrt(fan_in)
        w = jax.random.uniform(kw, (fan_out, fan_in), jnp.float32, -bound, bound)
        b = jax.random.uniform(kb, (fan_out, 1), jnp.float32, -bound, bound)
        return w, b

    w1, b1 = lin(ks[0], ks[1], 1, HIDDEN)
    w2, b2 = lin(ks[2], ks[3], HIDDEN, HIDDEN)
    w3, b3 = lin(ks[4], ks[5], HIDDEN, rank)
    ones = jnp.ones((HIDDEN, 1), jnp.float32)
    zeros = jnp.zeros((HIDDEN, 1), jnp.float32)
    return dict(
        w1=w1, b1=b1, g1=ones, be1=zeros,
        w2=w2, b2=b2, g2=ones, be2=zeros,
        w3=w3, b3=b3,
    )


def _layernorm_rows(h, gamma, beta):
    # torch.nn.LayerNorm reference (two-pass variance, reduce over last axis).
    mu = jnp.mean(h, axis=-1, keepdims=True)
    var = jnp.mean((h - mu) ** 2, axis=-1, keepdims=True)
    return (h - mu) * jax.lax.rsqrt(var + LN_EPS) * gamma + beta


def reference_forward(x, p):
    h = jnp.dot(x, p["w1"].T, precision=_HP) + p["b1"].T
    h = _layernorm_rows(h, p["g1"].T, p["be1"].T)
    h = jnp.sin(h)
    h = jnp.dot(h, p["w2"].T, precision=_HP) + p["b2"].T
    h = _layernorm_rows(h, p["g2"].T, p["be2"].T)
    h = jnp.sin(h)
    return jnp.tanh(jnp.dot(h, p["w3"].T, precision=_HP) + p["b3"].T)


if __name__ == "__main__":
    key = jax.random.PRNGKey(0)
    k_x, k_x2, k_p = jax.random.split(key, 3)

    N, RANK = 64, 8
    params = init_params(RANK, k_p)

    # Small-batch case: adaptive tile -> tm=128, grid=1.
    x = jax.random.normal(k_x, (N, 1), jnp.float32)
    out = jax.block_until_ready(default_subnet_forward(x, params))
    ref = reference_forward(x, params)
    assert out.shape == (N, RANK)
    assert jnp.allclose(out, ref, atol=2e-5, rtol=2e-5)

    # Multi-step case: exercises padding + grid of 2 parallel steps (v7x path).
    N2 = 300
    x2 = jax.random.normal(k_x2, (N2, 1), jnp.float32)
    out2 = jax.block_until_ready(default_subnet_forward(x2, params))
    ref2 = reference_forward(x2, params)
    assert out2.shape == (N2, RANK)
    assert jnp.allclose(out2, ref2, atol=2e-5, rtol=2e-5)

    print("KERNEL_OK")
</pallas_src>

<mosaic_0001>
module attributes {stable_mosaic.version = 11 : i64} {
  func.func @subnet_kernel(%arg0: i32, %arg1: memref<1x128xf32, #tpu.memory_space<vmem>>, %arg2: memref<50x1xf32, #tpu.memory_space<vmem>>, %arg3: memref<50x1xf32, #tpu.memory_space<vmem>>, %arg4: memref<50x1xf32, #tpu.memory_space<vmem>>, %arg5: memref<50x1xf32, #tpu.memory_space<vmem>>, %arg6: memref<50x50xf32, #tpu.memory_space<vmem>>, %arg7: memref<50x1xf32, #tpu.memory_space<vmem>>, %arg8: memref<50x1xf32, #tpu.memory_space<vmem>>, %arg9: memref<50x1xf32, #tpu.memory_space<vmem>>, %arg10: memref<8x50xf32, #tpu.memory_space<vmem>>, %arg11: memref<8x1xf32, #tpu.memory_space<vmem>>, %arg12: memref<8x128xf32, #tpu.memory_space<vmem>>) attributes {dimension_semantics = [#tpu.dimension_semantics<parallel>], iteration_bounds = array<i64: 1>, scalar_prefetch = 0 : i64, scratch_operands = 0 : i64, tpu.core_type = #tpu.core_type<tc>, window_params = [{transform_indices = @transform_0, window_bounds = array<i64: 1, 128>}, {pipeline_mode = #tpu.pipeline_mode<synchronous>, transform_indices = @transform_1, window_bounds = array<i64: 50, 1>}, {pipeline_mode = #tpu.pipeline_mode<synchronous>, transform_indices = @transform_2, window_bounds = array<i64: 50, 1>}, {pipeline_mode = #tpu.pipeline_mode<synchronous>, transform_indices = @transform_3, window_bounds = array<i64: 50, 1>}, {pipeline_mode = #tpu.pipeline_mode<synchronous>, transform_indices = @transform_4, window_bounds = array<i64: 50, 1>}, {pipeline_mode = #tpu.pipeline_mode<synchronous>, transform_indices = @transform_5, window_bounds = array<i64: 50, 50>}, {pipeline_mode = #tpu.pipeline_mode<synchronous>, transform_indices = @transform_6, window_bounds = array<i64: 50, 1>}, {pipeline_mode = #tpu.pipeline_mode<synchronous>, transform_indices = @transform_7, window_bounds = array<i64: 50, 1>}, {pipeline_mode = #tpu.pipeline_mode<synchronous>, transform_indices = @transform_8, window_bounds = array<i64: 50, 1>}, {pipeline_mode = #tpu.pipeline_mode<synchronous>, transform_indices = @transform_9, window_bounds = array<i64: 8, 50>}, {pipeline_mode = #tpu.pipeline_mode<synchronous>, transform_indices = @transform_10, window_bounds = array<i64: 8, 1>}, {transform_indices = @transform_11, window_bounds = array<i64: 8, 128>}]} {
    %c0 = arith.constant 0 : index
    %c0_0 = arith.constant 0 : index
    %0 = vector.load %arg1[%c0, %c0_0] : memref<1x128xf32, #tpu.memory_space<vmem>>, vector<1x128xf32>
    %c0_1 = arith.constant 0 : index
    %c0_2 = arith.constant 0 : index
    %1 = vector.load %arg2[%c0_1, %c0_2] : memref<50x1xf32, #tpu.memory_space<vmem>>, vector<50x1xf32>
    %2 = vector.broadcast %1 : vector<50x1xf32> to vector<50x128xf32>
    %3 = vector.broadcast %0 : vector<1x128xf32> to vector<50x128xf32>
    %4 = arith.mulf %2, %3 : vector<50x128xf32>
    %c0_3 = arith.constant 0 : index
    %c0_4 = arith.constant 0 : index
    %5 = vector.load %arg3[%c0_3, %c0_4] : memref<50x1xf32, #tpu.memory_space<vmem>>, vector<50x1xf32>
    %6 = vector.broadcast %5 : vector<50x1xf32> to vector<50x128xf32>
    %7 = arith.addf %4, %6 : vector<50x128xf32>
    %c0_5 = arith.constant 0 : index
    %c0_6 = arith.constant 0 : index
    %8 = vector.load %arg4[%c0_5, %c0_6] : memref<50x1xf32, #tpu.memory_space<vmem>>, vector<50x1xf32>
    %c0_7 = arith.constant 0 : index
    %c0_8 = arith.constant 0 : index
    %9 = vector.load %arg5[%c0_7, %c0_8] : memref<50x1xf32, #tpu.memory_space<vmem>>, vector<50x1xf32>
    %cst = arith.constant dense<0.000000e+00> : vector<128xf32>
    %10 = vector.multi_reduction <add>, %7, %cst [0] : vector<50x128xf32> to vector<128xf32>
    %11 = vector.shape_cast %10 : vector<128xf32> to vector<1x128xf32>
    %cst_9 = arith.constant 5.000000e+01 : f32
    %12 = vector.broadcast %cst_9 : f32 to vector<1x128xf32>
    %13 = arith.divf %11, %12 : vector<1x128xf32>
    %14 = arith.mulf %7, %7 : vector<50x128xf32>
    %cst_10 = arith.constant dense<0.000000e+00> : vector<128xf32>
    %15 = vector.multi_reduction <add>, %14, %cst_10 [0] : vector<50x128xf32> to vector<128xf32>
    %16 = vector.shape_cast %15 : vector<128xf32> to vector<1x128xf32>
    %cst_11 = arith.constant 5.000000e+01 : f32
    %17 = vector.broadcast %cst_11 : f32 to vector<1x128xf32>
    %18 = arith.divf %16, %17 : vector<1x128xf32>
    %19 = arith.mulf %13, %13 : vector<1x128xf32>
    %20 = arith.subf %18, %19 : vector<1x128xf32>
    %cst_12 = arith.constant 0.000000e+00 : f32
    %21 = vector.broadcast %cst_12 : f32 to vector<1x128xf32>
    %22 = arith.maximumf %20, %21 : vector<1x128xf32>
    %23 = vector.broadcast %13 : vector<1x128xf32> to vector<50x128xf32>
    %24 = arith.subf %7, %23 : vector<50x128xf32>
    %cst_13 = arith.constant 9.99999974E-6 : f32
    %25 = vector.broadcast %cst_13 : f32 to vector<1x128xf32>
    %26 = arith.addf %22, %25 : vector<1x128xf32>
    %27 = math.rsqrt %26 : vector<1x128xf32>
    %28 = vector.broadcast %27 : vector<1x128xf32> to vector<50x128xf32>
    %29 = arith.mulf %24, %28 : vector<50x128xf32>
    %30 = vector.broadcast %8 : vector<50x1xf32> to vector<50x128xf32>
    %31 = arith.mulf %29, %30 : vector<50x128xf32>
    %32 = vector.broadcast %9 : vector<50x1xf32> to vector<50x128xf32>
    %33 = arith.addf %31, %32 : vector<50x128xf32>
    %34 = math.sin %33 : vector<50x128xf32>
    %c0_14 = arith.constant 0 : index
    %c0_15 = arith.constant 0 : index
    %35 = vector.load %arg6[%c0_14, %c0_15] : memref<50x50xf32, #tpu.memory_space<vmem>>, vector<50x50xf32>
    %cst_16 = arith.constant dense<0.000000e+00> : vector<50x128xf32>
    %36 = tpu.matmul %35, %34, %cst_16 {dimension_numbers = #tpu.dot_dimension_numbers<[1], [0], [0], [1], [0, 0, 1, 1], [], []>, precision = #tpu.contract_precision<fp32>} : vector<50x50xf32>, vector<50x128xf32>, vector<50x128xf32> -> vector<50x128xf32>
    %c0_17 = arith.constant 0 : index
    %c0_18 = arith.constant 0 : index
    %37 = vector.load %arg7[%c0_17, %c0_18] : memref<50x1xf32, #tpu.memory_space<vmem>>, vector<50x1xf32>
    %38 = vector.broadcast %37 : vector<50x1xf32> to vector<50x128xf32>
    %39 = arith.addf %36, %38 : vector<50x128xf32>
    %c0_19 = arith.constant 0 : index
    %c0_20 = arith.constant 0 : index
    %40 = vector.load %arg8[%c0_19, %c0_20] : memref<50x1xf32, #tpu.memory_space<vmem>>, vector<50x1xf32>
    %c0_21 = arith.constant 0 : index
    %c0_22 = arith.constant 0 : index
    %41 = vector.load %arg9[%c0_21, %c0_22] : memref<50x1xf32, #tpu.memory_space<vmem>>, vector<50x1xf32>
    %cst_23 = arith.constant dense<0.000000e+00> : vector<128xf32>
    %42 = vector.multi_reduction <add>, %39, %cst_23 [0] : vector<50x128xf32> to vector<128xf32>
    %43 = vector.shape_cast %42 : vector<128xf32> to vector<1x128xf32>
    %cst_24 = arith.constant 5.000000e+01 : f32
    %44 = vector.broadcast %cst_24 : f32 to vector<1x128xf32>
    %45 = arith.divf %43, %44 : vector<1x128xf32>
    %46 = arith.mulf %39, %39 : vector<50x128xf32>
    %cst_25 = arith.constant dense<0.000000e+00> : vector<128xf32>
    %47 = vector.multi_reduction <add>, %46, %cst_25 [0] : vector<50x128xf32> to vector<128xf32>
    %48 = vector.shape_cast %47 : vector<128xf32> to vector<1x128xf32>
    %cst_26 = arith.constant 5.000000e+01 : f32
    %49 = vector.broadcast %cst_26 : f32 to vector<1x128xf32>
    %50 = arith.divf %48, %49 : vector<1x128xf32>
    %51 = arith.mulf %45, %45 : vector<1x128xf32>
    %52 = arith.subf %50, %51 : vector<1x128xf32>
    %cst_27 = arith.constant 0.000000e+00 : f32
    %53 = vector.broadcast %cst_27 : f32 to vector<1x128xf32>
    %54 = arith.maximumf %52, %53 : vector<1x128xf32>
    %55 = vector.broadcast %45 : vector<1x128xf32> to vector<50x128xf32>
    %56 = arith.subf %39, %55 : vector<50x128xf32>
    %cst_28 = arith.constant 9.99999974E-6 : f32
    %57 = vector.broadcast %cst_28 : f32 to vector<1x128xf32>
    %58 = arith.addf %54, %57 : vector<1x128xf32>
    %59 = math.rsqrt %58 : vector<1x128xf32>
    %60 = vector.broadcast %59 : vector<1x128xf32> to vector<50x128xf32>
    %61 = arith.mulf %56, %60 : vector<50x128xf32>
    %62 = vector.broadcast %40 : vector<50x1xf32> to vector<50x128xf32>
    %63 = arith.mulf %61, %62 : vector<50x128xf32>
    %64 = vector.broadcast %41 : vector<50x1xf32> to vector<50x128xf32>
    %65 = arith.addf %63, %64 : vector<50x128xf32>
    %66 = math.sin %65 : vector<50x128xf32>
    %c0_29 = arith.constant 0 : index
    %c0_30 = arith.constant 0 : index
    %67 = vector.load %arg10[%c0_29, %c0_30] : memref<8x50xf32, #tpu.memory_space<vmem>>, vector<8x50xf32>
    %cst_31 = arith.constant dense<0.000000e+00> : vector<8x128xf32>
    %68 = tpu.matmul %67, %66, %cst_31 {dimension_numbers = #tpu.dot_dimension_numbers<[1], [0], [0], [1], [0, 0, 1, 1], [], []>, precision = #tpu.contract_precision<fp32>} : vector<8x50xf32>, vector<50x128xf32>, vector<8x128xf32> -> vector<8x128xf32>
    %c0_32 = arith.constant 0 : index
    %c0_33 = arith.constant 0 : index
    %69 = vector.load %arg11[%c0_32, %c0_33] : memref<8x1xf32, #tpu.memory_space<vmem>>, vector<8x1xf32>
    %70 = vector.broadcast %69 : vector<8x1xf32> to vector<8x128xf32>
    %71 = arith.addf %68, %70 : vector<8x128xf32>
    %72 = math.tanh %71 : vector<8x128xf32>
    %c0_34 = arith.constant 0 : index
    %c0_35 = arith.constant 0 : index
    %73 = vector.load %arg12[%c0_34, %c0_35] : memref<8x128xf32, #tpu.memory_space<vmem>>, vector<8x128xf32>
    tpu.vector_store %arg12[%c0_34, %c0_35], %72 {strides = array<i32>} : memref<8x128xf32, #tpu.memory_space<vmem>>, vector<8x128xf32>,
    return
  }
  func.func @transform_0(%arg0: i32) -> (i32, i32) {
    %c0_i32 = arith.constant 0 : i32
    %c0_i32_0 = arith.constant 0 : i32
    return %c0_i32, %arg0 : i32, i32
  }
  func.func @transform_1(%arg0: i32) -> (i32, i32) {
    %c0_i32 = arith.constant 0 : i32
    %c0_i32_0 = arith.constant 0 : i32
    %c0_i32_1 = arith.constant 0 : i32
    return %c0_i32, %c0_i32_0 : i32, i32
  }
  func.func @transform_2(%arg0: i32) -> (i32, i32) {
    %c0_i32 = arith.constant 0 : i32
    %c0_i32_0 = arith.constant 0 : i32
    %c0_i32_1 = arith.constant 0 : i32
    return %c0_i32, %c0_i32_0 : i32, i32
  }
  func.func @transform_3(%arg0: i32) -> (i32, i32) {
    %c0_i32 = arith.constant 0 : i32
    %c0_i32_0 = arith.constant 0 : i32
    %c0_i32_1 = arith.constant 0 : i32
    return %c0_i32, %c0_i32_0 : i32, i32
  }
  func.func @transform_4(%arg0: i32) -> (i32, i32) {
    %c0_i32 = arith.constant 0 : i32
    %c0_i32_0 = arith.constant 0 : i32
    %c0_i32_1 = arith.constant 0 : i32
    return %c0_i32, %c0_i32_0 : i32, i32
  }
  func.func @transform_5(%arg0: i32) -> (i32, i32) {
    %c0_i32 = arith.constant 0 : i32
    %c0_i32_0 = arith.constant 0 : i32
    %c0_i32_1 = arith.constant 0 : i32
    return %c0_i32, %c0_i32_0 : i32, i32
  }
  func.func @transform_6(%arg0: i32) -> (i32, i32) {
    %c0_i32 = arith.constant 0 : i32
    %c0_i32_0 = arith.constant 0 : i32
    %c0_i32_1 = arith.constant 0 : i32
    return %c0_i32, %c0_i32_0 : i32, i32
  }
  func.func @transform_7(%arg0: i32) -> (i32, i32) {
    %c0_i32 = arith.constant 0 : i32
    %c0_i32_0 = arith.constant 0 : i32
    %c0_i32_1 = arith.constant 0 : i32
    return %c0_i32, %c0_i32_0 : i32, i32
  }
  func.func @transform_8(%arg0: i32) -> (i32, i32) {
    %c0_i32 = arith.constant 0 : i32
    %c0_i32_0 = arith.constant 0 : i32
    %c0_i32_1 = arith.constant 0 : i32
    return %c0_i32, %c0_i32_0 : i32, i32
  }
  func.func @transform_9(%arg0: i32) -> (i32, i32) {
    %c0_i32 = arith.constant 0 : i32
    %c0_i32_0 = arith.constant 0 : i32
    %c0_i32_1 = arith.constant 0 : i32
    return %c0_i32, %c0_i32_0 : i32, i32
  }
  func.func @transform_10(%arg0: i32) -> (i32, i32) {
    %c0_i32 = arith.constant 0 : i32
    %c0_i32_0 = arith.constant 0 : i32
    %c0_i32_1 = arith.constant 0 : i32
    return %c0_i32, %c0_i32_0 : i32, i32
  }
  func.func @transform_11(%arg0: i32) -> (i32, i32) {
    %c0_i32 = arith.constant 0 : i32
    %c0_i32_0 = arith.constant 0 : i32
    return %c0_i32, %arg0 : i32, i32
  }
}

</mosaic_0001>

<bundles_post_ra>
// kernel: default_subnet_forward.1
= control target key start
LH: loop header
LB: loop body
LE: loop exit
PB: predicated region body
PF: predicated region fallthrough
CT: control target
= control target key end

     0   :  { %v4128_v0 = vmov 0   ;;  %vm162_vm0 = vcmask 1041408   ;;  %s6065_s1 = inlined_call_operand.vmem [shape: f32[50,1], index: 1, kind: input, shape index: {}]   ;;  %s6066_s2 = inlined_call_operand.vmem [shape: f32[50,1], index: 2, kind: input, shape index: {}]   ;;  %s6067_s3 = inlined_call_operand.vmem [shape: f32[50,1], index: 3, kind: input, shape index: {}]   ;;  %s6068_s4 = inlined_call_operand.vmem [shape: f32[50,1], index: 4, kind: input, shape index: {}]   ;;  %s6069_s6 = inlined_call_operand.vmem [shape: f32[50,1], index: 6, kind: input, shape index: {}]   ;;  %s6070_s7 = inlined_call_operand.vmem [shape: f32[50,1], index: 7, kind: input, shape index: {}]   ;;  %s6071_s8 = inlined_call_operand.vmem [shape: f32[50,1], index: 8, kind: input, shape index: {}]   ;;  %s6072_s10 = inlined_call_operand.vmem [shape: f32[8,1], index: 10, kind: input, shape index: {}]   ;;  %s6073_s0 = inlined_call_operand.vmem [shape: f32[1,128], index: 0, kind: input, shape index: {}]   ;;  %s6074_s5 = inlined_call_operand.vmem [shape: f32[50,50], index: 5, kind: input, shape index: {}]   ;;  %s6075_s9 = inlined_call_operand.vmem [shape: f32[8,50], index: 9, kind: input, shape index: {}]   ;;  %s6076_s11 = inlined_call_operand.vmem [shape: f32[8,128], index: 11, kind: output, shape index: {}]  }
   0x1   :  { %4065 = vset.pattern.permute.xlu1 %v4128_v0  ;;  %4064 = vset.pattern.permute.xlu0 %v4128_v0  ;;  %v41_v1 = vld [vmem:[%s6065_s1 + $0x10] sm:$0xff]  ;;  %v39_v2 = vld [vmem:[%s6065_s1] sm:$0xff]  ;;  %v40_v4 = vld [vmem:[%s6065_s1 + $0x8] sm:$0xff] }
   0x2   :  { %58 = vperm.xlu1 %4065, %v41_v1   ;;  %48 = vperm.xlu0 %4064, %v39_v2   ;;  %v94_v3 = vld [vmem:[%s6066_s2] sm:$0xff]  ;;  %v42_v5 = vld [vmem:[%s6065_s1 + $0x18] sm:$0xff]  ;;  %v95_v6 = vld [vmem:[%s6066_s2 + $0x8] sm:$0xff] }
   0x3   :  { %v43_v7 = vld [vmem:[%s6065_s1 + $0x20] sm:$0xff]  ;;  %v96_v8 = vld [vmem:[%s6066_s2 + $0x10] sm:$0xff]  ;;  %v44_v9 = vld [vmem:[%s6065_s1 + $0x28] sm:$0xff] }
   0x4   :  { %v97_v10 = vld [vmem:[%s6066_s2 + $0x18] sm:$0xff]  ;;  %v45_v11 = vld [vmem:[%s6065_s1 + $0x30] sm:$0x3]  ;;  %v98_v12 = vld [vmem:[%s6066_s2 + $0x20] sm:$0xff] }
   0x5   :  { %v100_v13 = vld [vmem:[%s6066_s2 + $0x30] sm:$0x3]  ;;  %v99_v14 = vld [vmem:[%s6066_s2 + $0x28] sm:$0xff]  ;;  %v143_v16 = vld [vmem:[%s6067_s3] sm:$0xff] }
   0x6   :  { %103 = vperm.xlu1 %4065, %v94_v3   ;;  %53 = vperm.xlu0 %4064, %v40_v4   ;;  %v144_v15 = vld [vmem:[%s6067_s3 + $0x8] sm:$0xff]  ;;  %v150_v18 = vld [vmem:[%s6068_s4] sm:$0xff]  ;;  %v146_v19 = vld [vmem:[%s6067_s3 + $0x18] sm:$0xff] }
   0x7   :  { %v151_v17 = vld [vmem:[%s6068_s4 + $0x8] sm:$0xff]  ;;  %v145_v20 = vld [vmem:[%s6067_s3 + $0x10] sm:$0xff]  ;;  %v153_v21 = vld [vmem:[%s6068_s4 + $0x18] sm:$0xff] }
   0x8   :  { %v152_v22 = vld [vmem:[%s6068_s4 + $0x10] sm:$0xff]  ;;  %v148_v23 = vld [vmem:[%s6067_s3 + $0x28] sm:$0xff]  ;;  %v147_v24 = vld [vmem:[%s6067_s3 + $0x20] sm:$0xff] }
   0x9   :  { %v155_v25 = vld [vmem:[%s6068_s4 + $0x28] sm:$0xff]  ;;  %v154_v26 = vld [vmem:[%s6068_s4 + $0x20] sm:$0xff]  ;;  %v156_v27 = vld [vmem:[%s6068_s4 + $0x30] sm:$0x3] }
   0xa   :  { %63 = vperm.xlu1 %4065, %v42_v5   ;;  %108 = vperm.xlu0 %4064, %v95_v6   ;;  %v149_v28 = vld [vmem:[%s6067_s3 + $0x30] sm:$0x3]  ;;  %v1033_v29 = vld [vmem:[%s6069_s6 + $0x8] sm:$0xff]  ;;  %v1032_v30 = vld [vmem:[%s6069_s6] sm:$0xff] }
   0xb   :  { %v1035_v31 = vld [vmem:[%s6069_s6 + $0x18] sm:$0xff]  ;;  %v1034_v32 = vld [vmem:[%s6069_s6 + $0x10] sm:$0xff]  ;;  %v1037_v33 = vld [vmem:[%s6069_s6 + $0x28] sm:$0xff] }
   0xc   :  { %v1036_v34 = vld [vmem:[%s6069_s6 + $0x20] sm:$0xff]  ;;  %v1038_v36 = vld [vmem:[%s6069_s6 + $0x30] sm:$0x3]  ;;  %v1882_v38 = vld [vmem:[%s6070_s7 + $0x8] sm:$0xff] }
   0xd   :  { %v1881_v35 = vld [vmem:[%s6070_s7] sm:$0xff]  ;;  %v1883_v39 = vld [vmem:[%s6070_s7 + $0x10] sm:$0xff]  ;;  %v1889_v40 = vld [vmem:[%s6071_s8 + $0x8] sm:$0xff] }
   0xe   :  { %68 = vperm.xlu1 %4065, %v43_v7   ;;  %113 = vperm.xlu0 %4064, %v96_v8   ;;  %v1888_v37 = vld [vmem:[%s6071_s8] sm:$0xff]  ;;  %v1890_v41 = vld [vmem:[%s6071_s8 + $0x10] sm:$0xff]  ;;  %v1884_v42 = vld [vmem:[%s6070_s7 + $0x18] sm:$0xff] }
   0xf   :  { %v1885_v43 = vld [vmem:[%s6070_s7 + $0x20] sm:$0xff]  ;;  %v1891_v44 = vld [vmem:[%s6071_s8 + $0x18] sm:$0xff]  ;;  %v1886_v46 = vld [vmem:[%s6070_s7 + $0x28] sm:$0xff] }
  0x10   :  { %v1892_v45 = vld [vmem:[%s6071_s8 + $0x20] sm:$0xff]  ;;  %v1887_v47 = vld [vmem:[%s6070_s7 + $0x30] sm:$0x3]  ;;  %v1893_v48 = vld [vmem:[%s6071_s8 + $0x28] sm:$0xff] }
  0x11   :  { %v2762_v49 = vld [vmem:[%s6072_s10] sm:$0xff]  ;;  %v1894_v50 = vld [vmem:[%s6071_s8 + $0x30] sm:$0x3] }
  0x12   :  { %73 = vperm.xlu1 %4065, %v44_v9   ;;  %118 = vperm.xlu0 %4064, %v97_v10   ;;  %v3304_v57 = vld [vmem:[%s6073_s0] ss:$0 sm:$0xff] }
  0x16   :  { %78 = vperm.xlu1 %4065, %v45_v11   ;;  %123 = vperm.xlu0 %4064, %v98_v12  }
  0x1a   :  { %133 = vperm.xlu1 %4065, %v100_v13   ;;  %128 = vperm.xlu0 %4064, %v99_v14  }
  0x1e   :  { %220 = vperm.xlu1 %4065, %v144_v15   ;;  %215 = vperm.xlu0 %4064, %v143_v16  }
  0x22   :  { %262 = vperm.xlu1 %4065, %v151_v17   ;;  %257 = vperm.xlu0 %4064, %v150_v18  }
  0x26   :  { %230 = vperm.xlu1 %4065, %v146_v19   ;;  %225 = vperm.xlu0 %4064, %v145_v20  }
  0x2a   :  { %272 = vperm.xlu1 %4065, %v153_v21   ;;  %267 = vperm.xlu0 %4064, %v152_v22  }
  0x2e   :  { %240 = vperm.xlu1 %4065, %v148_v23   ;;  %235 = vperm.xlu0 %4064, %v147_v24  }
  0x32   :  { %282 = vperm.xlu1 %4065, %v155_v25   ;;  %277 = vperm.xlu0 %4064, %v154_v26  }
  0x36   :  { %287 = vperm.xlu1 %4065, %v156_v27   ;;  %245 = vperm.xlu0 %4064, %v149_v28  }
  0x3a   :  { %1046 = vperm.xlu1 %4065, %v1033_v29   ;;  %1041 = vperm.xlu0 %4064, %v1032_v30  }
  0x3e   :  { %1056 = vperm.xlu1 %4065, %v1035_v31   ;;  %1051 = vperm.xlu0 %4064, %v1034_v32  }
  0x42   :  { %1066 = vperm.xlu1 %4065, %v1037_v33   ;;  %1061 = vperm.xlu0 %4064, %v1036_v34  }
  0x46   :  { %1951 = vperm.xlu1 %4065, %v1881_v35   ;;  %1071 = vperm.xlu0 %4064, %v1038_v36  }
  0x4a   :  { %1993 = vperm.xlu1 %4065, %v1888_v37   ;;  %1956 = vperm.xlu0 %4064, %v1882_v38  }
  0x4e   :  { %1961 = vperm.xlu1 %4065, %v1883_v39   ;;  %1998 = vperm.xlu0 %4064, %v1889_v40  }
  0x52   :  { %2003 = vperm.xlu1 %4065, %v1890_v41   ;;  %1966 = vperm.xlu0 %4064, %v1884_v42  }
  0x56   :  { %1971 = vperm.xlu1 %4065, %v1885_v43   ;;  %2008 = vperm.xlu0 %4064, %v1891_v44  }
  0x5a   :  { %2013 = vperm.xlu1 %4065, %v1892_v45   ;;  %1976 = vperm.xlu0 %4064, %v1886_v46  }
  0x5e   :  { %1981 = vperm.xlu1 %4065, %v1887_v47   ;;  %2018 = vperm.xlu0 %4064, %v1893_v48  }
  0x62   :  { %2765 = vperm.xlu1 %4065, %v2762_v49   ;;  %2023 = vperm.xlu0 %4064, %v1894_v50  }
  0x81   :  { %v59_v51 = vpop.permute.xlu1 %58  ;;  %v49_v52 = vpop.permute.xlu0 %48 }
  0x82   :  { %v89_v59 = vmul.f32 %v3304_v57, %v59_v51  ;;  %v87_v60 = vmul.f32 %v3304_v57, %v49_v52 }
  0x85   :  { %v104_v53 = vpop.permute.xlu1 %103  ;;  %v54_v54 = vpop.permute.xlu0 %53 }
  0x86   :  { %v88_v58 = vmul.f32 %v3304_v57, %v54_v54  ;;  %v4353_v0 = vadd.f32 %v104_v53, %v87_v60 }
  0x88   :  { %v173_v7 = vmul.f32 %v4353_v0, %v4353_v0 }
  0x89   :  { %v64_v55 = vpop.permute.xlu1 %63  ;;  %v109_v56 = vpop.permute.xlu0 %108 }
  0x8a   :  { %v4351_v61 = vadd.f32 %v109_v56, %v88_v58  ;;  %v90_v2 = vmul.f32 %v3304_v57, %v64_v55 }
  0x8c   :  { %v174_v3 = vmul.f32 %v4351_v61, %v4351_v61  ;;  %v157_v9 = vadd.f32 %v4351_v61, %v4353_v0 }
  0x8d   :  { %v69_v62 = vpop.permute.xlu1 %68  ;;  %v114_v63 = vpop.permute.xlu0 %113 }
  0x8e   :  { %v4355_v1 = vadd.f32 %v114_v63, %v89_v59  ;;  %v91_v10 = vmul.f32 %v3304_v57, %v69_v62  ;;  %v180_v11 = vadd.f32 %v174_v3, %v173_v7 }
  0x90   :  { %v175_v8 = vmul.f32 %v4355_v1, %v4355_v1  ;;  %v158_v15 = vadd.f32 %v157_v9, %v4355_v1 }
  0x91   :  { %v74_v4 = vpop.permute.xlu1 %73  ;;  %v119_v5 = vpop.permute.xlu0 %118 }
  0x92   :  { %v4359_v6 = vadd.f32 %v119_v5, %v90_v2  ;;  %v181_v17 = vadd.f32 %v180_v11, %v175_v8  ;;  %v92_v18 = vmul.f32 %v3304_v57, %v74_v4 }
  0x94   :  { %v176_v12 = vmul.f32 %v4359_v6, %v4359_v6  ;;  %v159_v19 = vadd.f32 %v158_v15, %v4359_v6 }
  0x95   :  { %v79_v13 = vpop.permute.xlu1 %78  ;;  %v124_v14 = vpop.permute.xlu0 %123 }
  0x96   :  { %v4370_v16 = vadd.f32 %v124_v14, %v91_v10  ;;  %v93_v20 = vmul.f32 %v3304_v57, %v79_v13  ;;  %v182_v22 = vadd.f32 %v181_v17, %v176_v12 }
  0x98   :  { %v177_v21 = vmul.f32 %v4370_v16, %v4370_v16  ;;  %v160_v25 = vadd.f32 %v159_v19, %v4370_v16 }
  0x99   :  { %v134_v23 = vpop.permute.xlu1 %133  ;;  %v129_v24 = vpop.permute.xlu0 %128 }
  0x9a   :  { %v4376_v26 = vadd.f32 %v134_v23, %v93_v20  ;;  %v4378_v27 = vadd.f32 %v129_v24, %v92_v18  ;;  %v183_v28 = vadd.f32 %v182_v22, %v177_v21 }
  0x9c   :  { %v163_v29 = vsel %vm162_vm0, %v4376_v26, 0.0  ;;  %v179_v30 = vmul.f32 %v4376_v26, %v4376_v26  ;;  %v161_v31 = vadd.f32 %v160_v25, %v4378_v27  ;;  %v178_v32 = vmul.f32 %v4378_v27, %v4378_v27 }
  0x9d   :  { %v216_v50 = vpop.permute.xlu0 %215  ;;  %v221_v56 = vpop.permute.xlu1 %220 }
  0x9e   :  { %v185_v33 = vsel %vm162_vm0, %v179_v30, 0.0  ;;  %v164_v34 = vadd.f32 %v163_v29, %v161_v31  ;;  %v184_v35 = vadd.f32 %v183_v28, %v178_v32 }
  0xa0   :  { %v165_v36 = vrot.slane %v164_v34, 4  ;;  %v186_v37 = vadd.f32 %v185_v33, %v184_v35 }
  0xa1   :  { %v258_v57 = vpop.permute.xlu0 %257  ;;  %v263_v59 = vpop.permute.xlu1 %262 }
  0xa2   :  { %v166_v38 = vadd.f32 %v165_v36, %v164_v34  ;;  %v187_v39 = vrot.slane %v186_v37, 4 }
  0xa4   :  { %v167_v40 = vrot.slane %v166_v38, 2  ;;  %v188_v41 = vadd.f32 %v187_v39, %v186_v37 }
  0xa5   :  { %v226_v60 = vpop.permute.xlu0 %225  ;;  %v231_v62 = vpop.permute.xlu1 %230 }
  0xa6   :  { %v168_v42 = vadd.f32 %v167_v40, %v166_v38  ;;  %v189_v43 = vrot.slane %v188_v41, 2 }
  0xa8   :  { %v169_v44 = vrot.slane %v168_v42, 1  ;;  %v190_v45 = vadd.f32 %v189_v43, %v188_v41 }
  0xa9   :  { %v268_v63 = vpop.permute.xlu0 %267  ;;  %v273_v14 = vpop.permute.xlu1 %272 }
  0xaa   :  { %v170_v46 = vadd.f32 %v169_v44, %v168_v42  ;;  %v191_v47 = vrot.slane %v190_v45, 1 }
  0xac   :  { %v172_v48 = vmul.f32 0.02, %v170_v46  ;;  %v192_v49 = vadd.f32 %v191_v47, %v190_v45 }
  0xad   :  { %v236_v15 = vpop.permute.xlu0 %235  ;;  %v241_v43 = vpop.permute.xlu1 %240 }
  0xae   :  { %v193_v51 = vmul.f32 0.02, %v192_v49  ;;  %v194_v52 = vmul.f32 %v172_v48, %v172_v48  ;;  %v203_v54 = vsub.f32 %v4376_v26, %v172_v48  ;;  %v198_v2 = vsub.f32 %v4351_v61, %v172_v48 }
  0xaf   :  { %v197_v3 = vsub.f32 %v4353_v0, %v172_v48  ;;  %v200_v4 = vsub.f32 %v4359_v6, %v172_v48  ;;  %v199_v13 = vsub.f32 %v4355_v1, %v172_v48  ;;  %v202_v24 = vsub.f32 %v4378_v27, %v172_v48 }
  0xb0   :  { %v195_v53 = vsub.f32 %v193_v51, %v194_v52  ;;  %v201_v29 = vsub.f32 %v4370_v16, %v172_v48 }
  0xb1   :  { %v4410_v30 = vpop.permute.xlu0 %277 }
  0xb2   :  { %v196_v55 = vmax.f32 %v195_v53, 0.0 }
  0xb4   :  { %v204_v58 = vadd.f32 1e-05, %v196_v55 }
  0xb5   :  { %v246_v47 = vpop.permute.xlu0 %245 }
  0xb6   :  { %4066 = vrsqrt.f32 %v204_v58 }
  0xc0   :  { %v4067_v5 = vpop.eup %4066 }
  0xc1   :  { %v207_v7 = vmul.f32 %v4067_v5, %v198_v2  ;;  %v206_v8 = vmul.f32 %v4067_v5, %v197_v3  ;;  %v209_v9 = vmul.f32 %v4067_v5, %v200_v4  ;;  %v208_v61 = vmul.f32 %v4067_v5, %v199_v13 }
  0xc2   :  { %v211_v33 = vmul.f32 %v4067_v5, %v202_v24  ;;  %v210_v35 = vmul.f32 %v4067_v5, %v201_v29  ;;  %v212_v27 = vmul.f32 %v4067_v5, %v203_v54  ;;  %v4131_v2 = vmov 2131351028  }
  0xc3   :  { %v249_v10 = vmul.f32 %v221_v56, %v207_v7  ;;  %v248_v11 = vmul.f32 %v216_v50, %v206_v8  ;;  %v251_v12 = vmul.f32 %v231_v62, %v209_v9  ;;  %v250_v23 = vmul.f32 %v226_v60, %v208_v61 }
  0xc4   :  { %v4415_v16 = vmul.f32 %v241_v43, %v211_v33  ;;  %v4419_v46 = vmul.f32 %v236_v15, %v210_v35  ;;  %v4421_v51 = vmul.f32 %v246_v47, %v212_v27  ;;  %v4130_v62 = vmov 2475754826  }
  0xc5   :  { %v4393_v17 = vadd.f32 %v263_v59, %v249_v10  ;;  %v4395_v18 = vadd.f32 %v258_v57, %v248_v11  ;;  %v4397_v19 = vadd.f32 %v273_v14, %v251_v12  ;;  %v4412_v38 = vadd.f32 %v268_v63, %v250_v23 }
  0xc6   :  { %v4129_v57 = vmov 683565275   ;;  %v4132_v4 = vmov 2102212464   ;;  %v4133_v7 = vmov 920167782  }
  0xc7   :  { %v401_v0 = vand.u32 2147483647, %v4393_v17  ;;  %v404_v6 = vand.u32 2139095040, %v4393_v17  ;;  %v297_v20 = vand.u32 2147483647, %v4395_v18  ;;  %v300_v21 = vand.u32 2139095040, %v4395_v18 }
  0xc8   :  { %v612_v1 = vand.u32 2139095040, %v4397_v19  ;;  %v609_v42 = vand.u32 2147483647, %v4397_v19  ;;  %v508_v55 = vand.u32 2139095040, %v4412_v38  ;;  %v4134_v14 = vmov 1326507024  }
  0xc9   :  { %v405_v22 = vshrl.u32 %v404_v6, 23  ;;  %v408_v25 = vand.u32 8388607, %v401_v0  ;;  %v301_v26 = vshrl.u32 %v300_v21, 23  ;;  %v304_v28 = vand.u32 8388607, %v297_v20 }
  0xca   :  { %v613_v32 = vshrl.u32 %v612_v1, 23  ;;  %v4429_v54 = vand.u32 8388607, %v609_v42 }
  0xcb   :  { %v3309_v31 = vadd.s32 4294967169, %v405_v22  ;;  %v3305_v34 = vadd.s32 4294967169, %v301_v26  ;;  %v409_v39 = vor.u32 8388608, %v408_v25  ;;  %v305_v40 = vor.u32 8388608, %v304_v28 }
  0xcc   :  { %v3317_v37 = vadd.s32 4294967169, %v613_v32 }
  0xcd   :  { %v411_v36 = vadd.s32 1, %v3309_v31  ;;  %v307_v41 = vadd.s32 1, %v3305_v34  ;;  %v4423_v52 = vshll.u32 %v409_v39, 8  ;;  %v4425_v53 = vshll.u32 %v305_v40, 8 }
  0xce   :  { %v4417_v45 = vadd.s32 1, %v3317_v37 }
  0xcf   :  { %vm412_vm1 = vcmp.gt.s32.totalorder %v411_v36, 0  ;;  %vm308_vm2 = vcmp.gt.s32.totalorder %v307_v41, 0 }
  0xd0   :  { %v413_v44 = vsel %vm412_vm1, %v411_v36, 0  ;;  %v309_v50 = vsel %vm308_vm2, %v307_v41, 0  ;;  %vm620_vm3 = vcmp.gt.s32.totalorder %v4417_v45, 0  ;;  %vm403_vm2 = vcmp.lt.s32.totalorder %v4393_v17, 0 }
  0xd1   :  { %v414_v48 = vshrl.u32 %v413_v44, 5  ;;  %v415_v49 = vand.u32 31, %v413_v44  ;;  %v4433_v59 = vshrl.u32 %v309_v50, 5  ;;  %v311_v60 = vand.u32 31, %v309_v50 }
  0xd3   :  { %v416_v56 = vsub.s32 32, %v415_v49  ;;  %v418_v58 = vshll.u32 %v4129_v57, %v415_v49  ;;  %v421_v63 = vshll.u32 %v4130_v62, %v415_v49  ;;  %v424_v3 = vshll.u32 %v4131_v2, %v415_v49 }
  0xd4   :  { %v427_v5 = vshll.u32 %v4132_v4, %v415_v49  ;;  %v430_v8 = vshll.u32 %v4133_v7, %v415_v49  ;;  %vm433_vm4 = vcmp.lt.s32.totalorder %v414_v48, 1  ;;  %vm434_vm5 = vcmp.lt.s32.totalorder %v414_v48, 2 }
  0xd5   :  { %v419_v9 = vshrl.u32 %v4130_v62, %v416_v56  ;;  %v422_v10 = vshrl.u32 %v4131_v2, %v416_v56  ;;  %v425_v11 = vshrl.u32 %v4132_v4, %v416_v56  ;;  %v417_v12 = vshrl.u32 %v4129_v57, %v416_v56 }
  0xd6   :  { %v428_v13 = vshrl.u32 %v4133_v7, %v416_v56  ;;  %v431_v15 = vshrl.u32 %v4134_v14, %v416_v56  ;;  %v312_v22 = vsub.s32 32, %v311_v60  ;;  %vm435_vm6 = vcmp.lt.s32.totalorder %v414_v48, 3 }
  0xd7   :  { %v420_v61 = vor.u32 %v419_v9, %v418_v58  ;;  %v423_v6 = vor.u32 %v422_v10, %v421_v63  ;;  %v426_v21 = vor.u32 %v425_v11, %v424_v3  ;;  %vm436_vm7 = vcmp.lt.s32.totalorder %v414_v48, 4 }
  0xd8   :  { %v429_v23 = vor.u32 %v428_v13, %v427_v5  ;;  %v432_v1 = vor.u32 %v431_v15, %v430_v8  ;;  %v314_v33 = vshll.u32 %v4129_v57, %v311_v60  ;;  %v315_v36 = vshrl.u32 %v4130_v62, %v312_v22 }
  0xd9   :  { %v437_v24 = vsel %vm433_vm4, %v417_v12, %v420_v61  ;;  %v438_v25 = vsel %vm436_vm7, %v426_v21, 2102212464  ;;  %v441_v26 = vsel %vm433_vm4, %v420_v61, %v423_v6  ;;  %v445_v28 = vsel %vm433_vm4, %v423_v6, %v426_v21 }
  0xda   :  { %v439_v29 = vsel %vm435_vm6, %v423_v6, %v438_v25  ;;  %v442_v31 = vsel %vm436_vm7, %v429_v23, 920167782  ;;  %v446_v32 = vsel %vm436_vm7, %v432_v1, 1326507024  ;;  %v317_v37 = vshll.u32 %v4130_v62, %v311_v60 }
  0xdb   :  { %v443_v34 = vsel %vm435_vm6, %v426_v21, %v442_v31  ;;  %v447_v35 = vsel %vm435_vm6, %v429_v23, %v446_v32  ;;  %v440_v27 = vsel %vm434_vm5, %v437_v24, %v439_v29  ;;  %v318_v41 = vshrl.u32 %v4131_v2, %v312_v22 }
  0xdc   :  { %v444_v39 = vsel %vm434_vm5, %v441_v26, %v443_v34  ;;  %v448_v40 = vsel %vm434_vm5, %v445_v28, %v447_v35  ;;  %v316_v50 = vor.u32 %v315_v36, %v314_v33  ;;  %v320_v58 = vshll.u32 %v4131_v2, %v311_v60 }
  0xdd   :  { %v4457_v43 = vmul.u32.u64.low %v4423_v52, %v448_v40  ;;  %v4458_v44 = vmul.u32.u64.high %v4423_v52, %v448_v40, %v4457_v43  ;;  %v4461_v47 = vmul.u32.u64.low %v4423_v52, %v444_v39  ;;  %v4462_v49 = vmul.u32.u64.high %v4423_v52, %v444_v39, %v4461_v47 }
  0xde   :  { %v319_v56 = vor.u32 %v318_v41, %v317_v37  ;;  %v321_v63 = vshrl.u32 %v4132_v4, %v312_v22  ;;  %v323_v48 = vshll.u32 %v4132_v4, %v311_v60  ;;  %v324_v3 = vshrl.u32 %v4133_v7, %v312_v22 }
  0xdf   :  { %v327_v5 = vshrl.u32 %v4134_v14, %v312_v22  ;;  %v621_v8 = vsel %vm620_vm3, %v4417_v45, 0  ;;  %v456_v9 = vmul.u32 %v4423_v52, %v440_v27  ;;  %v313_v10 = vshrl.u32 %v4129_v57, %v312_v22  ;;  %v283_v52 = vpop.permute.xlu1 %282 }
  0xe0   :  { %v322_v11 = vor.u32 %v321_v63, %v320_v58  ;;  %v326_v12 = vshll.u32 %v4133_v7, %v311_v60  ;;  %vm458_vm8 = vc.u32 %v4458_v44, %v4461_v47  ;;  %v459_v13 = vadd.s32 1, %v4462_v49 }
  0xe1   :  { %v325_v15 = vor.u32 %v324_v3, %v323_v48  ;;  %vm329_vm9 = vcmp.lt.s32.totalorder %v4433_v59, 1  ;;  %vm331_vm10 = vcmp.lt.s32.totalorder %v4433_v59, 3  ;;  %vm332_vm11 = vcmp.lt.s32.totalorder %v4433_v59, 4 }
  0xe2   :  { %v328_v61 = vor.u32 %v327_v5, %v326_v12  ;;  %v337_v45 = vsel %vm329_vm9, %v316_v50, %v319_v56  ;;  %v460_v6 = vsel %vm458_vm8, %v459_v13, %v4462_v49  ;;  %v334_v21 = vsel %vm332_vm11, %v322_v11, 2102212464 }
  0xe3   :  { %v338_v22 = vsel %vm332_vm11, %v325_v15, 920167782  ;;  %v341_v60 = vsel %vm329_vm9, %v319_v56, %v322_v11  ;;  %v461_v23 = vadd.s32 %v460_v6, %v456_v9  ;;  %vm330_vm12 = vcmp.lt.s32.totalorder %v4433_v59, 2  ;;  %v288_v40 = vpop.permute.xlu1 %287 }
  0xe4   :  { %v339_v1 = vsel %vm331_vm10, %v322_v11, %v338_v22  ;;  %v342_v24 = vsel %vm332_vm11, %v328_v61, 1326507024  ;;  %v333_v25 = vsel %vm329_vm9, %v313_v10, %v316_v50  ;;  %v335_v26 = vsel %vm331_vm10, %v319_v56, %v334_v21 }
  0xe5   :  { %v340_v28 = vsel %vm330_vm12, %v337_v45, %v339_v1  ;;  %v343_v29 = vsel %vm331_vm10, %v325_v15, %v342_v24  ;;  %v462_v31 = vadd.s32 536870912, %v461_v23  ;;  %v623_v37 = vand.u32 31, %v621_v8 }
  0xe6   :  { %v344_v32 = vsel %vm330_vm12, %v341_v60, %v343_v29  ;;  %v4485_v33 = vmul.u32.u64.low %v4425_v53, %v340_v28  ;;  %v4486_v34 = vmul.u32.u64.high %v4425_v53, %v340_v28, %v4485_v33  ;;  %v336_v59 = vsel %vm330_vm12, %v333_v25, %v335_v26 }
  0xe7   :  { %v4490_v35 = vmul.u32.u64.low %v4425_v53, %v344_v32  ;;  %v4491_v36 = vmul.u32.u64.high %v4425_v53, %v344_v32, %v4490_v35  ;;  %v4493_v27 = vshrl.u32 %v462_v31, 30  ;;  %v4496_v39 = vadd.f32 %v283_v52, %v4415_v16 }
  0xe8   :  { %v624_v41 = vsub.s32 32, %v623_v37  ;;  %v505_v43 = vand.u32 2147483647, %v4412_v38  ;;  %v4501_v49 = vadd.f32 %v4410_v30, %v4419_v46  ;;  %v4504_v50 = vadd.f32 %v288_v40, %v4421_v51 }
  0xe9   :  { %v464_v56 = vshll.u32 %v4493_v27, 30  ;;  %v355_v58 = vadd.s32 1, %v4486_v34  ;;  %v617_v63 = vor.u32 8388608, %v4429_v54  ;;  %v509_v16 = vshrl.u32 %v508_v55, 23 }
  0xea   :  { %v352_v48 = vmul.u32 %v4425_v53, %v336_v59  ;;  %vm354_vm13 = vc.u32 %v4491_v36, %v4485_v33  ;;  %v4514_v3 = vshrl.u32 %v621_v8, 5  ;;  %v627_v30 = vshrl.u32 %v4130_v62, %v624_v41 }
  0xeb   :  { %v4517_v46 = vsub.s32 %v461_v23, %v464_v56  ;;  %v356_v51 = vsel %vm354_vm13, %v355_v58, %v4486_v34  ;;  %v626_v5 = vshll.u32 %v4129_v57, %v623_v37  ;;  %v630_v54 = vshrl.u32 %v4131_v2, %v624_v41 }
  0xec   :  { %v357_v9 = vadd.s32 %v356_v51, %v352_v48  ;;  %v629_v55 = vshll.u32 %v4130_v62, %v623_v37  ;;  %v632_v53 = vshll.u32 %v4131_v2, %v623_v37  ;;  %v633_v10 = vshrl.u32 %v4132_v4, %v624_v41 }
  0xed   :  { %v467_v8 = vsub.s32 0, %v4517_v46  ;;  %v628_v11 = vor.u32 %v627_v30, %v626_v5  ;;  %v635_v12 = vshll.u32 %v4132_v4, %v623_v37  ;;  %v636_v13 = vshrl.u32 %v4133_v7, %v624_v41 }
  0xee   :  { %v358_v15 = vadd.s32 536870912, %v357_v9  ;;  %v631_v61 = vor.u32 %v630_v54, %v629_v55  ;;  %v638_v45 = vshll.u32 %v4133_v7, %v623_v37  ;;  %v639_v52 = vshrl.u32 %v4134_v14, %v624_v41 }
  0xef   :  { %v3310_v6 = vmin.u32 %v467_v8, %v4517_v46  ;;  %v634_v21 = vor.u32 %v633_v10, %v632_v53  ;;  %v637_v22 = vor.u32 %v636_v13, %v635_v12  ;;  %v4533_v60 = vand.u32 8388607, %v505_v43 }
  0xf0   :  { %v359_v23 = vshrl.u32 %v358_v15, 30  ;;  %v640_v1 = vor.u32 %v639_v52, %v638_v45  ;;  %vm644_vm14 = vcmp.lt.s32.totalorder %v4514_v3, 4  ;;  %v4536_v24 = vshll.u32 %v617_v63, 8 }
  0xf1   :  { %v469_v25 = vclz %v3310_v6  ;;  %vm641_vm15 = vcmp.lt.s32.totalorder %v4514_v3, 1  ;;  %v650_v26 = vsel %vm644_vm14, %v637_v22, 920167782  ;;  %v3313_v28 = vadd.s32 4294967169, %v509_v16 }
  0xf2   :  { %v457_v29 = vadd.s32 %v4461_v47, %v4458_v44  ;;  %v360_v31 = vshll.u32 %v359_v23, 30  ;;  %vm643_vm1 = vcmp.lt.s32.totalorder %v4514_v3, 3  ;;  %v649_v32 = vsel %vm641_vm15, %v628_v11, %v631_v61 }
  0xf3   :  { %v3311_v34 = vadd.s32 4294967294, %v469_v25  ;;  %v651_v35 = vsel %vm643_vm1, %v634_v21, %v650_v26  ;;  %v653_v37 = vsel %vm641_vm15, %v631_v61, %v634_v21  ;;  %v654_v59 = vsel %vm644_vm14, %v640_v1, 1326507024 }
  0xf4   :  { %v4553_v40 = vsub.s32 %v357_v9, %v360_v31  ;;  %vm642_vm3 = vcmp.lt.s32.totalorder %v4514_v3, 2  ;;  %v646_v44 = vsel %vm644_vm14, %v634_v21, 2102212464  ;;  %v655_v47 = vsel %vm643_vm1, %v637_v22, %v654_v59 }
  0xf5   :  { %vm3312_vm4 = vcmp.lt.s32.totalorder %v3311_v34, 0  ;;  %v487_v56 = vsub.s32 4, %v4493_v27  ;;  %vm299_vm5 = vcmp.lt.s32.totalorder %v4395_v18, 0  ;;  %v625_v58 = vshrl.u32 %v4129_v57, %v624_v41 }
  0xf6   :  { %v656_v63 = vsel %vm642_vm3, %v653_v37, %v655_v47  ;;  %v472_v16 = vsel %vm3312_vm4, 0, %v3311_v34  ;;  %v363_v48 = vsub.s32 0, %v4553_v40  ;;  %v652_v30 = vsel %vm642_vm3, %v649_v32, %v651_v35 }
  0xf7   :  { %v515_v51 = vadd.s32 1, %v3313_v28  ;;  %v473_v5 = vsub.s32 32, %v472_v16  ;;  %v477_v54 = vsub.s32 4294967266, %v472_v16  ;;  %v645_v9 = vsel %vm641_vm15, %v625_v58, %v628_v11 }
  0xf8   :  { %v647_v55 = vsel %vm643_vm1, %v631_v61, %v646_v44  ;;  %vm4574_vm6 = vcmp.le.f32.partialorder %v401_v0, 0.7853982  ;;  %v474_v53 = vshll.u32 %v4517_v46, %v472_v16  ;;  %v3306_v10 = vmin.u32 %v363_v48, %v4553_v40 }
  0xf9   :  { %v4581_v8 = vmul.u32.u64.low %v4536_v24, %v656_v63  ;;  %v4582_v12 = vmul.u32.u64.high %v4536_v24, %v656_v63, %v4581_v8  ;;  %v475_v13 = vshrl.u32 %v457_v29, %v473_v5  ;;  %v478_v15 = vadd.s32 127, %v477_v54 }
  0xfa   :  { %v4585_v11 = vmul.u32.u64.low %v4536_v24, %v652_v30  ;;  %v4586_v45 = vmul.u32.u64.high %v4536_v24, %v652_v30, %v4585_v11  ;;  %vm4591_vm7 = vcmp.le.f32.partialorder %v297_v20, 0.7853982  ;;  %v365_v46 = vclz %v3306_v10 }
  0xfb   :  { %v383_v61 = vsub.s32 4, %v359_v23  ;;  %vm516_vm8 = vcmp.gt.s32.totalorder %v515_v51, 0  ;;  %v476_v52 = vor.u32 %v475_v13, %v474_v53  ;;  %v479_v6 = vshll.u32 %v478_v15, 23 }
  0xfc   :  { %v648_v21 = vsel %vm642_vm3, %v645_v9, %v647_v55  ;;  %v517_v22 = vsel %vm516_vm8, %v515_v51, 0  ;;  %v4600_v1 = vsel %vm403_vm2, %v487_v56, %v4493_v27  ;;  %v3307_v25 = vadd.s32 4294967294, %v365_v46 }
  0xfd   :  { %vm666_vm9 = vc.u32 %v4582_v12, %v4585_v11  ;;  %v817_v20 = vand.u32 2147483647, %v4496_v39  ;;  %v480_v26 = vor.u32 4788187, %v479_v6  ;;  %v667_v28 = vadd.s32 1, %v4586_v45 }
  0xfe   :  { %v513_v29 = vor.u32 8388608, %v4533_v60  ;;  %v519_v31 = vand.u32 31, %v517_v22  ;;  %v483_v3 = vcvt.s32.f32 %v476_v52  ;;  %vm3308_vm10 = vcmp.lt.s32.totalorder %v3307_v25, 0 }
  0xff   :  { %v4609_v32 = vsel %vm299_vm5, %v383_v61, %v359_v23  ;;  %v664_v27 = vmul.u32 %v4536_v24, %v648_v21  ;;  %v481_v34 = vand.u32 2147483647, %v480_v26  ;;  %v368_v35 = vsel %vm3308_vm10, 0, %v3307_v25 }
 0x100   :  { %v668_v37 = vsel %vm666_vm9, %v667_v28, %v4586_v45  ;;  %v520_v59 = vsub.s32 32, %v519_v31  ;;  %v353_v44 = vadd.s32 %v4485_v33, %v4491_v36  ;;  %v369_v47 = vsub.s32 32, %v368_v35 }
 0x101   :  { %v373_v56 = vsub.s32 4294967266, %v368_v35  ;;  %v669_v60 = vadd.s32 %v668_v37, %v664_v27  ;;  %v484_v58 = vmul.f32 %v483_v3, %v481_v34  ;;  %v490_v63 = vsel %vm4574_vm6, 0, %v4600_v1 }
 0x102   :  { %v386_v23 = vsel %vm4591_vm7, 0, %v4609_v32  ;;  %v4621_v24 = vshll.u32 %v513_v29, 8  ;;  %v370_v16 = vshll.u32 %v4553_v40, %v368_v35  ;;  %v371_v48 = vshrl.u32 %v353_v44, %v369_v47 }
 0x103   :  { %v374_v30 = vadd.s32 127, %v373_v56  ;;  %v670_v51 = vadd.s32 536870912, %v669_v60  ;;  %vm611_vm11 = vcmp.lt.s32.totalorder %v4397_v19, 0  ;;  %v4625_v33 = vshrl.u32 %v517_v22, 5 }
 0x104   :  { %v523_v36 = vshrl.u32 %v4130_v62, %v520_v59  ;;  %v526_v5 = vshrl.u32 %v4131_v2, %v520_v59  ;;  %v820_v54 = vand.u32 2139095040, %v4496_v39  ;;  %v372_v9 = vor.u32 %v371_v48, %v370_v16 }
 0x105   :  { %v375_v55 = vshll.u32 %v374_v30, 23  ;;  %v671_v53 = vshrl.u32 %v670_v51, 30  ;;  %v529_v10 = vshrl.u32 %v4132_v4, %v520_v59  ;;  %v485_v8 = vxor.u32 2147483648, %v484_v58 }
 0x106   :  { %v522_v40 = vshll.u32 %v4129_v57, %v519_v31  ;;  %v525_v13 = vshll.u32 %v4130_v62, %v519_v31  ;;  %v532_v15 = vshrl.u32 %v4133_v7, %v520_v59  ;;  %v528_v61 = vshll.u32 %v4131_v2, %v519_v31 }
 0x107   :  { %v376_v45 = vor.u32 4788187, %v375_v55  ;;  %v672_v46 = vshll.u32 %v671_v53, 30  ;;  %v531_v52 = vshll.u32 %v4132_v4, %v519_v31  ;;  %v379_v6 = vcvt.s32.f32 %v372_v9 }
 0x108   :  { %v695_v21 = vsub.s32 4, %v671_v53  ;;  %v524_v22 = vor.u32 %v523_v36, %v522_v40  ;;  %v527_v25 = vor.u32 %v526_v5, %v525_v13  ;;  %v530_v29 = vor.u32 %v529_v10, %v528_v61 }
 0x109   :  { %v377_v26 = vand.u32 2147483647, %v376_v45  ;;  %v4636_v28 = vsub.s32 %v669_v60, %v672_v46  ;;  %v533_v3 = vor.u32 %v532_v15, %v531_v52  ;;  %v534_v27 = vshll.u32 %v4133_v7, %v519_v31 }
 0x10a   :  { %v535_v34 = vshrl.u32 %v4134_v14, %v520_v59  ;;  %vm537_vm12 = vcmp.lt.s32.totalorder %v4625_v33, 1  ;;  %vm538_vm13 = vcmp.lt.s32.totalorder %v4625_v33, 2  ;;  %v521_v44 = vshrl.u32 %v4129_v57, %v520_v59 }
 0x10b   :  { %v380_v35 = vmul.f32 %v379_v6, %v377_v26  ;;  %v675_v37 = vsub.s32 0, %v4636_v28  ;;  %vm539_vm14 = vcmp.lt.s32.totalorder %v4625_v33, 3  ;;  %v486_v47 = vsel %vm403_vm2, %v485_v8, %v484_v58 }
 0x10c   :  { %v536_v56 = vor.u32 %v535_v34, %v534_v27  ;;  %vm540_vm15 = vcmp.lt.s32.totalorder %v4625_v33, 4  ;;  %v545_v31 = vsel %vm537_vm12, %v524_v22, %v527_v25  ;;  %v696_v16 = vsel %vm611_vm11, %v695_v21, %v671_v53 }
 0x10d   :  { %v3318_v60 = vmin.u32 %v675_v37, %v4636_v28  ;;  %v542_v48 = vsel %vm540_vm15, %v530_v29, 2102212464  ;;  %v546_v30 = vsel %vm540_vm15, %v533_v3, 920167782  ;;  %v541_v59 = vsel %vm537_vm12, %v521_v44, %v524_v22 }
 0x10e   :  { %v547_v51 = vsel %vm539_vm14, %v530_v29, %v546_v30  ;;  %v549_v58 = vsel %vm537_vm12, %v527_v25, %v530_v29  ;;  %v550_v36 = vsel %vm540_vm15, %v536_v56, 1326507024  ;;  %v381_v5 = vxor.u32 2147483648, %v380_v35 }
 0x10f   :  { %v677_v9 = vclz %v3318_v60  ;;  %v548_v55 = vsel %vm538_vm13, %v545_v31, %v547_v51  ;;  %v551_v53 = vsel %vm539_vm14, %v533_v3, %v550_v36  ;;  %v543_v10 = vsel %vm539_vm14, %v527_v25, %v542_v48 }
 0x110   :  { %v552_v8 = vsel %vm538_vm13, %v549_v58, %v551_v53  ;;  %v4668_v40 = vmul.u32.u64.low %v4621_v24, %v548_v55  ;;  %v4669_v13 = vmul.u32.u64.high %v4621_v24, %v548_v55, %v4668_v40  ;;  %vm4674_vm1 = vcmp.le.f32.partialorder %v609_v42, 0.7853982 }
 0x111   :  { %v3319_v45 = vadd.s32 4294967294, %v677_v9  ;;  %v4679_v46 = vmul.u32.u64.low %v4621_v24, %v552_v8  ;;  %v4680_v61 = vmul.u32.u64.high %v4621_v24, %v552_v8, %v4679_v46  ;;  %v489_v52 = vsel %vm4574_vm6, %v4393_v17, %v486_v47 }
 0x112   :  { %v494_v6 = vadd.s32 3, %v490_v63  ;;  %v390_v42 = vadd.s32 3, %v386_v23  ;;  %v821_v21 = vshrl.u32 %v820_v54, 23  ;;  %v382_v22 = vsel %vm299_vm5, %v381_v5, %v380_v35 }
 0x113   :  { %vm3320_vm2 = vcmp.lt.s32.totalorder %v3319_v45, 0  ;;  %v698_v25 = vsel %vm4674_vm1, 0, %v696_v16  ;;  %v544_v26 = vsel %vm538_vm13, %v541_v59, %v543_v10  ;;  %v563_v1 = vadd.s32 1, %v4669_v13 }
 0x114   :  { %v680_v41 = vsel %vm3320_vm2, 0, %v3319_v45  ;;  %v3325_v63 = vadd.s32 4294967169, %v821_v21  ;;  %v824_v29 = vand.u32 8388607, %v817_v20  ;;  %v665_v32 = vadd.s32 %v4585_v11, %v4582_v12 }
 0x115   :  { %v681_v23 = vsub.s32 32, %v680_v41  ;;  %v685_v54 = vsub.s32 4294967266, %v680_v41  ;;  %v716_v3 = vand.u32 2139095040, %v4501_v49  ;;  %4068 = vcosq.f32 %v489_v52 }
 0x116   :  { %v560_v27 = vmul.u32 %v4621_v24, %v544_v26  ;;  %vm562_vm3 = vc.u32 %v4680_v61, %v4668_v40  ;;  %v827_v33 = vadd.s32 1, %v3325_v63  ;;  %v385_v34 = vsel %vm4591_vm7, %v4395_v18, %v382_v22 }
 0x117   :  { %v686_v35 = vadd.s32 127, %v685_v54  ;;  %v702_v37 = vadd.s32 3, %v698_v25  ;;  %v564_v44 = vsel %vm562_vm3, %v563_v1, %v4669_v13  ;;  %4070 = vsinq.f32 %v489_v52 }
 0x118   :  { %v565_v12 = vadd.s32 %v564_v44, %v560_v27  ;;  %v825_v11 = vor.u32 8388608, %v824_v29  ;;  %vm828_vm4 = vcmp.gt.s32.totalorder %v827_v33, 0  ;;  %v683_v47 = vshrl.u32 %v665_v32, %v681_v23 }
 0x119   :  { %v687_v56 = vshll.u32 %v686_v35, 23  ;;  %v829_v31 = vsel %vm828_vm4, %v827_v33, 0  ;;  %v717_v24 = vshrl.u32 %v716_v3, 23  ;;  %v4712_v60 = vand.u32 3, %v494_v6 }
 0x11a   :  { %4072 = vcosq.f32 %v385_v34  ;;  %v566_v16 = vadd.s32 536870912, %v565_v12  ;;  %v831_v48 = vand.u32 31, %v829_v31  ;;  %v4714_v0 = vand.u32 3, %v390_v42 }
 0x11b   :  { %4074 = vsinq.f32 %v385_v34  ;;  %v682_v30 = vshll.u32 %v4636_v28, %v680_v41  ;;  %v4717_v59 = vand.u32 3, %v702_v37  ;;  %v688_v51 = vor.u32 4788187, %v687_v56 }
 0x11c   :  { %v567_v58 = vshrl.u32 %v566_v16, 30  ;;  %v832_v36 = vsub.s32 32, %v831_v48  ;;  %v713_v5 = vand.u32 2147483647, %v4501_v49  ;;  %vm507_vm5 = vcmp.lt.s32.totalorder %v4412_v38, 0 }
 0x11d   :  { %v684_v9 = vor.u32 %v683_v47, %v682_v30  ;;  %v830_v55 = vshrl.u32 %v829_v31, 5  ;;  %v4721_v53 = vshll.u32 %v825_v11, 8  ;;  %v3321_v10 = vadd.s32 4294967169, %v717_v24 }
 0x11e   :  { %v568_v8 = vshll.u32 %v567_v58, 30  ;;  %v834_v13 = vshll.u32 %v4129_v57, %v831_v48  ;;  %v835_v45 = vshrl.u32 %v4130_v62, %v832_v36  ;;  %v837_v28 = vshll.u32 %v4130_v62, %v831_v48 }
 0x11f   :  { %v838_v46 = vshrl.u32 %v4131_v2, %v832_v36  ;;  %v840_v52 = vshll.u32 %v4131_v2, %v831_v48  ;;  %v841_v6 = vshrl.u32 %v4132_v4, %v832_v36  ;;  %v844_v42 = vshrl.u32 %v4133_v7, %v832_v36  ;;  %v4730_v21 = vpop.eup %4068 }
 0x120   :  { %v689_v22 = vand.u32 2147483647, %v688_v51  ;;  %v4732_v25 = vsub.s32 %v565_v12, %v568_v8  ;;  %v843_v26 = vshll.u32 %v4132_v4, %v831_v48  ;;  %v847_v41 = vshrl.u32 %v4134_v14, %v832_v36 }
 0x121   :  { %v836_v1 = vor.u32 %v835_v45, %v834_v13  ;;  %v839_v63 = vor.u32 %v838_v46, %v837_v28  ;;  %v842_v29 = vor.u32 %v841_v6, %v840_v52  ;;  %v846_v32 = vshll.u32 %v4133_v7, %v831_v48  ;;  %v4737_v23 = vpop.eup %4070 }
 0x122   :  { %v691_v54 = vcvt.s32.f32 %v684_v9  ;;  %v571_v3 = vsub.s32 0, %v4732_v25  ;;  %v591_v27 = vsub.s32 4, %v567_v58  ;;  %v845_v33 = vor.u32 %v844_v42, %v843_v26 }
 0x123   :  { %v833_v34 = vshrl.u32 %v4129_v57, %v832_v36  ;;  %v848_v35 = vor.u32 %v847_v41, %v846_v32  ;;  %v4743_v37 = vand.u32 8388607, %v713_v5  ;;  %v723_v44 = vadd.s32 1, %v3321_v10 }
 0x124   :  { %v4745_v12 = vpop.eup %4072  ;;  %v4747_v11 = vmul.f32 %v691_v54, %v689_v22  ;;  %vm4751_vm6 = vcmp.le.f32.partialorder %v505_v43, 0.7853982  ;;  %v3314_v56 = vmin.u32 %v571_v3, %v4732_v25  ;;  %vm849_vm7 = vcmp.lt.s32.totalorder %v830_v55, 1 }
 0x125   :  { %vm852_vm8 = vcmp.lt.s32.totalorder %v830_v55, 4  ;;  %v4756_v31 = vpop.eup %4074  ;;  %vm851_vm9 = vcmp.lt.s32.totalorder %v830_v55, 3  ;;  %v853_v24 = vsel %vm849_vm7, %v833_v34, %v836_v1  ;;  %v857_v48 = vsel %vm849_vm7, %v836_v1, %v839_v63 }
 0x126   :  { %v854_v16 = vsel %vm852_vm8, %v842_v29, 2102212464  ;;  %v573_v30 = vclz %v3314_v56  ;;  %v592_v51 = vsel %vm507_vm5, %v591_v27, %v567_v58  ;;  %v858_v9 = vsel %vm852_vm8, %v845_v33, 920167782 }
 0x127   :  { %v855_v36 = vsel %vm851_vm9, %v839_v63, %v854_v16  ;;  %vm850_vm10 = vcmp.lt.s32.totalorder %v830_v55, 2  ;;  %v859_v43 = vsel %vm851_vm9, %v842_v29, %v858_v9  ;;  %v861_v10 = vsel %vm849_vm7, %v839_v63, %v842_v29 }
 0x128   :  { %v862_v8 = vsel %vm852_vm8, %v848_v35, 1326507024  ;;  %v3315_v13 = vadd.s32 4294967294, %v573_v30  ;;  %v856_v45 = vsel %vm850_vm10, %v853_v24, %v855_v36  ;;  %v860_v28 = vsel %vm850_vm10, %v857_v48, %v859_v43 }
 0x129   :  { %v863_v46 = vsel %vm851_vm9, %v845_v33, %v862_v8  ;;  %v4761_v6 = vmul.u32.u64.low %v4721_v53, %v860_v28  ;;  %v4762_v42 = vmul.u32.u64.high %v4721_v53, %v860_v28, %v4761_v6  ;;  %vm724_vm12 = vcmp.gt.s32.totalorder %v723_v44, 0 }
 0x12a   :  { %v864_v52 = vsel %vm850_vm10, %v861_v10, %v863_v46  ;;  %vm3316_vm13 = vcmp.lt.s32.totalorder %v3315_v13, 0  ;;  %v725_v55 = vsel %vm724_vm12, %v723_v44, 0  ;;  %v561_v26 = vadd.s32 %v4668_v40, %v4680_v61 }
 0x12b   :  { %v4766_v58 = vmul.u32.u64.low %v4721_v53, %v864_v52  ;;  %v4767_v22 = vmul.u32.u64.high %v4721_v53, %v864_v52, %v4766_v58  ;;  %v576_v41 = vsel %vm3316_vm13, 0, %v3315_v13  ;;  %v727_v1 = vand.u32 31, %v725_v55 }
 0x12c   :  { %v921_v63 = vand.u32 2147483647, %v4504_v50  ;;  %v693_v29 = vxor.u32 2147483648, %v4747_v11  ;;  %v577_v32 = vsub.s32 32, %v576_v41  ;;  %v581_v54 = vsub.s32 4294967266, %v576_v41 }
 0x12d   :  { %v721_v3 = vor.u32 8388608, %v4743_v37  ;;  %v594_v27 = vsel %vm4751_vm6, 0, %v592_v51  ;;  %v872_v33 = vmul.u32 %v4721_v53, %v856_v45  ;;  %v875_v34 = vadd.s32 1, %v4762_v42 }
 0x12e   :  { %v728_v35 = vsub.s32 32, %v727_v1  ;;  %v578_v40 = vshll.u32 %v4732_v25, %v576_v41  ;;  %v579_v61 = vshrl.u32 %v561_v26, %v577_v32  ;;  %v582_v44 = vadd.s32 127, %v581_v54 }
 0x12f   :  { %vm874_vm14 = vc.u32 %v4767_v22, %v4761_v6  ;;  %v730_v24 = vshll.u32 %v4129_v57, %v727_v1  ;;  %v726_v51 = vshrl.u32 %v725_v55, 5  ;;  %v733_v25 = vshll.u32 %v4130_v62, %v727_v1 }
 0x130   :  { %v876_v56 = vsel %vm874_vm14, %v875_v34, %v4762_v42  ;;  %v731_v37 = vshrl.u32 %v4130_v62, %v728_v35  ;;  %v734_v16 = vshrl.u32 %v4131_v2, %v728_v35  ;;  %v580_v48 = vor.u32 %v579_v61, %v578_v40 }
 0x131   :  { %v583_v53 = vshll.u32 %v582_v44, 23  ;;  %v877_v30 = vadd.s32 %v876_v56, %v872_v33  ;;  %v736_v9 = vshll.u32 %v4131_v2, %v727_v1  ;;  %v737_v43 = vshrl.u32 %v4132_v4, %v728_v35 }
 0x132   :  { %v732_v36 = vor.u32 %v731_v37, %v730_v24  ;;  %vm819_vm15 = vcmp.lt.s32.totalorder %v4496_v39, 0  ;;  %v739_v13 = vshll.u32 %v4132_v4, %v727_v1  ;;  %v740_v45 = vshrl.u32 %v4133_v7, %v728_v35 }
 0x133   :  { %v584_v10 = vor.u32 4788187, %v583_v53  ;;  %v878_v8 = vadd.s32 536870912, %v877_v30  ;;  %v735_v28 = vor.u32 %v734_v16, %v733_v25  ;;  %v738_v46 = vor.u32 %v737_v43, %v736_v9 }
 0x134   :  { %v742_v52 = vshll.u32 %v4133_v7, %v727_v1  ;;  %v743_v42 = vshrl.u32 %v4134_v14, %v728_v35  ;;  %v587_v55 = vcvt.s32.f32 %v580_v48  ;;  %v741_v41 = vor.u32 %v740_v45, %v739_v13 }
 0x135   :  { %v585_v58 = vand.u32 2147483647, %v584_v10  ;;  %v879_v26 = vshrl.u32 %v878_v8, 30  ;;  %v694_v32 = vsel %vm611_vm11, %v693_v29, %v4747_v11  ;;  %v598_v54 = vadd.s32 3, %v594_v27 }
 0x136   :  { %vm4798_vm2 = vcmp.le.f32.partialorder %v817_v20, 0.7853982  ;;  %v744_v34 = vor.u32 %v743_v42, %v742_v52  ;;  %v761_v40 = vshll.u32 %v721_v3, 8  ;;  %vm745_vm3 = vcmp.lt.s32.totalorder %v726_v51, 1 }
 0x137   :  { %v588_v1 = vmul.f32 %v587_v55, %v585_v58  ;;  %v880_v61 = vshll.u32 %v879_v26, 30  ;;  %vm748_vm4 = vcmp.lt.s32.totalorder %v726_v51, 4  ;;  %v903_v44 = vsub.s32 4, %v879_v26 }
 0x138   :  { %v750_v56 = vsel %vm748_vm4, %v738_v46, 2102212464  ;;  %v753_v24 = vsel %vm745_vm3, %v732_v36, %v735_v28  ;;  %v754_v37 = vsel %vm748_vm4, %v741_v41, 920167782  ;;  %v729_v11 = vshrl.u32 %v4129_v57, %v728_v35 }
 0x139   :  { %v589_v16 = vxor.u32 2147483648, %v588_v1  ;;  %v4802_v48 = vsub.s32 %v877_v30, %v880_v61  ;;  %vm747_vm11 = vcmp.lt.s32.totalorder %v726_v51, 3  ;;  %vm746_vm7 = vcmp.lt.s32.totalorder %v726_v51, 2 }
 0x13a   :  { %v755_v20 = vsel %vm747_vm11, %v738_v46, %v754_v37  ;;  %v757_v29 = vsel %vm745_vm3, %v735_v28, %v738_v46  ;;  %v758_v27 = vsel %vm748_vm4, %v744_v34, 1326507024  ;;  %v749_v53 = vsel %vm745_vm3, %v729_v11, %v732_v36 }
 0x13b   :  { %v883_v3 = vsub.s32 0, %v4802_v48  ;;  %v751_v25 = vsel %vm747_vm11, %v735_v28, %v750_v56  ;;  %v756_v9 = vsel %vm746_vm7, %v753_v24, %v755_v20  ;;  %v904_v43 = vsel %vm819_vm15, %v903_v44, %v879_v26 }
 0x13c   :  { %v759_v10 = vsel %vm747_vm11, %v741_v41, %v758_v27  ;;  %v4808_v8 = vmul.u32.u64.low %v761_v40, %v756_v9  ;;  %v4809_v13 = vmul.u32.u64.high %v761_v40, %v756_v9, %v4808_v8  ;;  %v697_v35 = vsel %vm4674_vm1, %v4397_v19, %v694_v32 }
 0x13d   :  { %v590_v30 = vsel %vm507_vm5, %v589_v16, %v588_v1  ;;  %v3326_v51 = vmin.u32 %v883_v3, %v4802_v48  ;;  %v760_v45 = vsel %vm746_vm7, %v757_v29, %v759_v10  ;;  %v752_v36 = vsel %vm746_vm7, %v749_v53, %v751_v25 }
 0x13e   :  { %v4817_v28 = vmul.u32.u64.low %v761_v40, %v760_v45  ;;  %v4818_v46 = vmul.u32.u64.high %v761_v40, %v760_v45, %v4817_v28  ;;  %v924_v52 = vand.u32 2139095040, %v4504_v50  ;;  %v4821_v42 = vand.u32 3, %v598_v54 }
 0x13f   :  { %v885_v58 = vclz %v3326_v51  ;;  %v906_v55 = vsel %vm4798_vm2, 0, %v904_v43  ;;  %4076 = vcosq.f32 %v697_v35  ;;  %v593_v15 = vsel %vm4751_vm6, %v4412_v38, %v590_v30 }
 0x140   :  { %v771_v26 = vadd.s32 1, %v4809_v13  ;;  %v925_v41 = vshrl.u32 %v924_v52, 23  ;;  %v4135_v32 = vmov 0.0|0.0   ;;  %4078 = vsinq.f32 %v697_v35 }
 0x141   :  { %3805 = vmatprep.subr.bf16.mxu1 %v4135_v32  ;;  %3814 = vmatprep.subr.bf16.mxu0 %v4135_v32  ;;  %v873_v54 = vadd.s32 %v4761_v6, %v4767_v22  ;;  %v3327_v34 = vadd.s32 4294967294, %v885_v58  ;;  %v768_v1 = vmul.u32 %v761_v40, %v752_v36  ;;  %v4833_v61 = vadd.s32 3, %v906_v55 }
 0x142   :  { %vm770_vm1 = vc.u32 %v4818_v46, %v4808_v8  ;;  %v3329_v47 = vadd.s32 4294967169, %v925_v41  ;;  %v928_v44 = vand.u32 8388607, %v921_v63  ;;  %4080 = vcosq.f32 %v593_v15 }
 0x143   :  { %vm3328_vm5 = vcmp.lt.s32.totalorder %v3327_v34, 0  ;;  %v772_v56 = vsel %vm770_vm1, %v771_v26, %v4809_v13  ;;  %v394_v24 = vxor.u32 2147483648, %v4756_v31  ;;  %v397_v6 = vxor.u32 2147483648, %v4745_v12 }
 0x144   :  { %v888_v37 = vsel %vm3328_vm5, 0, %v3327_v34  ;;  %v773_v16 = vadd.s32 %v772_v56, %v768_v1  ;;  %v931_v11 = vadd.s32 1, %v3329_v47  ;;  %4082 = vsinq.f32 %v593_v15 }
 0x145   :  { %v889_v22 = vsub.s32 32, %v888_v37  ;;  %v893_v40 = vsub.s32 4294967266, %v888_v37  ;;  %vm393_vm6 = vcmp.eq.s32.totalorder %v4714_v0, 0  ;;  %v929_v29 = vor.u32 8388608, %v928_v44 }
 0x146   :  { %v774_v20 = vadd.s32 536870912, %v773_v16  ;;  %vm932_vm8 = vcmp.gt.s32.totalorder %v931_v11, 0  ;;  %vm396_vm9 = vcmp.eq.s32.totalorder %v4714_v0, 2  ;;  %v890_v27 = vshll.u32 %v4802_v48, %v888_v37 }
 0x147   :  { %v891_v3 = vshrl.u32 %v873_v54, %v889_v22  ;;  %v894_v53 = vadd.s32 127, %v893_v40  ;;  %v933_v25 = vsel %vm932_vm8, %v931_v11, 0  ;;  %vm715_vm10 = vcmp.lt.s32.totalorder %v4501_v49, 0 }
 0x148   :  { %v775_v9 = vshrl.u32 %v774_v20, 30  ;;  %v935_v43 = vand.u32 31, %v933_v25  ;;  %v395_v10 = vsel %vm393_vm6, %v4745_v12, %v394_v24  ;;  %v398_v13 = vsel %vm396_vm9, %v397_v6, %v4756_v31 }
 0x149   :  { %v892_v35 = vor.u32 %v891_v3, %v890_v27  ;;  %v895_v30 = vshll.u32 %v894_v53, 23  ;;  %vm389_vm12 = vweird.f32 %v4395_v18  ;;  %vm392_vm13 = vcmp.lt.s32.totalorder %v4714_v0, 2  ;;  %v4849_v51 = vpop.eup %4076 }
 0x14a   :  { %v4852_v48 = vadd.s32 %v4808_v8, %v4818_v46  ;;  %v776_v45 = vshll.u32 %v775_v9, 30  ;;  %v936_v36 = vsub.s32 32, %v935_v43  ;;  %v4854_v28 = vshll.u32 %v929_v29, 8  ;;  %v4856_v52 = vpop.eup %4078 }
 0x14b   :  { %v896_v12 = vor.u32 4788187, %v895_v30  ;;  %v799_v58 = vsub.s32 4, %v775_v9  ;;  %v938_v31 = vshll.u32 %v4129_v57, %v935_v43  ;;  %v399_v55 = vsel %vm392_vm13, %v395_v10, %v398_v13 }
 0x14c   :  { %v899_v15 = vcvt.s32.f32 %v892_v35  ;;  %v4859_v26 = vsub.s32 %v773_v16, %v776_v45  ;;  %v939_v0 = vshrl.u32 %v4130_v62, %v936_v36  ;;  %v941_v41 = vshll.u32 %v4130_v62, %v935_v43  ;;  %v4863_v8 = vpop.eup %4080 }
 0x14d   :  { %v897_v46 = vand.u32 2147483647, %v896_v12  ;;  %v942_v54 = vshrl.u32 %v4131_v2, %v936_v36  ;;  %v944_v34 = vshll.u32 %v4131_v2, %v935_v43  ;;  %v945_v1 = vshrl.u32 %v4132_v4, %v936_v36 }
 0x14e   :  { %v779_v47 = vsub.s32 0, %v4859_v26  ;;  %v934_v44 = vshrl.u32 %v933_v25, 5  ;;  %v940_v56 = vor.u32 %v939_v0, %v938_v31  ;;  %v947_v24 = vshll.u32 %v4132_v4, %v935_v43  ;;  %v4870_v37 = vpop.eup %4082 }
 0x14f   :  { %v900_v16 = vmul.f32 %v899_v15, %v897_v46  ;;  %v943_v11 = vor.u32 %v942_v54, %v941_v41  ;;  %v946_v6 = vor.u32 %v945_v1, %v944_v34  ;;  %v948_v22 = vshrl.u32 %v4133_v7, %v936_v36 }
 0x150   :  { %v3322_v40 = vmin.u32 %v779_v47, %v4859_v26  ;;  %v950_v20 = vshll.u32 %v4133_v7, %v935_v43  ;;  %v951_v29 = vshrl.u32 %v4134_v14, %v936_v36  ;;  %v4878_v27 = vsel %vm389_vm12, nan, %v399_v55 }
 0x151   :  { %v901_v3 = vxor.u32 2147483648, %v900_v16  ;;  %v4882_v53 = vsel %vm715_vm10, %v799_v58, %v775_v9  ;;  %v949_v25 = vor.u32 %v948_v22, %v947_v24  ;;  %vm497_vm14 = vcmp.eq.s32.totalorder %v4712_v60, 0 }
 0x152   :  { %v498_v10 = vxor.u32 2147483648, %v4737_v23  ;;  %vm4888_vm3 = vcmp.le.f32.partialorder %v713_v5, 0.7853982  ;;  %v781_v13 = vclz %v3322_v40  ;;  %v952_v18 = vor.u32 %v951_v29, %v950_v20 }
 0x153   :  { %vm953_vm4 = vcmp.lt.s32.totalorder %v934_v44, 1  ;;  %vm956_vm11 = vcmp.lt.s32.totalorder %v934_v44, 4  ;;  %v902_v35 = vsel %vm819_vm15, %v901_v3, %v900_v16  ;;  %v937_v9 = vshrl.u32 %v4129_v57, %v936_v36 }
 0x154   :  { %v958_v30 = vsel %vm956_vm11, %v946_v6, 2102212464  ;;  %v961_v45 = vsel %vm953_vm4, %v940_v56, %v943_v11  ;;  %vm500_vm7 = vcmp.eq.s32.totalorder %v4712_v60, 2  ;;  %v3323_v12 = vadd.s32 4294967294, %v781_v13 }
 0x155   :  { %vm954_vm1 = vcmp.lt.s32.totalorder %v934_v44, 2  ;;  %vm955_vm5 = vcmp.lt.s32.totalorder %v934_v44, 3  ;;  %v962_v5 = vsel %vm956_vm11, %v949_v25, 920167782  ;;  %vm496_vm6 = vcmp.lt.s32.totalorder %v4712_v60, 2 }
 0x156   :  { %v957_v58 = vsel %vm953_vm4, %v937_v9, %v940_v56  ;;  %v959_v31 = vsel %vm955_vm5, %v943_v11, %v958_v30  ;;  %v963_v55 = vsel %vm955_vm5, %v946_v6, %v962_v5  ;;  %v965_v15 = vsel %vm953_vm4, %v943_v11, %v946_v6 }
 0x157   :  { %vm493_vm15 = vweird.f32 %v4393_v17  ;;  %v905_v36 = vsel %vm4798_vm2, %v4496_v39, %v902_v35  ;;  %vm3324_vm8 = vcmp.lt.s32.totalorder %v3323_v12, 0  ;;  %v964_v0 = vsel %vm954_vm1, %v961_v45, %v963_v55 }
 0x158   :  { %v966_v41 = vsel %vm956_vm11, %v952_v18, 1326507024  ;;  %v784_v46 = vsel %vm3324_vm8, 0, %v3323_v12  ;;  %v4906_v34 = vmul.u32.u64.low %v4854_v28, %v964_v0  ;;  %v4907_v1 = vmul.u32.u64.high %v4854_v28, %v964_v0, %v4906_v34 }
 0x159   :  { %v967_v54 = vsel %vm955_vm5, %v949_v25, %v966_v41  ;;  %v785_v47 = vsub.s32 32, %v784_v46  ;;  %v789_v56 = vsub.s32 4294967266, %v784_v46  ;;  %v960_v24 = vsel %vm954_vm1, %v957_v58, %v959_v31 }
 0x15a   :  { %v968_v16 = vsel %vm954_vm1, %v965_v15, %v967_v54  ;;  %4084 = vcosq.f32 %v905_v36  ;;  %v786_v33 = vshll.u32 %v4859_v26, %v784_v46  ;;  %v499_v20 = vsel %vm497_vm14, %v4730_v21, %v498_v10 }
 0x15b   :  { %v4914_v11 = vmul.u32.u64.low %v4854_v28, %v968_v16  ;;  %v4915_v6 = vmul.u32.u64.high %v4854_v28, %v968_v16, %v4914_v11  ;;  %v787_v22 = vshrl.u32 %v4852_v48, %v785_v47  ;;  %v790_v40 = vadd.s32 127, %v789_v56 }
 0x15c   :  { %v501_v29 = vxor.u32 2147483648, %v4730_v21  ;;  %4086 = vsinq.f32 %v905_v36  ;;  %v802_v44 = vsel %vm4888_vm3, 0, %v4882_v53  ;;  %v976_v26 = vmul.u32 %v4854_v28, %v960_v24 }
 0x15d   :  { %v979_v3 = vadd.s32 1, %v4907_v1  ;;  %v788_v25 = vor.u32 %v787_v22, %v786_v33  ;;  %v791_v13 = vshll.u32 %v790_v40, 23  ;;  %v602_v18 = vxor.u32 2147483648, %v4870_v37 }
 0x15e   :  { %v502_v48 = vsel %vm500_vm7, %v501_v29, %v4737_v23  ;;  %vm978_vm2 = vc.u32 %v4915_v6, %v4906_v34  ;;  %v1100_v53 = vand.u32 4294901760, %v4878_v27  ;;  %vm597_vm9 = vweird.f32 %v4412_v38 }
 0x15f   :  { %v503_v21 = vsel %vm496_vm6, %v499_v20, %v502_v48  ;;  %v792_v28 = vor.u32 4788187, %v791_v13  ;;  %v980_v10 = vsel %vm978_vm2, %v979_v3, %v4907_v1  ;;  %vm601_vm12 = vcmp.eq.s32.totalorder %v4821_v42, 0 }
 0x160   :  { %v504_v35 = vsel %vm493_vm15, nan, %v503_v21  ;;  %v981_v23 = vadd.s32 %v980_v10, %v976_v26  ;;  %v603_v30 = vsel %vm601_vm12, %v4863_v8, %v602_v18  ;;  %v605_v45 = vxor.u32 2147483648, %v4863_v8 }
 0x161   :  { %v1103_v9 = vand.u32 4294901760, %v504_v35  ;;  %v793_v60 = vand.u32 2147483647, %v792_v28  ;;  %v795_v12 = vcvt.s32.f32 %v788_v25  ;;  %vm600_vm13 = vcmp.lt.s32.totalorder %v4821_v42, 2 }
 0x162   :  { %vm604_vm14 = vcmp.eq.s32.totalorder %v4821_v42, 2  ;;  %v982_v5 = vadd.s32 536870912, %v981_v23  ;;  %v706_v31 = vxor.u32 2147483648, %v4856_v52  ;;  %vm705_vm4 = vcmp.eq.s32.totalorder %v4717_v59, 0 }
 0x163   :  { %v4945_v58 = vpack.c.bf16 %v1103_v9, %v1100_v53  ;;  %v606_v17 = vsel %vm604_vm14, %v605_v45, %v4870_v37  ;;  %v796_v55 = vmul.f32 %v795_v12, %v793_v60  ;;  %v709_v36 = vxor.u32 2147483648, %v4849_v51 }
 0x164   :  { %v607_v15 = vsel %vm600_vm13, %v603_v30, %v606_v17  ;;  %v4085_v8 = vpop.eup %4084  ;;  %v4951_v0 = vshrl.u32 %v982_v5, 30  ;;  %v707_v41 = vsel %vm705_vm4, %v4849_v51, %v706_v31  ;;  %vm708_vm11 = vcmp.eq.s32.totalorder %v4717_v59, 2 }
 0x165   :  { %3807 = vmatpush3.bf16.msra.mxu1 %v4945_v58  ;;  %v608_v42 = vsel %vm597_vm9, nan, %v607_v15  ;;  %v797_v37 = vxor.u32 2147483648, %v796_v55  ;;  %v806_v46 = vadd.s32 3, %v802_v44  ;;  %vm704_vm7 = vcmp.lt.s32.totalorder %v4717_v59, 2 }
 0x166   :  { %3808 = vmatprep.subr.bf16.mxu1 %v4135_v32  ;;  %v710_v54 = vsel %vm708_vm11, %v709_v36, %v4856_v52  ;;  %v4087_v1 = vpop.eup %4086  ;;  %v984_v47 = vshll.u32 %v4951_v0, 30  ;;  %vm701_vm1 = vweird.f32 %v4397_v19  ;;  %v1106_v38 = vand.u32 4294901760, %v608_v42 }
 0x167   :  { %v711_v56 = vsel %vm704_vm7, %v707_v41, %v710_v54  ;;  %v798_v51 = vsel %vm715_vm10, %v797_v37, %v796_v55  ;;  %v911_v16 = vand.u32 3, %v4833_v61  ;;  %v4971_v11 = vand.u32 3, %v806_v46 }
 0x168   :  { %v712_v24 = vsel %vm701_vm1, nan, %v711_v56  ;;  %v801_v33 = vsel %vm4888_vm3, %v4501_v49, %v798_v51  ;;  %v4969_v59 = vsub.s32 %v981_v23, %v984_v47  ;;  %vm909_vm10 = vweird.f32 %v4496_v39 }
 0x169   :  { %v1109_v52 = vand.u32 4294901760, %v712_v24  ;;  %4088 = vcosq.f32 %v801_v33  ;;  %v914_v40 = vxor.u32 2147483648, %v4087_v1  ;;  %v917_v20 = vxor.u32 2147483648, %v4085_v8 }
 0x16a   :  { %4090 = vsinq.f32 %v801_v33  ;;  %v987_v19 = vsub.s32 0, %v4969_v59  ;;  %v4978_v61 = vsub.f32 %v4878_v27, %v1100_v53  ;;  %vm913_vm3 = vcmp.eq.s32.totalorder %v911_v16, 0 }
 0x16b   :  { %v4974_v22 = vpack.c.bf16 %v1109_v52, %v1106_v38  ;;  %vm916_vm5 = vcmp.eq.s32.totalorder %v911_v16, 2  ;;  %v4982_v29 = vsub.f32 %v504_v35, %v1103_v9  ;;  %vm912_vm6 = vcmp.lt.s32.totalorder %v911_v16, 2 }
 0x16c   :  { %v3330_v43 = vmin.u32 %v987_v19, %v4969_v59  ;;  %v915_v44 = vsel %vm913_vm3, %v4085_v8, %v914_v40  ;;  %v918_v26 = vsel %vm916_vm5, %v917_v20, %v4087_v1  ;;  %v1244_v3 = vand.u32 4294901760, %v4978_v61 }
 0x16d   :  { %3810 = vmatpush3.bf16.msra.mxu1 %v4974_v22  ;;  %v919_v13 = vsel %vm912_vm6, %v915_v44, %v918_v26  ;;  %v1251_v27 = vand.u32 4294901760, %v4982_v29  ;;  %v977_v10 = vadd.s32 %v4906_v34, %v4915_v6  ;;  %vm4136_vm15 = vmmov 0  }
 0x16e   :  { %3811 = vmatprep.subr.bf16.mxu1 %v4135_v32  ;;  %v989_v25 = vclz %v3330_v43  ;;  %v920_v48 = vsel %vm909_vm10, nan, %v919_v13  ;;  %v1245_v18 = vsub.f32 %v4978_v61, %v1244_v3  ;;  %v4137_v23 = vmov 0.0  }
 0x16f   :  { %v1115_v53 = vand.u32 4294901760, %v920_v48  ;;  %v1252_v28 = vsub.f32 %v4982_v29, %v1251_v27  ;;  %3507 = vmatprep.mubr.msk.f32.mxu1 %vm4136_vm15, %v4137_v23  ;;  %v4999_v39 = vsub.f32 %v608_v42, %v1106_v38  ;;  %v5001_v9 = vsub.f32 %v712_v24, %v1109_v52  ;;  %3542 = vmatprep.mubr.msk.f32.mxu0 %vm4136_vm15, %v4137_v23 }
 0x170   :  { %v3331_v21 = vadd.s32 4294967294, %v989_v25  ;;  %v1246_v35 = vand.u32 4294901760, %v1245_v18  ;;  %vm808_vm2 = vcmp.lt.s32.totalorder %v4971_v11, 2  ;;  %vm809_vm9 = vcmp.eq.s32.totalorder %v4971_v11, 0  ;;  %v1025_v25 = vld [vmem:[%s6074_s5] sm:$0xff] }
 0x171   :  { %v1253_v30 = vand.u32 4294901760, %v1252_v28  ;;  %v1258_v45 = vand.u32 4294901760, %v4999_v39  ;;  %v1265_v60 = vand.u32 4294901760, %v5001_v9  ;;  %v5009_v12 = vsub.f32 %v920_v48, %v1115_v53 }
 0x172   :  { %vm3332_vm8 = vcmp.lt.s32.totalorder %v3331_v21, 0  ;;  %vm812_vm12 = vcmp.eq.s32.totalorder %v4971_v11, 2  ;;  %vm805_vm13 = vweird.f32 %v4501_v49  ;;  %v1007_v49 = vsub.s32 4, %v4951_v0 }
 0x173   :  { %v4089_v34 = vpop.eup %4088  ;;  %v992_v6 = vsel %vm3332_vm8, 0, %v3331_v21  ;;  %v3815_v36 = vpack.c.bf16 %v1253_v30, %v1246_v35  ;;  %v1259_v8 = vsub.f32 %v4999_v39, %v1258_v45  ;;  %v1266_v42 = vsub.f32 %v5001_v9, %v1265_v60 }
 0x174   :  { %v4091_v5 = vpop.eup %4090  ;;  %v993_v17 = vsub.s32 32, %v992_v6  ;;  %v997_v31 = vsub.s32 4294967266, %v992_v6  ;;  %v813_v55 = vxor.u32 2147483648, %v4089_v34  ;;  %v994_v41 = vshll.u32 %v4969_v59, %v992_v6 }
 0x175   :  { %v810_v15 = vxor.u32 2147483648, %v4091_v5  ;;  %3816 = vmatpush3.bf16.msra.mxu0 %v3815_v36  ;;  %v1260_v47 = vand.u32 4294901760, %v1259_v8  ;;  %v1267_v56 = vand.u32 4294901760, %v1266_v42  ;;  %v1279_v38 = vand.u32 4294901760, %v5009_v12 }
 0x176   :  { %v995_v37 = vshrl.u32 %v977_v10, %v993_v17  ;;  %v998_v46 = vadd.s32 127, %v997_v31  ;;  %v814_v54 = vsel %vm812_vm12, %v813_v55, %v4091_v5  ;;  %3817 = vmatprep.subr.bf16.mxu0 %v4135_v32  ;;  %vm1074_vm14 = vcmask 408576  }
 0x177   :  { %v811_v1 = vsel %vm809_vm9, %v4089_v34, %v810_v15  ;;  %v3818_v59 = vpack.c.bf16 %v1267_v56, %v1260_v47  ;;  %v1280_v40 = vsub.f32 %v5009_v12, %v1279_v38  ;;  %vm923_vm4 = vcmp.lt.s32.totalorder %v4504_v50, 0  ;;  %v1026_v34 = vld [vmem:[%s6074_s5 + $0x8] sm:$0xff]  ;;  %v1027_v15 = vld [vmem:[%s6074_s5 + $0x10] sm:$0xff] }
 0x178   :  { %v996_v51 = vor.u32 %v995_v37, %v994_v41  ;;  %v999_v24 = vshll.u32 %v998_v46, 23  ;;  %v815_v16 = vsel %vm808_vm2, %v811_v1, %v814_v54  ;;  %v1076_v28 = vsel %vm1074_vm14, %v1025_v25, 0  ;;  %v1029_v1 = vld [vmem:[%s6074_s5 + $0x20] sm:$0xff] }
 0x179   :  { %v816_v33 = vsel %vm805_vm13, nan, %v815_v16  ;;  %3819 = vmatpush3.bf16.msra.mxu0 %v3818_v59  ;;  %v1281_v21 = vand.u32 4294901760, %v1280_v40  ;;  %vm922_vm11 = vcmp.le.f32.partialorder %v921_v63, 0.7853982  ;;  %v5049_v5 = vand.u32 4294901760, %v1076_v28 }
 0x17a   :  { %v1000_v52 = vor.u32 4788187, %v999_v24  ;;  %v1112_v19 = vand.u32 4294901760, %v816_v33  ;;  %v1003_v43 = vcvt.s32.f32 %v996_v51  ;;  %3820 = vmatprep.subr.bf16.mxu0 %v4135_v32  ;;  %v5056_v63 = vpack.c.bf16 %v1251_v27, %v1244_v3 }
 0x17b   :  { %v5062_v31 = vpack.c.bf16 %v1265_v60, %v1258_v45  ;;  %v5071_v8 = vsub.f32 %v1076_v28, %v5049_v5  ;;  %v1082_v27 = vsel %vm1074_vm14, %v1027_v15, 0  ;;  %v1028_v45 = vld [vmem:[%s6074_s5 + $0x18] sm:$0xff]  ;;  %vm1013_vm3 = vweird.f32 %v4504_v50 }
 0x17c   :  { %v1001_v20 = vand.u32 2147483647, %v1000_v52  ;;  %v5027_v44 = vpack.c.bf16 %v1115_v53, %v1112_v19  ;;  %v5030_v26 = vsub.f32 %v816_v33, %v1112_v19  ;;  %v1008_v53 = vsel %vm923_vm4, %v1007_v49, %v4951_v0 }
 0x17d   :  { %v1010_v6 = vsel %vm922_vm11, 0, %v1008_v53  ;;  %v1079_v0 = vsel %vm1074_vm14, %v1026_v34, 0  ;;  %v1173_v42 = vand.u32 4294901760, %v5071_v8  ;;  %v5083_v37 = vand.u32 4294901760, %v1082_v27  ;;  %v1031_v53 = vld [vmem:[%s6074_s5 + $0x30] sm:$0x3] }
 0x17e   :  { %v1004_v11 = vmul.f32 %v1003_v43, %v1001_v20  ;;  %3813 = vmatpush3.bf16.msra.mxu1 %v5027_v44  ;;  %v1272_v13 = vand.u32 4294901760, %v5030_v26  ;;  %v1014_v55 = vadd.s32 3, %v1010_v6  ;;  %v5073_v3 = vand.u32 4294901760, %v1079_v0  ;;  %v1030_v20 = vld [vmem:[%s6074_s5 + $0x28] sm:$0xff] }
 0x17f   :  { %3505 = vmatprep.subr.mxu1 %v4137_v23  ;;  %v1085_v46 = vsel %vm1074_vm14, %v1028_v45, 0  ;;  %v1174_v51 = vsub.f32 %v5071_v8, %v1173_v42  ;;  %v5096_v59 = vsub.f32 %v1082_v27, %v5083_v37  ;;  %v1088_v52 = vsel %vm1074_vm14, %v1029_v1, 0 }
 0x180   :  { %v1005_v48 = vxor.u32 2147483648, %v1004_v11  ;;  %v1273_v18 = vsub.f32 %v5030_v26, %v1272_v13  ;;  %v5068_v36 = vpack.c.bf16 %v1279_v38, %v1272_v13  ;;  %v1015_v60 = vand.u32 3, %v1014_v55 }
 0x181   :  { %v5081_v41 = vsub.f32 %v1079_v0, %v5073_v3  ;;  %v5092_v24 = vand.u32 4294901760, %v1085_v46  ;;  %v1175_v49 = vand.u32 4294901760, %v1174_v51  ;;  %v1094_v0 = vsel %vm1074_vm14, %v1031_v53, 0 }
 0x182   :  { %v1006_v10 = vsel %vm923_vm4, %v1005_v48, %v1004_v11  ;;  %v1274_v35 = vand.u32 4294901760, %v1273_v18  ;;  %vm1017_vm7 = vcmp.eq.s32.totalorder %v1015_v60, 0  ;;  %vm1020_vm1 = vcmp.eq.s32.totalorder %v1015_v60, 2 }
 0x183   :  { %v1009_v30 = vsel %vm922_vm11, %v4504_v50, %v1006_v10  ;;  %v1183_v33 = vand.u32 4294901760, %v5081_v41  ;;  %vm1016_vm10 = vcmp.lt.s32.totalorder %v1015_v60, 2  ;;  %v5103_v11 = vand.u32 4294901760, %v1088_v52 }
 0x184   :  { %4092 = vcosq.f32 %v1009_v30  ;;  %v3821_v17 = vpack.c.bf16 %v1281_v21, %v1274_v35  ;;  %v1193_v48 = vand.u32 4294901760, %v5096_v59  ;;  %v5111_v18 = vsub.f32 %v1085_v46, %v5092_v24 }
 0x185   :  { %4094 = vsinq.f32 %v1009_v30  ;;  %v1184_v13 = vsub.f32 %v5081_v41, %v1183_v33  ;;  %v1091_v21 = vsel %vm1074_vm14, %v1030_v20, 0  ;;  %v5124_v10 = vsub.f32 %v1088_v52, %v5103_v11 }
 0x186   :  { %3822 = vmatpush3.bf16.msra.mxu0 %v3821_v17  ;;  %v1194_v30 = vsub.f32 %v5096_v59, %v1193_v48  ;;  %v1203_v34 = vand.u32 4294901760, %v5111_v18  ;;  %v5131_v6 = vand.u32 4294901760, %v1091_v21  ;;  %v5149_v46 = vand.u32 4294901760, %v1094_v0 }
 0x187   :  { %3540 = vmatprep.subr.mxu0 %v4137_v23  ;;  %v1185_v35 = vand.u32 4294901760, %v1184_v13  ;;  %v1213_v15 = vand.u32 4294901760, %v5124_v10  ;;  %v3824_v1 = vpack.c.bf16 %v4982_v29, %v4978_v61  ;;  %v3827_v61 = vpack.c.bf16 %v5001_v9, %v4999_v39  ;;  %v1042_v13 = vpop.permute.xlu0 %1041 }
 0x188   :  { %v1195_v27 = vand.u32 4294901760, %v1194_v30  ;;  %v1204_v45 = vsub.f32 %v5111_v18, %v1203_v34  ;;  %v5147_v60 = vsub.f32 %v1091_v21, %v5131_v6  ;;  %v5163_v51 = vsub.f32 %v1094_v0, %v5149_v46 }
 0x189   :  { %v3830_v39 = vpack.c.bf16 %v5009_v12, %v5030_v26 }
 0x18a   :  { %v1233_v52 = vand.u32 4294901760, %v5163_v51 }
 0x18e   :  { %v4093_v54 = vpop.eup %4092 }
 0x18f   :  { %v4095_v47 = vpop.eup %4094  ;;  %v1021_v56 = vxor.u32 2147483648, %v4093_v54 }
 0x190   :  { %v1018_v38 = vxor.u32 2147483648, %v4095_v47 }
 0x191   :  { %v1022_v16 = vsel %vm1020_vm1, %v1021_v56, %v4095_v47  ;;  %v1205_v47 = vand.u32 4294901760, %v1204_v45  ;;  %v1214_v56 = vsub.f32 %v5124_v10, %v1213_v15 }
 0x192   :  { %v1019_v19 = vsel %vm1017_vm7, %v4093_v54, %v1018_v38  ;;  %v1223_v38 = vand.u32 4294901760, %v5147_v60 }
 0x193   :  { %v1023_v40 = vsel %vm1016_vm10, %v1019_v19, %v1022_v16  ;;  %v1215_v29 = vand.u32 4294901760, %v1214_v56  ;;  %v1234_v19 = vsub.f32 %v5163_v51, %v1233_v52 }
 0x194   :  { %v1024_v43 = vsel %vm1013_vm3, nan, %v1023_v40  ;;  %v1224_v16 = vsub.f32 %v5147_v60, %v1223_v38 }
 0x195   :  { %v1097_v25 = vsel %vm162_vm0, %v1024_v43, 0  ;;  %v1235_v12 = vand.u32 4294901760, %v1234_v19 }
 0x196   :  { %v5113_v50 = vand.u32 4294901760, %v1097_v25  ;;  %v1225_v9 = vand.u32 4294901760, %v1224_v16 }
 0x198   :  { %3506 = vmatpush3.msra.mxu1 %v5113_v50  ;;  %v5121_v28 = vsub.f32 %v1097_v25, %v5113_v50 }
 0x199   :  { %3508 = vmatmul.mubr.f32.vlgmr.msra.gmra.mrb[0].mxu1 %v1175_v49  ;;  %3913 = vmatprep.subr.bf16.mxu1 %v4135_v32 }
 0x19a   :  { %3917 = vmatpush3.bf16.msra.mxu1 %v4945_v58  ;;  %3510 = vmatprep.mubr.msk.f32.mxu1 %vm4136_vm15, %v4137_v23  ;;  %v1286_v17 = vand.u32 4294901760, %v5121_v28 }
 0x19b   :  { %3914 = vmatprep.subr.bf16.mxu1 %v4135_v32 }
 0x19c   :  { %v1287_v55 = vsub.f32 %v5121_v28, %v1286_v17 }
 0x19d   :  { %3511 = vmatmul.mubr.f32.gmra.mrb[2].mxu1 %v1185_v35 }
 0x19e   :  { %3918 = vmatpush3.bf16.msra.mxu1 %v4974_v22  ;;  %3513 = vmatprep.mubr.msk.f32.mxu1 %vm4136_vm15, %v4137_v23  ;;  %v1288_v54 = vand.u32 4294901760, %v1287_v55 }
 0x19f   :  { %3915 = vmatprep.subr.bf16.mxu1 %v4135_v32 }
 0x1a0   :  { %3541 = vmatpush3.msra.mxu0 %v1288_v54 }
 0x1a1   :  { %3514 = vmatmul.mubr.f32.gmra.mrb[4].mxu1 %v1195_v27  ;;  %3543 = vmatmul.mubr.f32.vlgmr.msra.gmra.mrb[0].mxu0 %v5049_v5 }
 0x1a2   :  { %3823 = vmatprep.subr.bf16.mxu0 %v4135_v32  ;;  %3919 = vmatpush3.bf16.msra.mxu1 %v5027_v44 }
 0x1a3   :  { %3825 = vmatpush3.bf16.msra.mxu0 %v3824_v1  ;;  %3516 = vmatprep.mubr.msk.f32.mxu1 %vm4136_vm15, %v4137_v23 }
 0x1a4   :  { %3545 = vmatprep.mubr.msk.f32.mxu0 %vm4136_vm15, %v4137_v23  ;;  %3826 = vmatprep.subr.bf16.mxu0 %v4135_v32 }
 0x1a5   :  { %3517 = vmatmul.mubr.f32.gmra.mrb[6].mxu1 %v1205_v47  ;;  %3546 = vmatmul.mubr.f32.gmra.mrb[2].mxu0 %v5073_v3 }
 0x1a6   :  { %3916 = vmatprep.subr.mxu1 %v4137_v23  ;;  %3519 = vmatprep.mubr.msk.f32.mxu1 %vm4136_vm15, %v4137_v23 }
 0x1a7   :  { %3828 = vmatpush3.bf16.msra.mxu0 %v3827_v61  ;;  %3920 = vmatpush3.msra.mxu1 %v5113_v50 }
 0x1a8   :  { %3548 = vmatprep.mubr.msk.f32.mxu0 %vm4136_vm15, %v4137_v23  ;;  %3829 = vmatprep.subr.bf16.mxu0 %v4135_v32 }
 0x1a9   :  { %3520 = vmatmul.mubr.f32.gmra.mrb[8].mxu1 %v1215_v29  ;;  %3549 = vmatmul.mubr.f32.gmra.mrb[4].mxu0 %v5083_v37 }
 0x1aa   :  { %3522 = vmatprep.mubr.msk.f32.mxu1 %vm4136_vm15, %v4137_v23  ;;  %3551 = vmatprep.mubr.msk.f32.mxu0 %vm4136_vm15, %v4137_v23 }
 0x1ab   :  { %3831 = vmatpush3.bf16.msra.mxu0 %v3830_v39  ;;  %3859 = vmatprep.subr.bf16.mxu1 %v4135_v32 }
 0x1ac   :  { %3575 = vmatprep.subr.mxu0 %v4137_v23 }
 0x1ad   :  { %3523 = vmatmul.mubr.f32.gmra.mrb[10].mxu1 %v1225_v9  ;;  %3552 = vmatmul.mubr.f32.gmra.mrb[6].mxu0 %v5092_v24 }
 0x1ae   :  { %3525 = vmatprep.mubr.msk.f32.mxu1 %vm4136_vm15, %v4137_v23  ;;  %3554 = vmatprep.mubr.msk.f32.mxu0 %vm4136_vm15, %v4137_v23 }
 0x1af   :  { %3576 = vmatpush3.msra.mxu0 %v5121_v28 }
 0x1b0   :  { %3832 = vmatprep.subr.bf16.mxu0 %v4135_v32 }
 0x1b1   :  { %3526 = vmatmul.mubr.f32.gmra.mrb[12].mxu1 %v1235_v12  ;;  %3555 = vmatmul.mubr.f32.gmra.mrb[8].mxu0 %v5103_v11 }
 0x1b2   :  { %3557 = vmatprep.mubr.msk.f32.mxu0 %vm4136_vm15, %v4137_v23  ;;  %3691 = vmatprep.mubr.msk.f32.mxu1 %vm4136_vm15, %v4137_v23 }
 0x1b5   :  { %3558 = vmatmul.mubr.f32.gmra.mrb[10].mxu0 %v5131_v6  ;;  %3692 = vmatmul.mubr.f32.vlgmr.msra.gmra.mrb[14].mxu1 %v5092_v24 }
 0x1b6   :  { %3560 = vmatprep.mubr.msk.f32.mxu0 %vm4136_vm15, %v4137_v23  ;;  %3694 = vmatprep.mubr.msk.f32.mxu1 %vm4136_vm15, %v4137_v23 }
 0x1b9   :  { %3561 = vmatmul.mubr.f32.gmra.mrb[12].mxu0 %v5149_v46  ;;  %3695 = vmatmul.mubr.f32.gmra.mrb[16].mxu1 %v5103_v11 }
 0x1ba   :  { %3577 = vmatprep.mubr.msk.f32.mxu0 %vm4136_vm15, %v4137_v23  ;;  %3697 = vmatprep.mubr.msk.f32.mxu1 %vm4136_vm15, %v4137_v23 }
 0x1bd   :  { %3578 = vmatmul.mubr.f32.vlgmr.msra.gmra.mrb[0].mxu0 %v5071_v8  ;;  %3698 = vmatmul.mubr.f32.gmra.mrb[18].mxu1 %v5131_v6 }
 0x1be   :  { %3834 = vmatpush3.bf16.msra.mxu0 %v4945_v58  ;;  %3580 = vmatprep.mubr.msk.f32.mxu0 %vm4136_vm15, %v4137_v23 }
 0x1bf   :  { %3835 = vmatprep.subr.bf16.mxu0 %v4135_v32  ;;  %3700 = vmatprep.mubr.msk.f32.mxu1 %vm4136_vm15, %v4137_v23 }
 0x1c1   :  { %3581 = vmatmul.mubr.f32.gmra.mrb[2].mxu0 %v5081_v41  ;;  %3701 = vmatmul.mubr.f32.gmra.mrb[20].mxu1 %v5149_v46 }
 0x1c2   :  { %3837 = vmatpush3.bf16.msra.mxu0 %v4974_v22  ;;  %3583 = vmatprep.mubr.msk.f32.mxu0 %vm4136_vm15, %v4137_v23 }
 0x1c3   :  { %3838 = vmatprep.subr.bf16.mxu0 %v4135_v32  ;;  %3717 = vmatprep.mubr.msk.f32.mxu1 %vm4136_vm15, %v4137_v23 }
 0x1c5   :  { %3584 = vmatmul.mubr.f32.gmra.mrb[4].mxu0 %v5096_v59 }
 0x1c6   :  { %3840 = vmatpush3.bf16.msra.mxu0 %v5027_v44  ;;  %3586 = vmatprep.mubr.msk.f32.mxu0 %vm4136_vm15, %v4137_v23 }
 0x1c7   :  { %3610 = vmatprep.subr.mxu0 %v4137_v23 }
 0x1c9   :  { %3587 = vmatmul.mubr.f32.gmra.mrb[6].mxu0 %v5111_v18  ;;  %v1052_v18 = vpop.permute.xlu0 %1051 }
 0x1ca   :  { %3611 = vmatpush3.msra.mxu0 %v5113_v50  ;;  %3589 = vmatprep.mubr.msk.f32.mxu0 %vm4136_vm15, %v4137_v23 }
 0x1cb   :  { %3841 = vmatprep.subr.bf16.mxu0 %v4135_v32 }
 0x1cd   :  { %3590 = vmatmul.mubr.f32.gmra.mrb[8].mxu0 %v5124_v10  ;;  %v1062_v35 = vpop.permute.xlu0 %1061 }
 0x1ce   :  { %3592 = vmatprep.mubr.msk.f32.mxu0 %vm4136_vm15, %v4137_v23 }
 0x1d1   :  { %3593 = vmatmul.mubr.f32.gmra.mrb[10].mxu0 %v5147_v60  ;;  %v1072_v54 = vpop.permute.xlu0 %1071 }
 0x1d2   :  { %3595 = vmatprep.mubr.msk.f32.mxu0 %vm4136_vm15, %v4137_v23 }
 0x1d5   :  { %3596 = vmatmul.mubr.f32.gmra.mrb[12].mxu0 %v5163_v51 }
 0x1d6   :  { %3612 = vmatprep.mubr.msk.f32.mxu0 %vm4136_vm15, %v4137_v23 }
 0x1d9   :  { %3613 = vmatmul.mubr.f32.vlgmr.msra.gmra.mrb[0].mxu0 %v1173_v42 }
 0x1da   :  { %3843 = vmatpush3.bf16.msra.mxu0 %v5056_v63  ;;  %3615 = vmatprep.mubr.msk.f32.mxu0 %vm4136_vm15, %v4137_v23 }
 0x1db   :  { %3844 = vmatprep.subr.bf16.mxu0 %v4135_v32 }
 0x1dd   :  { %3616 = vmatmul.mubr.f32.gmra.mrb[2].mxu0 %v1183_v33 }
 0x1de   :  { %3846 = vmatpush3.bf16.msra.mxu0 %v5062_v31  ;;  %3618 = vmatprep.mubr.msk.f32.mxu0 %vm4136_vm15, %v4137_v23 }
 0x1df   :  { %3847 = vmatprep.subr.bf16.mxu0 %v4135_v32 }
 0x1e1   :  { %3619 = vmatmul.mubr.f32.gmra.mrb[4].mxu0 %v1193_v48  ;;  %v1047_v48 = vpop.permute.xlu1 %1046 }
 0x1e2   :  { %3849 = vmatpush3.bf16.msra.mxu0 %v5068_v36  ;;  %3621 = vmatprep.mubr.msk.f32.mxu0 %vm4136_vm15, %v4137_v23 }
 0x1e3   :  { %3645 = vmatprep.subr.mxu0 %v4137_v23 }
 0x1e5   :  { %3622 = vmatmul.mubr.f32.gmra.mrb[6].mxu0 %v1203_v34 }
 0x1e6   :  { %3646 = vmatpush3.msra.mxu0 %v1286_v17  ;;  %3624 = vmatprep.mubr.msk.f32.mxu0 %vm4136_vm15, %v4137_v23 }
 0x1e7   :  { %3850 = vmatprep.subr.bf16.mxu0 %v4135_v32 }
 0x1e9   :  { %3625 = vmatmul.mubr.f32.gmra.mrb[8].mxu0 %v1213_v15 }
 0x1ea   :  { %3627 = vmatprep.mubr.msk.f32.mxu0 %vm4136_vm15, %v4137_v23 }
 0x1ed   :  { %3628 = vmatmul.mubr.f32.gmra.mrb[10].mxu0 %v1223_v38 }
 0x1ee   :  { %3630 = vmatprep.mubr.msk.f32.mxu0 %vm4136_vm15, %v4137_v23 }
 0x1f1   :  { %3631 = vmatmul.mubr.f32.gmra.mrb[12].mxu0 %v1233_v52 }
 0x1f2   :  { %3647 = vmatprep.mubr.msk.f32.mxu0 %vm4136_vm15, %v4137_v23 }
 0x1f5   :  { %3648 = vmatmul.mubr.f32.vlgmr.msra.gmra.mrb[0].mxu0 %v5049_v5 }
 0x1f6   :  { %3852 = vmatpush3.bf16.msra.mxu0 %v4945_v58  ;;  %3650 = vmatprep.mubr.msk.f32.mxu0 %vm4136_vm15, %v4137_v23 }
 0x1f7   :  { %3853 = vmatprep.subr.bf16.mxu0 %v4135_v32 }
 0x1f9   :  { %3651 = vmatmul.mubr.f32.gmra.mrb[2].mxu0 %v5073_v3 }
 0x1fa   :  { %3855 = vmatpush3.bf16.msra.mxu0 %v4974_v22  ;;  %3653 = vmatprep.mubr.msk.f32.mxu0 %vm4136_vm15, %v4137_v23 }
 0x1fb   :  { %3856 = vmatprep.subr.bf16.mxu0 %v4135_v32 }
 0x1fd   :  { %3654 = vmatmul.mubr.f32.gmra.mrb[4].mxu0 %v5083_v37 }
 0x1fe   :  { %3858 = vmatpush3.bf16.msra.mxu0 %v5027_v44  ;;  %3656 = vmatprep.mubr.msk.f32.mxu0 %vm4136_vm15, %v4137_v23 }
 0x1ff   :  { %3680 = vmatprep.subr.mxu0 %v4137_v23 }
 0x201   :  { %3657 = vmatmul.mubr.f32.gmra.mrb[6].mxu0 %v5092_v24 }
 0x202   :  { %3681 = vmatpush3.msra.mxu0 %v5113_v50  ;;  %3659 = vmatprep.mubr.msk.f32.mxu0 %vm4136_vm15, %v4137_v23  ;;  %v1057_v50 = vpop.permute.xlu1 %1056 }
 0x205   :  { %3660 = vmatmul.mubr.f32.gmra.mrb[8].mxu0 %v5103_v11 }
 0x206   :  { %3662 = vmatprep.mubr.msk.f32.mxu0 %vm4136_vm15, %v4137_v23  ;;  %v1067_v55 = vpop.permute.xlu1 %1066 }
 0x209   :  { %3663 = vmatmul.mubr.f32.gmra.mrb[10].mxu0 %v5131_v6 }
 0x20a   :  { %3665 = vmatprep.mubr.msk.f32.mxu0 %vm4136_vm15, %v4137_v23 }
 0x20d   :  { %3666 = vmatmul.mubr.f32.gmra.mrb[12].mxu0 %v5149_v46 }
 0x20e   :  { %3682 = vmatprep.mubr.msk.f32.mxu0 %vm4136_vm15, %v4137_v23 }
 0x211   :  { %3683 = vmatmul.mubr.f32.vlgmr.msra.gmra.mrb[0].mxu0 %v5049_v5 }
 0x212   :  { %3685 = vmatprep.mubr.msk.f32.mxu0 %vm4136_vm15, %v4137_v23 }
 0x215   :  { %3686 = vmatmul.mubr.f32.gmra.mrb[2].mxu0 %v5073_v3 }
 0x216   :  { %3688 = vmatprep.mubr.msk.f32.mxu0 %vm4136_vm15, %v4137_v23 }
 0x219   :  { %3689 = vmatmul.mubr.f32.gmra.mrb[4].mxu0 %v5083_v37 }
 0x26c   :  { %v1177_v58 = vpop.f32.mrb[0].mxu1 }
 0x26d   :  { %v3509_v22 = vpop.f32.mrb[1].mxu1  ;;  %v1178_v61 = vadd.f32 %v1177_v58, %v1042_v13 }
 0x270   :  { %v1187_v44 = vpop.f32.mrb[2].mxu1 }
 0x271   :  { %v3512_v26 = vpop.f32.mrb[3].mxu1  ;;  %v1188_v9 = vadd.f32 %v1187_v44, %v1047_v48 }
 0x274   :  { %v1197_v63 = vpop.f32.mrb[4].mxu1 }
 0x275   :  { %v3515_v31 = vpop.f32.mrb[5].mxu1  ;;  %v1198_v26 = vadd.f32 %v1197_v63, %v1052_v18 }
 0x278   :  { %v1207_v36 = vpop.f32.mrb[6].mxu1 }
 0x279   :  { %v3518_v8 = vpop.f32.mrb[7].mxu1  ;;  %v1208_v21 = vadd.f32 %v1207_v36, %v1057_v50 }
 0x27c   :  { %v1217_v42 = vpop.f32.mrb[8].mxu1 }
 0x27d   :  { %v3521_v5 = vpop.f32.mrb[9].mxu1  ;;  %v1218_v30 = vadd.f32 %v1217_v42, %v1062_v35 }
 0x280   :  { %v1227_v41 = vpop.f32.mrb[10].mxu1 }
 0x281   :  { %v3524_v24 = vpop.f32.mrb[11].mxu1  ;;  %v1228_v15 = vadd.f32 %v1227_v41, %v1067_v55 }
 0x284   :  { %v1237_v33 = vpop.f32.mrb[12].mxu1 }
 0x285   :  { %v3527_v59 = vpop.f32.mrb[13].mxu1  ;;  %v1238_v1 = vadd.f32 %v1237_v33, %v1072_v54 }
 0x288   :  { %v1859_v3 = vpop.f32.mrb[14].mxu1 }
 0x289   :  { %v3693_v40 = vpop.f32.mrb[15].mxu1 }
 0x28c   :  { %v1865_v20 = vpop.f32.mrb[16].mxu1 }
 0x28d   :  { %v3696_v43 = vpop.f32.mrb[17].mxu1 }
 0x290   :  { %v1871_v49 = vpop.f32.mrb[18].mxu1 }
 0x291   :  { %v3699_v37 = vpop.f32.mrb[19].mxu1 }
 0x294   :  { %v1877_v11 = vpop.f32.mrb[20].mxu1 }
 0x295   :  { %v3702_v25 = vpop.f32.mrb[21].mxu1 }
 0x2d4   :  { %v1745_v53 = vpop.f32.mrb[6].mxu0 }
 0x2d5   :  { %v3928_v28 = vadd.f32 %v1745_v53, %v1208_v21  ;;  %v3658_v10 = vpop.f32.mrb[7].mxu0 }
 0x2d7   :  { %v5329_v34 = vadd.f32 %v3928_v28, %v1859_v3 }
 0x2d8   :  { %v1751_v6 = vpop.f32.mrb[8].mxu0 }
 0x2d9   :  { %v3931_v17 = vadd.f32 %v1751_v6, %v1218_v30  ;;  %v3661_v0 = vpop.f32.mrb[9].mxu0  ;;  %v1912_v59 = vmul.f32 %v5329_v34, %v5329_v34 }
 0x2db   :  { %v5331_v27 = vadd.f32 %v3931_v17, %v1865_v20 }
 0x2dc   :  { %v1757_v45 = vpop.f32.mrb[10].mxu0 }
 0x2dd   :  { %v3934_v60 = vadd.f32 %v1757_v45, %v1228_v15  ;;  %v3664_v46 = vpop.f32.mrb[11].mxu0  ;;  %v1913_v63 = vmul.f32 %v5331_v27, %v5331_v27 }
 0x2df   :  { %v5333_v47 = vadd.f32 %v3934_v60, %v1871_v49 }
 0x2e0   :  { %v1763_v56 = vpop.f32.mrb[12].mxu0 }
 0x2e1   :  { %v3937_v38 = vadd.f32 %v1763_v56, %v1238_v1  ;;  %v3667_v51 = vpop.f32.mrb[13].mxu0  ;;  %v1914_v49 = vmul.f32 %v5333_v47, %v5333_v47 }
 0x2e3   :  { %v5335_v29 = vadd.f32 %v3937_v38, %v1877_v11 }
 0x2e4   :  { %v1841_v16 = vpop.f32.mrb[0].mxu0 }
 0x2e5   :  { %v5337_v52 = vadd.f32 %v1841_v16, %v1178_v61  ;;  %v3684_v39 = vpop.f32.mrb[1].mxu0  ;;  %v1915_v43 = vmul.f32 %v5335_v29, %v5335_v29  ;;  %v1900_v25 = vsel %vm162_vm0, %v5335_v29, 0.0 }
 0x2e7   :  { %v1909_v31 = vmul.f32 %v5337_v52, %v5337_v52  ;;  %v1921_v18 = vsel %vm162_vm0, %v1915_v43, 0.0 }
 0x2e8   :  { %v1847_v19 = vpop.f32.mrb[2].mxu0 }
 0x2e9   :  { %v3924_v12 = vadd.f32 %v1847_v19, %v1188_v9  ;;  %v3687_v22 = vpop.f32.mrb[3].mxu0  ;;  %v1952_v19 = vpop.permute.xlu1 %1951 }
 0x2eb   :  { %v1895_v36 = vadd.f32 %v3924_v12, %v5337_v52  ;;  %v1910_v8 = vmul.f32 %v3924_v12, %v3924_v12 }
 0x2ec   :  { %v1853_v42 = vpop.f32.mrb[4].mxu0 }
 0x2ed   :  { %v1916_v5 = vadd.f32 %v1910_v8, %v1909_v31  ;;  %v3926_v58 = vadd.f32 %v1853_v42, %v1198_v26  ;;  %v3690_v41 = vpop.f32.mrb[5].mxu0  ;;  %v1994_v31 = vpop.permute.xlu1 %1993 }
 0x2ef   :  { %v1896_v24 = vadd.f32 %v3926_v58, %v1895_v36  ;;  %v1911_v33 = vmul.f32 %v3926_v58, %v3926_v58  ;;  %v1957_v36 = vpop.permute.xlu0 %1956 }
 0x2f1   :  { %v1897_v44 = vadd.f32 %v5329_v34, %v1896_v24  ;;  %v1917_v3 = vadd.f32 %v1916_v5, %v1911_v33  ;;  %v1962_v8 = vpop.permute.xlu1 %1961 }
 0x2f3   :  { %v1898_v40 = vadd.f32 %v5331_v27, %v1897_v44  ;;  %v1918_v20 = vadd.f32 %v1917_v3, %v1912_v59  ;;  %v1999_v5 = vpop.permute.xlu0 %1998 }
 0x2f5   :  { %v1899_v37 = vadd.f32 %v5333_v47, %v1898_v40  ;;  %v1919_v11 = vadd.f32 %v1918_v20, %v1913_v63  ;;  %v2004_v59 = vpop.permute.xlu1 %2003 }
 0x2f7   :  { %v1901_v13 = vadd.f32 %v1900_v25, %v1899_v37  ;;  %v1920_v48 = vadd.f32 %v1919_v11, %v1914_v49  ;;  %v1967_v40 = vpop.permute.xlu0 %1966 }
 0x2f9   :  { %v1902_v50 = vrot.slane %v1901_v13, 4  ;;  %v1922_v21 = vadd.f32 %v1921_v18, %v1920_v48 }
 0x2fb   :  { %v1903_v53 = vadd.f32 %v1902_v50, %v1901_v13  ;;  %v1923_v28 = vrot.slane %v1922_v21, 4 }
 0x2fd   :  { %v1904_v10 = vrot.slane %v1903_v53, 2  ;;  %v1924_v35 = vadd.f32 %v1923_v28, %v1922_v21 }
 0x2ff   :  { %v1905_v30 = vadd.f32 %v1904_v10, %v1903_v53  ;;  %v1925_v6 = vrot.slane %v1924_v35, 2 }
 0x301   :  { %v1906_v17 = vrot.slane %v1905_v30, 1  ;;  %v1926_v0 = vadd.f32 %v1925_v6, %v1924_v35 }
 0x303   :  { %v1907_v55 = vadd.f32 %v1906_v17, %v1905_v30  ;;  %v1927_v15 = vrot.slane %v1926_v0, 1  ;;  %v2009_v30 = vpop.permute.xlu0 %2008 }
 0x305   :  { %v1908_v45 = vmul.f32 0.02, %v1907_v55  ;;  %v1928_v60 = vadd.f32 %v1927_v15, %v1926_v0 }
 0x307   :  { %v1929_v46 = vmul.f32 0.02, %v1928_v60  ;;  %v1930_v54 = vmul.f32 %v1908_v45, %v1908_v45  ;;  %v1935_v1 = vsub.f32 %v3926_v58, %v1908_v45  ;;  %v1933_v56 = vsub.f32 %v5337_v52, %v1908_v45 }
 0x308   :  { %v1934_v38 = vsub.f32 %v3924_v12, %v1908_v45  ;;  %v1936_v51 = vsub.f32 %v5329_v34, %v1908_v45  ;;  %v1937_v61 = vsub.f32 %v5331_v27, %v1908_v45  ;;  %v1938_v16 = vsub.f32 %v5333_v47, %v1908_v45 }
 0x309   :  { %v1931_v39 = vsub.f32 %v1929_v46, %v1930_v54  ;;  %v1939_v9 = vsub.f32 %v5335_v29, %v1908_v45 }
 0x30b   :  { %v1932_v22 = vmax.f32 %v1931_v39, 0.0 }
 0x30d   :  { %v1940_v26 = vadd.f32 1e-05, %v1932_v22 }
 0x30f   :  { %4096 = vrsqrt.f32 %v1940_v26 }
 0x319   :  { %v4097_v42 = vpop.eup %4096 }
 0x31a   :  { %v1944_v52 = vmul.f32 %v4097_v42, %v1935_v1  ;;  %v1942_v12 = vmul.f32 %v4097_v42, %v1933_v56  ;;  %v1943_v58 = vmul.f32 %v4097_v42, %v1934_v38  ;;  %v1945_v34 = vmul.f32 %v4097_v42, %v1936_v51 }
 0x31b   :  { %v5361_v41 = vmul.f32 %v4097_v42, %v1937_v61  ;;  %v5363_v27 = vmul.f32 %v4097_v42, %v1938_v16  ;;  %v5365_v47 = vmul.f32 %v4097_v42, %v1939_v9 }
 0x31c   :  { %v1986_v29 = vmul.f32 %v1962_v8, %v1944_v52  ;;  %v1984_v24 = vmul.f32 %v1952_v19, %v1942_v12  ;;  %v1985_v33 = vmul.f32 %v1957_v36, %v1943_v58  ;;  %v1987_v18 = vmul.f32 %v1967_v40, %v1945_v34 }
 0x31e   :  { %v5367_v44 = vadd.f32 %v2004_v59, %v1986_v29  ;;  %v5369_v3 = vadd.f32 %v1994_v31, %v1984_v24  ;;  %v5371_v63 = vadd.f32 %v1999_v5, %v1985_v33  ;;  %v5383_v55 = vadd.f32 %v2009_v30, %v1987_v18 }
 0x320   :  { %v2244_v20 = vand.u32 2139095040, %v5367_v44  ;;  %v2033_v43 = vand.u32 2147483647, %v5369_v3  ;;  %v2036_v49 = vand.u32 2139095040, %v5369_v3  ;;  %v2137_v37 = vand.u32 2147483647, %v5371_v63 }
 0x321   :  { %v2140_v11 = vand.u32 2139095040, %v5371_v63  ;;  %v2241_v35 = vand.u32 2147483647, %v5367_v44  ;;  %v2348_v61 = vand.u32 2139095040, %v5383_v55 }
 0x322   :  { %v2245_v25 = vshrl.u32 %v2244_v20, 23  ;;  %v2037_v13 = vshrl.u32 %v2036_v49, 23  ;;  %v2040_v53 = vand.u32 8388607, %v2033_v43  ;;  %v2144_v28 = vand.u32 8388607, %v2137_v37 }
 0x323   :  { %v2141_v48 = vshrl.u32 %v2140_v11, 23  ;;  %v5387_v54 = vand.u32 8388607, %v2241_v35 }
 0x324   :  { %v3341_v50 = vadd.s32 4294967169, %v2245_v25  ;;  %v3333_v21 = vadd.s32 4294967169, %v2037_v13  ;;  %v2041_v15 = vor.u32 8388608, %v2040_v53  ;;  %v2145_v45 = vor.u32 8388608, %v2144_v28 }
 0x325   :  { %v3337_v10 = vadd.s32 4294967169, %v2141_v48  ;;  %v2249_v19 = vor.u32 8388608, %v5387_v54 }
 0x326   :  { %v2251_v6 = vadd.s32 1, %v3341_v50  ;;  %v2043_v17 = vadd.s32 1, %v3333_v21  ;;  %v5391_v38 = vshll.u32 %v2041_v15, 8  ;;  %v5393_v51 = vshll.u32 %v2145_v45, 8 }
 0x327   :  { %v2147_v0 = vadd.s32 1, %v3337_v10 }
 0x328   :  { %vm2252_vm5 = vcmp.gt.s32.totalorder %v2251_v6, 0  ;;  %vm2044_vm6 = vcmp.gt.s32.totalorder %v2043_v17, 0 }
 0x329   :  { %v2253_v60 = vsel %vm2252_vm5, %v2251_v6, 0  ;;  %v2045_v46 = vsel %vm2044_vm6, %v2043_v17, 0  ;;  %vm2148_vm8 = vcmp.gt.s32.totalorder %v2147_v0, 0 }
 0x32a   :  { %v5389_v1 = vand.u32 31, %v2253_v60  ;;  %v2047_v56 = vand.u32 31, %v2045_v46  ;;  %v5396_v16 = vshrl.u32 %v2253_v60, 5  ;;  %v2046_v39 = vshrl.u32 %v2045_v46, 5 }
 0x32b   :  { %v2149_v36 = vsel %vm2148_vm8, %v2147_v0, 0 }
 0x32c   :  { %v2048_v9 = vsub.s32 32, %v2047_v56  ;;  %v5400_v22 = vsub.s32 32, %v5389_v1  ;;  %v2050_v26 = vshll.u32 %v4129_v57, %v2047_v56  ;;  %v2053_v31 = vshll.u32 %v4130_v62, %v2047_v56 }
 0x32d   :  { %v2056_v5 = vshll.u32 %v4131_v2, %v2047_v56  ;;  %v2059_v12 = vshll.u32 %v4132_v4, %v2047_v56  ;;  %v2062_v34 = vshll.u32 %v4133_v7, %v2047_v56  ;;  %v5414_v24 = vshll.u32 %v4132_v4, %v5389_v1 }
 0x32e   :  { %v2051_v8 = vshrl.u32 %v4130_v62, %v2048_v9  ;;  %v2054_v42 = vshrl.u32 %v4131_v2, %v2048_v9  ;;  %v2057_v52 = vshrl.u32 %v4132_v4, %v2048_v9  ;;  %v2060_v58 = vshrl.u32 %v4133_v7, %v2048_v9 }
 0x32f   :  { %v2063_v29 = vshrl.u32 %v4134_v14, %v2048_v9  ;;  %v5418_v20 = vshrl.u32 %v4133_v7, %v5400_v22  ;;  %v5422_v49 = vshll.u32 %v4133_v7, %v5389_v1  ;;  %v2049_v13 = vshrl.u32 %v4129_v57, %v2048_v9 }
 0x330   :  { %v2052_v33 = vor.u32 %v2051_v8, %v2050_v26  ;;  %v2055_v59 = vor.u32 %v2054_v42, %v2053_v31  ;;  %v2058_v40 = vor.u32 %v2057_v52, %v2056_v5  ;;  %v2061_v11 = vor.u32 %v2060_v58, %v2059_v12 }
 0x331   :  { %v2064_v25 = vor.u32 %v2063_v29, %v2062_v34  ;;  %vm2065_vm2 = vcmp.lt.s32.totalorder %v2046_v39, 1  ;;  %vm2067_vm9 = vcmp.lt.s32.totalorder %v2046_v39, 3  ;;  %vm2068_vm12 = vcmp.lt.s32.totalorder %v2046_v39, 4 }
 0x332   :  { %v2070_v48 = vsel %vm2068_vm12, %v2058_v40, 2102212464  ;;  %v2073_v18 = vsel %vm2065_vm2, %v2052_v33, %v2055_v59  ;;  %v2074_v50 = vsel %vm2068_vm12, %v2061_v11, 920167782  ;;  %v2077_v21 = vsel %vm2065_vm2, %v2055_v59, %v2058_v40 }
 0x333   :  { %vm2066_vm13 = vcmp.lt.s32.totalorder %v2046_v39, 2  ;;  %v2069_v53 = vsel %vm2065_vm2, %v2049_v13, %v2052_v33  ;;  %v2075_v28 = vsel %vm2067_vm9, %v2058_v40, %v2074_v50  ;;  %v2078_v10 = vsel %vm2068_vm12, %v2064_v25, 1326507024 }
 0x334   :  { %v2071_v30 = vsel %vm2067_vm9, %v2055_v59, %v2070_v48  ;;  %v2076_v6 = vsel %vm2066_vm13, %v2073_v18, %v2075_v28  ;;  %v2079_v17 = vsel %vm2067_vm9, %v2061_v11, %v2078_v10  ;;  %v2151_v0 = vand.u32 31, %v2149_v36 }
 0x335   :  { %v5427_v15 = vshrl.u32 %v4134_v14, %v5400_v22  ;;  %v2080_v45 = vsel %vm2066_vm13, %v2077_v21, %v2079_v17  ;;  %v5430_v60 = vmul.u32.u64.low %v5391_v38, %v2076_v6  ;;  %v5431_v46 = vmul.u32.u64.high %v5391_v38, %v2076_v6, %v5430_v60 }
 0x336   :  { %v5435_v56 = vmul.u32.u64.low %v5391_v38, %v2080_v45  ;;  %v5436_v39 = vmul.u32.u64.high %v5391_v38, %v2080_v45, %v5435_v56  ;;  %v2150_v9 = vshrl.u32 %v2149_v36, 5  ;;  %v2152_v26 = vsub.s32 32, %v2151_v0 }
 0x337   :  { %v2072_v31 = vsel %vm2066_vm13, %v2069_v53, %v2071_v30  ;;  %v2154_v8 = vshll.u32 %v4129_v57, %v2151_v0  ;;  %v2157_v42 = vshll.u32 %v4130_v62, %v2151_v0  ;;  %v2160_v5 = vshll.u32 %v4131_v2, %v2151_v0 }
 0x338   :  { %v2155_v52 = vshrl.u32 %v4130_v62, %v2152_v26  ;;  %v2158_v12 = vshrl.u32 %v4131_v2, %v2152_v26  ;;  %v2161_v58 = vshrl.u32 %v4132_v4, %v2152_v26  ;;  %v2163_v34 = vshll.u32 %v4132_v4, %v2151_v0 }
 0x339   :  { %v2091_v29 = vadd.s32 1, %v5431_v46  ;;  %v2164_v36 = vshrl.u32 %v4133_v7, %v2152_v26  ;;  %v2166_v33 = vshll.u32 %v4133_v7, %v2151_v0  ;;  %v2167_v59 = vshrl.u32 %v4134_v14, %v2152_v26 }
 0x33a   :  { %v2088_v40 = vmul.u32 %v5391_v38, %v2072_v31  ;;  %vm2090_vm4 = vc.u32 %v5436_v39, %v5430_v60  ;;  %v2156_v11 = vor.u32 %v2155_v52, %v2154_v8  ;;  %v2159_v25 = vor.u32 %v2158_v12, %v2157_v42 }
 0x33b   :  { %v2092_v13 = vsel %vm2090_vm4, %v2091_v29, %v5431_v46  ;;  %v2162_v48 = vor.u32 %v2161_v58, %v2160_v5  ;;  %v2165_v18 = vor.u32 %v2164_v36, %v2163_v34  ;;  %v2168_v50 = vor.u32 %v2167_v59, %v2166_v33 }
 0x33c   :  { %v2093_v21 = vadd.s32 %v2092_v13, %v2088_v40  ;;  %v2153_v53 = vshrl.u32 %v4129_v57, %v2152_v26  ;;  %vm2169_vm11 = vcmp.lt.s32.totalorder %v2150_v9, 1  ;;  %vm2172_vm7 = vcmp.lt.s32.totalorder %v2150_v9, 4 }
 0x33d   :  { %vm2171_vm1 = vcmp.lt.s32.totalorder %v2150_v9, 3  ;;  %v2174_v28 = vsel %vm2172_vm7, %v2162_v48, 2102212464  ;;  %v2177_v10 = vsel %vm2169_vm11, %v2156_v11, %v2159_v25  ;;  %v2178_v30 = vsel %vm2172_vm7, %v2165_v18, 920167782 }
 0x33e   :  { %v2094_v38 = vadd.s32 536870912, %v2093_v21  ;;  %vm2170_vm10 = vcmp.lt.s32.totalorder %v2150_v9, 2  ;;  %v2179_v6 = vsel %vm2171_vm1, %v2162_v48, %v2178_v30  ;;  %v2181_v17 = vsel %vm2169_vm11, %v2159_v25, %v2162_v48 }
 0x33f   :  { %v2173_v0 = vsel %vm2169_vm11, %v2153_v53, %v2156_v11  ;;  %v2175_v45 = vsel %vm2171_vm1, %v2159_v25, %v2174_v28  ;;  %v2180_v46 = vsel %vm2170_vm10, %v2177_v10, %v2179_v6  ;;  %v2182_v56 = vsel %vm2172_vm7, %v2168_v50, 1326507024 }
 0x340   :  { %v5455_v31 = vshrl.u32 %v2094_v38, 30  ;;  %v2183_v8 = vsel %vm2171_vm1, %v2165_v18, %v2182_v56  ;;  %v5458_v26 = vmul.u32.u64.low %v5393_v51, %v2180_v46  ;;  %v5459_v42 = vmul.u32.u64.high %v5393_v51, %v2180_v46, %v5458_v26 }
 0x341   :  { %v2269_v5 = vor.u32 %v5418_v20, %v5414_v24  ;;  %v2272_v52 = vor.u32 %v5427_v15, %v5422_v49  ;;  %v2184_v12 = vsel %vm2170_vm10, %v2181_v17, %v2183_v8  ;;  %v2259_v58 = vshrl.u32 %v4130_v62, %v5400_v22 }
 0x342   :  { %v2096_v34 = vshll.u32 %v5455_v31, 30  ;;  %v5471_v29 = vmul.u32.u64.low %v5393_v51, %v2184_v12  ;;  %v5472_v36 = vmul.u32.u64.high %v5393_v51, %v2184_v12, %v5471_v29  ;;  %v2258_v33 = vshll.u32 %v4129_v57, %v5389_v1 }
 0x343   :  { %vm2276_vm3 = vcmp.lt.s32.totalorder %v5396_v16, 4  ;;  %v2176_v24 = vsel %vm2170_vm10, %v2173_v0, %v2175_v45  ;;  %v2261_v20 = vshll.u32 %v4130_v62, %v5389_v1  ;;  %v2262_v49 = vshrl.u32 %v4131_v2, %v5400_v22 }
 0x344   :  { %v5482_v15 = vsub.s32 %v2093_v21, %v2096_v34  ;;  %v2195_v59 = vadd.s32 1, %v5459_v42  ;;  %v2260_v40 = vor.u32 %v2259_v58, %v2258_v33  ;;  %v2265_v11 = vshrl.u32 %v4132_v4, %v5400_v22  ;;  %v1977_v34 = vpop.permute.xlu0 %1976 }
 0x345   :  { %v2282_v25 = vsel %vm2276_vm3, %v2269_v5, 920167782  ;;  %v2263_v13 = vor.u32 %v2262_v49, %v2261_v20  ;;  %v2264_v9 = vshll.u32 %v4131_v2, %v5389_v1  ;;  %v5493_v48 = vshll.u32 %v2249_v19, 8 }
 0x346   :  { %v2286_v18 = vsel %vm2276_vm3, %v2272_v52, 1326507024  ;;  %v2099_v50 = vsub.s32 0, %v5482_v15  ;;  %v2192_v21 = vmul.u32 %v5393_v51, %v2176_v24  ;;  %vm2194_vm5 = vc.u32 %v5472_v36, %v5458_v26 }
 0x347   :  { %v2196_v53 = vsel %vm2194_vm5, %v2195_v59, %v5459_v42  ;;  %v2257_v28 = vshrl.u32 %v4129_v57, %v5400_v22  ;;  %v2266_v1 = vor.u32 %v2265_v11, %v2264_v9  ;;  %vm2273_vm6 = vcmp.lt.s32.totalorder %v5396_v16, 1  ;;  %v1972_v42 = vpop.permute.xlu1 %1971 }
 0x348   :  { %v3334_v54 = vmin.u32 %v2099_v50, %v5482_v15  ;;  %v2197_v19 = vadd.s32 %v2196_v53, %v2192_v21  ;;  %vm2275_vm8 = vcmp.lt.s32.totalorder %v5396_v16, 3  ;;  %v2281_v10 = vsel %vm2273_vm6, %v2260_v40, %v2263_v13 }
 0x349   :  { %v2278_v51 = vsel %vm2276_vm3, %v2266_v1, 2102212464  ;;  %v2283_v30 = vsel %vm2275_vm8, %v2266_v1, %v2282_v25  ;;  %v2285_v38 = vsel %vm2273_vm6, %v2263_v13, %v2266_v1  ;;  %v2287_v6 = vsel %vm2275_vm8, %v2269_v5, %v2286_v18 }
 0x34a   :  { %v2101_v17 = vclz %v3334_v54  ;;  %vm2274_vm2 = vcmp.lt.s32.totalorder %v5396_v16, 2  ;;  %v2277_v0 = vsel %vm2273_vm6, %v2257_v28, %v2260_v40  ;;  %v2349_v22 = vshrl.u32 %v2348_v61, 23 }
 0x34b   :  { %v2198_v45 = vadd.s32 536870912, %v2197_v19  ;;  %v2279_v46 = vsel %vm2275_vm8, %v2263_v13, %v2278_v51  ;;  %v2284_v56 = vsel %vm2274_vm2, %v2281_v10, %v2283_v30  ;;  %v2288_v8 = vsel %vm2274_vm2, %v2285_v38, %v2287_v6  ;;  %v2014_v30 = vpop.permute.xlu1 %2013 }
 0x34c   :  { %v3335_v52 = vadd.s32 4294967294, %v2101_v17  ;;  %v2119_v12 = vsub.s32 4, %v5455_v31  ;;  %v5518_v5 = vmul.u32.u64.low %v5493_v48, %v2288_v8  ;;  %v5519_v58 = vmul.u32.u64.high %v5493_v48, %v2288_v8, %v5518_v5  ;;  %v2019_v8 = vpop.permute.xlu0 %2018 }
 0x34d   :  { %v2199_v29 = vshrl.u32 %v2198_v45, 30  ;;  %v5522_v61 = vmul.u32.u64.low %v5493_v48, %v2284_v56  ;;  %v5523_v33 = vmul.u32.u64.high %v5493_v48, %v2284_v56, %v5522_v61  ;;  %v1988_v24 = vmul.f32 %v1972_v42, %v5361_v41 }
 0x34e   :  { %vm2035_vm9 = vcmp.lt.s32.totalorder %v5369_v3, 0  ;;  %vm3336_vm12 = vcmp.lt.s32.totalorder %v3335_v52, 0  ;;  %v2280_v20 = vsel %vm2274_vm2, %v2277_v0, %v2279_v46  ;;  %v1989_v49 = vmul.f32 %v1977_v34, %v5363_v27 }
 0x34f   :  { %v2104_v59 = vsel %vm3336_vm12, 0, %v3335_v52  ;;  %v2200_v40 = vshll.u32 %v2199_v29, 30  ;;  %v2345_v11 = vand.u32 2147483647, %v5383_v55  ;;  %v3345_v25 = vadd.s32 4294967169, %v2349_v22 }
 0x350   :  { %v2089_v13 = vadd.s32 %v5430_v60, %v5436_v39  ;;  %v2105_v9 = vsub.s32 32, %v2104_v59  ;;  %v2109_v18 = vsub.s32 4294967266, %v2104_v59  ;;  %v2120_v41 = vsel %vm2035_vm9, %v2119_v12, %v5455_v31 }
 0x351   :  { %v5536_v50 = vsub.s32 %v2197_v19, %v2200_v40  ;;  %v2296_v16 = vmul.u32 %v5493_v48, %v2280_v20  ;;  %vm2298_vm13 = vc.u32 %v5519_v58, %v5522_v61  ;;  %v2299_v27 = vadd.s32 1, %v5523_v33 }
 0x352   :  { %v2106_v21 = vshll.u32 %v5482_v15, %v2104_v59  ;;  %v2107_v53 = vshrl.u32 %v2089_v13, %v2105_v9  ;;  %v2110_v28 = vadd.s32 127, %v2109_v18  ;;  %v2223_v1 = vsub.s32 4, %v2199_v29 }
 0x353   :  { %vm5544_vm4 = vcmp.le.f32.partialorder %v2033_v43, 0.7853982  ;;  %v2203_v39 = vsub.s32 0, %v5536_v50  ;;  %v2300_v31 = vsel %vm2298_vm13, %v2299_v27, %v5523_v33  ;;  %v2355_v48 = vadd.s32 1, %v3345_v25 }
 0x354   :  { %v2108_v54 = vor.u32 %v2107_v53, %v2106_v21  ;;  %v2111_v19 = vshll.u32 %v2110_v28, 23  ;;  %v2122_v10 = vsel %vm5544_vm4, 0, %v2120_v41  ;;  %v2301_v15 = vadd.s32 %v2300_v31, %v2296_v16 }
 0x355   :  { %vm2139_vm11 = vcmp.lt.s32.totalorder %v5371_v63, 0  ;;  %v3338_v51 = vmin.u32 %v2203_v39, %v5536_v50  ;;  %v2352_v43 = vand.u32 8388607, %v2345_v11  ;;  %vm2356_vm7 = vcmp.gt.s32.totalorder %v2355_v48, 0 }
 0x356   :  { %v2112_v38 = vor.u32 4788187, %v2111_v19  ;;  %v2224_v6 = vsel %vm2139_vm11, %v2223_v1, %v2199_v29  ;;  %v2302_v17 = vadd.s32 536870912, %v2301_v15  ;;  %v2357_v0 = vsel %vm2356_vm7, %v2355_v48, 0 }
 0x357   :  { %v2126_v22 = vadd.s32 3, %v2122_v10  ;;  %vm5560_vm1 = vcmp.le.f32.partialorder %v2137_v37, 0.7853982  ;;  %v2205_v46 = vclz %v3338_v51  ;;  %v5564_v56 = vadd.f32 %v2014_v30, %v1988_v24 }
 0x358   :  { %v2113_v42 = vand.u32 2147483647, %v2112_v38  ;;  %v2115_v52 = vcvt.s32.f32 %v2108_v54  ;;  %v2303_v12 = vshrl.u32 %v2302_v17, 30  ;;  %v2359_v5 = vand.u32 31, %v2357_v0 }
 0x359   :  { %v3339_v34 = vadd.s32 4294967294, %v2205_v46  ;;  %v2226_v29 = vsel %vm5560_vm1, 0, %v2224_v6  ;;  %v2353_v33 = vor.u32 8388608, %v2352_v43  ;;  %v5568_v20 = vadd.f32 %v2019_v8, %v1989_v49 }
 0x35a   :  { %v2116_v59 = vmul.f32 %v2115_v52, %v2113_v42  ;;  %v2193_v37 = vadd.s32 %v5458_v26, %v5472_v36  ;;  %vm2243_vm10 = vcmp.lt.s32.totalorder %v5367_v44, 0  ;;  %v2304_v24 = vshll.u32 %v2303_v12, 30 }
 0x35b   :  { %v5573_v40 = vand.u32 3, %v2126_v22  ;;  %vm3340_vm3 = vcmp.lt.s32.totalorder %v3339_v34, 0  ;;  %v5576_v25 = vadd.s32 %v5522_v61, %v5519_v58  ;;  %v2360_v13 = vsub.s32 32, %v2359_v5 }
 0x35c   :  { %v2117_v9 = vxor.u32 2147483648, %v2116_v59  ;;  %v2208_v18 = vsel %vm3340_vm3, 0, %v3339_v34  ;;  %v5578_v41 = vadd.s32 3, %v2226_v29  ;;  %v5580_v49 = vsub.s32 %v2301_v15, %v2304_v24 }
 0x35d   :  { %v2209_v16 = vsub.s32 32, %v2208_v18  ;;  %v2213_v27 = vsub.s32 4294967266, %v2208_v18  ;;  %v5582_v21 = vshrl.u32 %v2357_v0, 5  ;;  %v5584_v26 = vshll.u32 %v2353_v33, 8 }
 0x35e   :  { %v2118_v36 = vsel %vm2035_vm9, %v2117_v9, %v2116_v59  ;;  %v2210_v53 = vshll.u32 %v5536_v50, %v2208_v18  ;;  %v2307_v58 = vsub.s32 0, %v5580_v49  ;;  %v2327_v61 = vsub.s32 4, %v2303_v12 }
 0x35f   :  { %v2121_v28 = vsel %vm5544_vm4, %v5369_v3, %v2118_v36  ;;  %v2211_v1 = vshrl.u32 %v2193_v37, %v2209_v16  ;;  %v2214_v39 = vadd.s32 127, %v2213_v27  ;;  %v2363_v31 = vshrl.u32 %v4130_v62, %v2360_v13 }
 0x360   :  { %4098 = vcosq.f32 %v2121_v28  ;;  %v3342_v48 = vmin.u32 %v2307_v58, %v5580_v49  ;;  %v2362_v54 = vshll.u32 %v4129_v57, %v2359_v5  ;;  %v2452_v19 = vand.u32 2139095040, %v5564_v56 }
 0x361   :  { %4100 = vsinq.f32 %v2121_v28  ;;  %v2212_v50 = vor.u32 %v2211_v1, %v2210_v53  ;;  %v2215_v10 = vshll.u32 %v2214_v39, 23  ;;  %v2366_v15 = vshrl.u32 %v4131_v2, %v2360_v13 }
 0x362   :  { %v2309_v51 = vclz %v3342_v48  ;;  %v5600_v60 = vsel %vm2243_vm10, %v2327_v61, %v2303_v12  ;;  %v2365_v43 = vshll.u32 %v4130_v62, %v2359_v5  ;;  %v2368_v30 = vshll.u32 %v4131_v2, %v2359_v5 }
 0x363   :  { %v2216_v38 = vor.u32 4788187, %v2215_v10  ;;  %v2361_v6 = vshrl.u32 %v4129_v57, %v2360_v13  ;;  %v2364_v17 = vor.u32 %v2363_v31, %v2362_v54  ;;  %v2369_v0 = vshrl.u32 %v4132_v4, %v2360_v13 }
 0x364   :  { %vm2132_vm5 = vcmp.eq.s32.totalorder %v5573_v40, 2  ;;  %v2219_v22 = vcvt.s32.f32 %v2212_v50  ;;  %v3343_v46 = vadd.s32 4294967294, %v2309_v51  ;;  %v2371_v8 = vshll.u32 %v4132_v4, %v2359_v5 }
 0x365   :  { %v2372_v42 = vshrl.u32 %v4133_v7, %v2360_v13  ;;  %vm2129_vm6 = vcmp.eq.s32.totalorder %v5573_v40, 0  ;;  %v2217_v52 = vand.u32 2147483647, %v2216_v38  ;;  %v2367_v12 = vor.u32 %v2366_v15, %v2365_v43 }
 0x366   :  { %v2374_v34 = vshll.u32 %v4133_v7, %v2359_v5  ;;  %v2375_v29 = vshrl.u32 %v4134_v14, %v2360_v13  ;;  %vm2128_vm8 = vcmp.lt.s32.totalorder %v5573_v40, 2  ;;  %vm3344_vm2 = vcmp.lt.s32.totalorder %v3343_v46, 0 }
 0x367   :  { %v2370_v33 = vor.u32 %v2369_v0, %v2368_v30  ;;  %v2373_v59 = vor.u32 %v2372_v42, %v2371_v8  ;;  %vm2377_vm9 = vcmp.lt.s32.totalorder %v5582_v21, 1  ;;  %vm2125_vm12 = vweird.f32 %v5369_v3 }
 0x368   :  { %v2220_v37 = vmul.f32 %v2219_v22, %v2217_v52  ;;  %v2312_v24 = vsel %vm3344_vm2, 0, %v3343_v46  ;;  %vm2378_vm13 = vcmp.lt.s32.totalorder %v5582_v21, 2  ;;  %vm2379_vm4 = vcmp.lt.s32.totalorder %v5582_v21, 3 }
 0x369   :  { %v2313_v9 = vsub.s32 32, %v2312_v24  ;;  %v2317_v18 = vsub.s32 4294967266, %v2312_v24  ;;  %v2376_v5 = vor.u32 %v2375_v29, %v2374_v34  ;;  %vm2380_vm7 = vcmp.lt.s32.totalorder %v5582_v21, 4 }
 0x36a   :  { %v2221_v13 = vxor.u32 2147483648, %v2220_v37  ;;  %vm5620_vm3 = vcmp.le.f32.partialorder %v2241_v35, 0.7853982  ;;  %v2314_v27 = vshll.u32 %v5580_v49, %v2312_v24  ;;  %v2385_v36 = vsel %vm2377_vm9, %v2364_v17, %v2367_v12  ;;  %v4099_v58 = vpop.eup %4098 }
 0x36b   :  { %v2386_v53 = vsel %vm2380_vm7, %v2373_v59, 920167782  ;;  %v2315_v61 = vshrl.u32 %v5576_v25, %v2313_v9  ;;  %v2318_v28 = vadd.s32 127, %v2317_v18  ;;  %v2381_v1 = vsel %vm2377_vm9, %v2361_v6, %v2364_v17  ;;  %v4101_v39 = vpop.eup %4100 }
 0x36c   :  { %v2387_v35 = vsel %vm2379_vm4, %v2370_v33, %v2386_v53  ;;  %v2133_v31 = vxor.u32 2147483648, %v4099_v58  ;;  %v2222_v49 = vsel %vm2139_vm11, %v2221_v13, %v2220_v37  ;;  %v2382_v48 = vsel %vm2380_vm7, %v2370_v33, 2102212464 }
 0x36d   :  { %v2388_v54 = vsel %vm2378_vm13, %v2385_v36, %v2387_v35  ;;  %v2130_v50 = vxor.u32 2147483648, %v4101_v39  ;;  %v2225_v25 = vsel %vm5560_vm1, %v5371_v63, %v2222_v49  ;;  %v2316_v10 = vor.u32 %v2315_v61, %v2314_v27 }
 0x36e   :  { %v2319_v15 = vshll.u32 %v2318_v28, 23  ;;  %v2134_v51 = vsel %vm2132_vm5, %v2133_v31, %v4101_v39  ;;  %4102 = vcosq.f32 %v2225_v25  ;;  %v2389_v43 = vsel %vm2377_vm9, %v2367_v12, %v2370_v33 }
 0x36f   :  { %v2390_v30 = vsel %vm2380_vm7, %v2376_v5, 1326507024  ;;  %v2131_v38 = vsel %vm2129_vm6, %v4099_v58, %v2130_v50  ;;  %4104 = vsinq.f32 %v2225_v25  ;;  %v2383_v45 = vsel %vm2379_vm4, %v2367_v12, %v2382_v48 }
 0x370   :  { %v2320_v6 = vor.u32 4788187, %v2319_v15  ;;  %v2135_v17 = vsel %vm2128_vm8, %v2131_v38, %v2134_v51  ;;  %v2391_v0 = vsel %vm2379_vm4, %v2373_v59, %v2390_v30  ;;  %v2323_v52 = vcvt.s32.f32 %v2316_v10 }
 0x371   :  { %v5658_v22 = vmul.u32.u64.low %v5584_v26, %v2388_v54  ;;  %v5659_v46 = vmul.u32.u64.high %v5584_v26, %v2388_v54, %v5658_v22  ;;  %v5664_v8 = vsel %vm2125_vm12, nan, %v2135_v17  ;;  %v2392_v12 = vsel %vm2378_vm13, %v2389_v43, %v2391_v0 }
 0x372   :  { %v2321_v42 = vand.u32 2147483647, %v2320_v6  ;;  %v2775_v40 = vand.u32 4294901760, %v5664_v8  ;;  %v5670_v34 = vmul.u32.u64.low %v5584_v26, %v2392_v12  ;;  %v5671_v29 = vmul.u32.u64.high %v5584_v26, %v2392_v12, %v5670_v34 }
 0x373   :  { %v2453_v33 = vshrl.u32 %v2452_v19, 23  ;;  %v2330_v3 = vsel %vm5620_vm3, 0, %v5600_v60  ;;  %v2384_v37 = vsel %vm2378_vm13, %v2381_v1, %v2383_v45  ;;  %v2449_v24 = vand.u32 2147483647, %v5564_v56 }
 0x374   :  { %v2324_v59 = vmul.f32 %v2323_v52, %v2321_v42  ;;  %v5682_v9 = vsub.f32 %v5664_v8, %v2775_v40  ;;  %v2403_v18 = vadd.s32 1, %v5659_v46  ;;  %v2231_v13 = vand.u32 3, %v5578_v41 }
 0x375   :  { %v3349_v5 = vadd.s32 4294967169, %v2453_v33  ;;  %v2556_v19 = vand.u32 2139095040, %v5568_v20  ;;  %v2334_v36 = vadd.s32 3, %v2330_v3  ;;  %v2400_v53 = vmul.u32 %v5584_v26, %v2384_v37 }
 0x376   :  { %v2325_v27 = vxor.u32 2147483648, %v2324_v59  ;;  %vm2402_vm11 = vc.u32 %v5671_v29, %v5658_v22  ;;  %v2456_v61 = vand.u32 8388607, %v2449_v24  ;;  %vm2236_vm5 = vcmp.eq.s32.totalorder %v2231_v13, 2 }
 0x377   :  { %v2459_v21 = vadd.s32 1, %v3349_v5  ;;  %v2404_v58 = vsel %vm2402_vm11, %v2403_v18, %v5659_v46  ;;  %v2557_v26 = vshrl.u32 %v2556_v19, 23  ;;  %v2335_v48 = vand.u32 3, %v2334_v36 }
 0x378   :  { %v2326_v60 = vsel %vm2243_vm10, %v2325_v27, %v2324_v59  ;;  %v4103_v28 = vpop.eup %4102  ;;  %v2405_v1 = vadd.s32 %v2404_v58, %v2400_v53  ;;  %vm2233_vm10 = vcmp.eq.s32.totalorder %v2231_v13, 0  ;;  %v2457_v25 = vor.u32 8388608, %v2456_v61 }
 0x379   :  { %v2329_v41 = vsel %vm5620_vm3, %v5367_v44, %v2326_v60  ;;  %vm2460_vm1 = vcmp.gt.s32.totalorder %v2459_v21, 0  ;;  %v4105_v35 = vpop.eup %4104  ;;  %v2237_v39 = vxor.u32 2147483648, %v4103_v28  ;;  %vm2232_vm6 = vcmp.lt.s32.totalorder %v2231_v13, 2 }
 0x37a   :  { %4106 = vcosq.f32 %v2329_v41  ;;  %v2461_v31 = vsel %vm2460_vm1, %v2459_v21, 0  ;;  %v2234_v49 = vxor.u32 2147483648, %v4105_v35  ;;  %v2406_v54 = vadd.s32 536870912, %v2405_v1 }
 0x37b   :  { %4108 = vsinq.f32 %v2329_v41  ;;  %v2238_v50 = vsel %vm2236_vm5, %v2237_v39, %v4105_v35  ;;  %v2463_v10 = vand.u32 31, %v2461_v31  ;;  %v3353_v51 = vadd.s32 4294967169, %v2557_v26 }
 0x37c   :  { %v2235_v15 = vsel %vm2233_vm10, %v4103_v28, %v2234_v49  ;;  %v5698_v16 = vshrl.u32 %v2406_v54, 30  ;;  %vm2229_vm8 = vweird.f32 %v5371_v63  ;;  %vm2337_vm2 = vcmp.eq.s32.totalorder %v2335_v48, 0 }
 0x37d   :  { %v2239_v43 = vsel %vm2232_vm6, %v2235_v15, %v2238_v50  ;;  %v2464_v30 = vsub.s32 32, %v2463_v10  ;;  %vm2340_vm9 = vcmp.eq.s32.totalorder %v2335_v48, 2  ;;  %v5702_v45 = vshrl.u32 %v2461_v31, 5 }
 0x37e   :  { %v2240_v38 = vsel %vm2229_vm8, nan, %v2239_v43  ;;  %v2408_v6 = vshll.u32 %v5698_v16, 30  ;;  %vm2336_vm12 = vcmp.lt.s32.totalorder %v2335_v48, 2  ;;  %v5706_v8 = vshll.u32 %v2457_v25, 8 }
 0x37f   :  { %v2778_v17 = vand.u32 4294901760, %v2240_v38  ;;  %v2467_v0 = vshrl.u32 %v4130_v62, %v2464_v30  ;;  %v2470_v46 = vshrl.u32 %v4131_v2, %v2464_v30  ;;  %vm2333_vm13 = vweird.f32 %v5367_v44 }
 0x380   :  { %v2401_v63 = vadd.s32 %v5658_v22, %v5671_v29  ;;  %v5711_v42 = vsub.s32 %v2405_v1, %v2408_v6  ;;  %v2466_v52 = vshll.u32 %v4129_v57, %v2463_v10  ;;  %v5714_v12 = vadd.s32 1, %v3353_v51 }
 0x381   :  { %v5716_v34 = vpack.c.bf16 %v2778_v17, %v2775_v40  ;;  %v5718_v33 = vsub.f32 %v2240_v38, %v2778_v17  ;;  %v2469_v59 = vshll.u32 %v4130_v62, %v2463_v10  ;;  %v2473_v3 = vshrl.u32 %v4132_v4, %v2464_v30 }
 0x382   :  { %v2411_v37 = vsub.s32 0, %v5711_v42  ;;  %v2472_v18 = vshll.u32 %v4131_v2, %v2463_v10  ;;  %v2475_v22 = vshll.u32 %v4132_v4, %v2463_v10  ;;  %vm2481_vm4 = vcmp.lt.s32.totalorder %v5702_v45, 1 }
 0x383   :  { %3861 = vmatpush3.bf16.msra.mxu1 %v5716_v34  ;;  %v2468_v5 = vor.u32 %v2467_v0, %v2466_v52  ;;  %v2471_v40 = vor.u32 %v2470_v46, %v2469_v59  ;;  %v2476_v13 = vshrl.u32 %v4133_v7, %v2464_v30  ;;  %v2479_v27 = vshrl.u32 %v4134_v14, %v2464_v30 }
 0x384   :  { %v4107_v29 = vpop.eup %4106  ;;  %3862 = vmatprep.subr.bf16.mxu1 %v4135_v32  ;;  %v3346_v53 = vmin.u32 %v2411_v37, %v5711_v42  ;;  %v2478_v21 = vshll.u32 %v4133_v7, %v2463_v10  ;;  %vm2482_vm7 = vcmp.lt.s32.totalorder %v5702_v45, 2  ;;  %v2431_v58 = vsub.s32 4, %v5698_v16 }
 0x385   :  { %v4109_v19 = vpop.eup %4108  ;;  %v2341_v36 = vxor.u32 2147483648, %v4107_v29  ;;  %v2474_v61 = vor.u32 %v2473_v3, %v2472_v18  ;;  %v2477_v28 = vor.u32 %v2476_v13, %v2475_v22  ;;  %v2465_v26 = vshrl.u32 %v4129_v57, %v2464_v30 }
 0x386   :  { %v2338_v60 = vxor.u32 2147483648, %v4109_v19  ;;  %v2413_v1 = vclz %v3346_v53  ;;  %v2480_v35 = vor.u32 %v2479_v27, %v2478_v21  ;;  %vm2483_vm3 = vcmp.lt.s32.totalorder %v5702_v45, 3 }
 0x387   :  { %v2342_v41 = vsel %vm2340_vm9, %v2341_v36, %v4109_v19  ;;  %vm2484_vm11 = vcmp.lt.s32.totalorder %v5702_v45, 4  ;;  %v2489_v31 = vsel %vm2481_vm4, %v2468_v5, %v2471_v40  ;;  %v2485_v50 = vsel %vm2481_vm4, %v2465_v26, %v2468_v5  ;;  %v1982_v36 = vpop.permute.xlu1 %1981 }
 0x388   :  { %v2339_v39 = vsel %vm2337_vm2, %v4107_v29, %v2338_v60  ;;  %v3347_v54 = vadd.s32 4294967294, %v2413_v1  ;;  %v2490_v25 = vsel %vm2484_vm11, %v2477_v28, 920167782  ;;  %v2486_v15 = vsel %vm2484_vm11, %v2474_v61, 2102212464 }
 0x389   :  { %v2343_v49 = vsel %vm2336_vm12, %v2339_v39, %v2342_v41  ;;  %v2491_v51 = vsel %vm2483_vm3, %v2474_v61, %v2490_v25  ;;  %v2493_v43 = vsel %vm2481_vm4, %v2471_v40, %v2474_v61  ;;  %v2494_v38 = vsel %vm2484_vm11, %v2480_v35, 1326507024 }
 0x38a   :  { %v5746_v10 = vsel %vm2333_vm13, nan, %v2343_v49  ;;  %vm3348_vm1 = vcmp.lt.s32.totalorder %v3347_v54, 0  ;;  %v2492_v30 = vsel %vm2482_vm7, %v2489_v31, %v2491_v51  ;;  %v2495_v44 = vsel %vm2483_vm3, %v2477_v28, %v2494_v38 }
 0x38b   :  { %v2781_v48 = vand.u32 4294901760, %v5746_v10  ;;  %v2416_v6 = vsel %vm3348_vm1, 0, %v3347_v54  ;;  %v5758_v17 = vmul.u32.u64.low %v5706_v8, %v2492_v30  ;;  %v5759_v0 = vmul.u32.u64.high %v5706_v8, %v2492_v30, %v5758_v17 }
 0x38c   :  { %v2417_v46 = vsub.s32 32, %v2416_v6  ;;  %v2421_v52 = vsub.s32 4294967266, %v2416_v6  ;;  %v2487_v3 = vsel %vm2483_vm3, %v2471_v40, %v2486_v15  ;;  %v2418_v37 = vshll.u32 %v5711_v42, %v2416_v6 }
 0x38d   :  { %v5765_v59 = vsub.f32 %v5746_v10, %v2781_v48  ;;  %v2496_v18 = vsel %vm2482_vm7, %v2493_v43, %v2495_v44  ;;  %v2553_v22 = vand.u32 2147483647, %v5568_v20  ;;  %vm2564_vm5 = vcmp.gt.s32.totalorder %v5714_v12, 0  ;;  %v2024_v43 = vpop.permute.xlu0 %2023 }
 0x38e   :  { %v2419_v29 = vshrl.u32 %v2401_v63, %v2417_v46  ;;  %v2422_v5 = vadd.s32 127, %v2421_v52  ;;  %v5775_v13 = vmul.u32.u64.low %v5706_v8, %v2496_v18  ;;  %v5776_v27 = vmul.u32.u64.high %v5706_v8, %v2496_v18, %v5775_v13 }
 0x38f   :  { %vm2347_vm10 = vcmp.lt.s32.totalorder %v5383_v55, 0  ;;  %v2488_v40 = vsel %vm2482_vm7, %v2485_v50, %v2487_v3  ;;  %v2507_v42 = vadd.s32 1, %v5759_v0  ;;  %v2565_v19 = vsel %vm2564_vm5, %v5714_v12, 0 }
 0x390   :  { %v2420_v53 = vor.u32 %v2419_v29, %v2418_v37  ;;  %v2423_v21 = vshll.u32 %v2422_v5, 23  ;;  %v2432_v63 = vsel %vm2347_vm10, %v2431_v58, %v5698_v16  ;;  %v2567_v60 = vand.u32 31, %v2565_v19 }
 0x391   :  { %vm5788_vm6 = vcmp.le.f32.partialorder %v2345_v11, 0.7853982  ;;  %v1990_v45 = vmul.f32 %v1982_v36, %v5365_v47  ;;  %v2504_v41 = vmul.u32 %v5706_v8, %v2488_v40  ;;  %vm2506_vm8 = vc.u32 %v5776_v27, %v5758_v17 }
 0x392   :  { %v2424_v28 = vor.u32 4788187, %v2423_v21  ;;  %v2560_v12 = vand.u32 8388607, %v2553_v22  ;;  %v2434_v16 = vsel %vm5788_vm6, 0, %v2432_v63  ;;  %v2508_v58 = vsel %vm2506_vm8, %v2507_v42, %v5759_v0 }
 0x393   :  { %v5801_v11 = vshrl.u32 %v2565_v19, 5  ;;  %v2568_v1 = vsub.s32 32, %v2567_v60  ;;  %v2427_v35 = vcvt.s32.f32 %v2420_v53  ;;  %v2509_v47 = vadd.s32 %v2508_v58, %v2504_v41 }
 0x394   :  { %v2425_v26 = vand.u32 2147483647, %v2424_v28  ;;  %v2570_v39 = vshll.u32 %v4129_v57, %v2567_v60  ;;  %v2573_v31 = vshll.u32 %v4130_v62, %v2567_v60  ;;  %v2579_v15 = vshll.u32 %v4132_v4, %v2567_v60 }
 0x395   :  { %v2571_v8 = vshrl.u32 %v4130_v62, %v2568_v1  ;;  %v2574_v49 = vshrl.u32 %v4131_v2, %v2568_v1  ;;  %v2577_v54 = vshrl.u32 %v4132_v4, %v2568_v1  ;;  %v2510_v25 = vadd.s32 536870912, %v2509_v47 }
 0x396   :  { %v2428_v50 = vmul.f32 %v2427_v35, %v2425_v26  ;;  %v2580_v51 = vshrl.u32 %v4133_v7, %v2568_v1  ;;  %v2576_v6 = vshll.u32 %v4131_v2, %v2567_v60  ;;  %v2583_v44 = vshrl.u32 %v4134_v14, %v2568_v1 }
 0x397   :  { %v2572_v30 = vor.u32 %v2571_v8, %v2570_v39  ;;  %v2575_v38 = vor.u32 %v2574_v49, %v2573_v31  ;;  %v5812_v46 = vshrl.u32 %v2510_v25, 30  ;;  %v5814_v3 = vadd.f32 %v2024_v43, %v1990_v45 }
 0x398   :  { %v2429_v0 = vxor.u32 2147483648, %v2428_v50  ;;  %v2581_v52 = vor.u32 %v2580_v51, %v2579_v15  ;;  %v2438_v37 = vadd.s32 3, %v2434_v16  ;;  %v2561_v18 = vor.u32 8388608, %v2560_v12 }
 0x399   :  { %v2578_v29 = vor.u32 %v2577_v54, %v2576_v6  ;;  %v2582_v5 = vshll.u32 %v4133_v7, %v2567_v60  ;;  %v2512_v40 = vshll.u32 %v5812_v46, 30  ;;  %vm2585_vm2 = vcmp.lt.s32.totalorder %v5801_v11, 1 }
 0x39a   :  { %v2430_v13 = vsel %vm2347_vm10, %v2429_v0, %v2428_v50  ;;  %vm2588_vm9 = vcmp.lt.s32.totalorder %v5801_v11, 4  ;;  %v2593_v36 = vsel %vm2585_vm2, %v2572_v30, %v2575_v38  ;;  %vm2587_vm12 = vcmp.lt.s32.totalorder %v5801_v11, 3 }
 0x39b   :  { %v2433_v42 = vsel %vm5788_vm6, %v5383_v55, %v2430_v13  ;;  %v2584_v19 = vor.u32 %v2583_v44, %v2582_v5  ;;  %v2594_v53 = vsel %vm2588_vm9, %v2581_v52, 920167782  ;;  %v2513_v21 = vsub.s32 %v2509_v47, %v2512_v40 }
 0x39c   :  { %4110 = vcosq.f32 %v2433_v42  ;;  %v2660_v63 = vand.u32 2139095040, %v5814_v3  ;;  %vm2586_vm13 = vcmp.lt.s32.totalorder %v5801_v11, 2  ;;  %v2595_v60 = vsel %vm2587_vm12, %v2578_v29, %v2594_v53 }
 0x39d   :  { %4112 = vsinq.f32 %v2433_v42  ;;  %v2601_v61 = vshll.u32 %v2561_v18, 8  ;;  %v2439_v45 = vand.u32 3, %v2438_v37  ;;  %v2515_v28 = vsub.s32 0, %v2513_v21 }
 0x39e   :  { %v2596_v41 = vsel %vm2586_vm13, %v2593_v36, %v2595_v60  ;;  %v2597_v12 = vsel %vm2585_vm2, %v2575_v38, %v2578_v29  ;;  %v2590_v16 = vsel %vm2588_vm9, %v2578_v29, 2102212464  ;;  %v2598_v58 = vsel %vm2588_vm9, %v2584_v19, 1326507024 }
 0x39f   :  { %v5842_v26 = vmul.u32.u64.low %v2601_v61, %v2596_v41  ;;  %v5843_v35 = vmul.u32.u64.high %v2601_v61, %v2596_v41, %v5842_v26  ;;  %v3350_v47 = vmin.u32 %v2515_v28, %v2513_v21  ;;  %v2569_v39 = vshrl.u32 %v4129_v57, %v2568_v1 }
 0x3a0   :  { %v2599_v8 = vsel %vm2587_vm12, %v2581_v52, %v2598_v58  ;;  %v2661_v31 = vshrl.u32 %v2660_v63, 23  ;;  %v2591_v25 = vsel %vm2587_vm12, %v2575_v38, %v2590_v16  ;;  %v2657_v15 = vand.u32 2147483647, %v5814_v3 }
 0x3a1   :  { %v2600_v49 = vsel %vm2586_vm13, %v2597_v12, %v2599_v8  ;;  %v2517_v54 = vclz %v3350_v47  ;;  %v2589_v50 = vsel %vm2585_vm2, %v2569_v39, %v2572_v30  ;;  %vm2440_vm4 = vcmp.lt.s32.totalorder %v2439_v45, 2 }
 0x3a2   :  { %v5856_v51 = vmul.u32.u64.low %v2601_v61, %v2600_v49  ;;  %v5857_v43 = vmul.u32.u64.high %v2601_v61, %v2600_v49, %v5856_v51  ;;  %v3357_v1 = vadd.s32 4294967169, %v2661_v31  ;;  %v2592_v44 = vsel %vm2586_vm13, %v2589_v50, %v2591_v25 }
 0x3a3   :  { %v3351_v6 = vadd.s32 4294967294, %v2517_v54  ;;  %v2611_v0 = vadd.s32 1, %v5843_v35  ;;  %v3878_v30 = vpack.c.bf16 %v5718_v33, %v5682_v9  ;;  %vm2441_vm7 = vcmp.eq.s32.totalorder %v2439_v45, 0 }
 0x3a4   :  { %v2667_v52 = vadd.s32 1, %v3357_v1  ;;  %vm2444_vm3 = vcmp.eq.s32.totalorder %v2439_v45, 2  ;;  %v2664_v38 = vand.u32 8388607, %v2657_v15  ;;  %v2505_v5 = vadd.s32 %v5758_v17, %v5776_v27 }
 0x3a5   :  { %vm3352_vm11 = vcmp.lt.s32.totalorder %v3351_v6, 0  ;;  %vm2610_vm1 = vc.u32 %v5857_v43, %v5842_v26  ;;  %v2608_v19 = vmul.u32 %v2601_v61, %v2592_v44  ;;  %vm2437_vm10 = vweird.f32 %v5383_v55 }
 0x3a6   :  { %v4111_v37 = vpop.eup %4110  ;;  %v2520_v11 = vsel %vm3352_vm11, 0, %v3351_v6  ;;  %v2612_v63 = vsel %vm2610_vm1, %v2611_v0, %v5843_v35  ;;  %vm2668_vm5 = vcmp.gt.s32.totalorder %v2667_v52, 0  ;;  %v2665_v8 = vor.u32 8388608, %v2664_v38 }
 0x3a7   :  { %v4113_v18 = vpop.eup %4112  ;;  %v2445_v29 = vxor.u32 2147483648, %v4111_v37  ;;  %v2521_v40 = vsub.s32 32, %v2520_v11  ;;  %v2525_v42 = vsub.s32 4294967266, %v2520_v11  ;;  %v2522_v53 = vshll.u32 %v2513_v21, %v2520_v11 }
 0x3a8   :  { %v2442_v13 = vxor.u32 2147483648, %v4113_v18  ;;  %v2613_v12 = vadd.s32 %v2612_v63, %v2608_v19  ;;  %v2669_v27 = vsel %vm2668_vm5, %v2667_v52, 0  ;;  %v2859_v35 = vand.u32 4294901760, %v5682_v9 }
 0x3a9   :  { %v2446_v36 = vsel %vm2444_vm3, %v2445_v29, %v4113_v18  ;;  %v2523_v28 = vshrl.u32 %v2505_v5, %v2521_v40  ;;  %v2526_v41 = vadd.s32 127, %v2525_v42  ;;  %v2671_v21 = vand.u32 31, %v2669_v27 }
 0x3aa   :  { %v2443_v60 = vsel %vm2441_vm7, %v4111_v37, %v2442_v13  ;;  %v2614_v39 = vadd.s32 536870912, %v2613_v12  ;;  %v2866_v50 = vand.u32 4294901760, %v5718_v33  ;;  %vm2451_vm6 = vcmp.lt.s32.totalorder %v5564_v56, 0 }
 0x3ab   :  { %v2447_v17 = vsel %vm2440_vm4, %v2443_v60, %v2446_v36  ;;  %v2524_v58 = vor.u32 %v2523_v28, %v2522_v53  ;;  %v2527_v47 = vshll.u32 %v2526_v41, 23  ;;  %v2672_v45 = vsub.s32 32, %v2671_v21 }
 0x3ac   :  { %v2448_v16 = vsel %vm2437_vm10, nan, %v2447_v17  ;;  %v5875_v49 = vshrl.u32 %v2614_v39, 30  ;;  %v2674_v6 = vshll.u32 %v4129_v57, %v2671_v21  ;;  %v5889_v10 = vshll.u32 %v2665_v8, 8 }
 0x3ad   :  { %v2784_v61 = vand.u32 4294901760, %v2448_v16  ;;  %v2528_v31 = vor.u32 4788187, %v2527_v47  ;;  %v2531_v51 = vcvt.s32.f32 %v2524_v58  ;;  %v2675_v44 = vshrl.u32 %v4130_v62, %v2672_v45 }
 0x3ae   :  { %v2616_v1 = vshll.u32 %v5875_v49, 30  ;;  %v2678_v37 = vshrl.u32 %v4131_v2, %v2672_v45  ;;  %v2681_v38 = vshrl.u32 %v4132_v4, %v2672_v45  ;;  %v2670_v18 = vshrl.u32 %v2669_v27, 5 }
 0x3af   :  { %v5879_v54 = vpack.c.bf16 %v2784_v61, %v2781_v48  ;;  %v5881_v55 = vsub.f32 %v2448_v16, %v2784_v61  ;;  %v2529_v25 = vand.u32 2147483647, %v2528_v31  ;;  %v2860_v48 = vsub.f32 %v5682_v9, %v2859_v35 }
 0x3b0   :  { %v5895_v52 = vsub.s32 %v2613_v12, %v2616_v1  ;;  %v2677_v29 = vshll.u32 %v4130_v62, %v2671_v21  ;;  %v2867_v5 = vsub.f32 %v5718_v33, %v2866_v50  ;;  %v2873_v11 = vand.u32 4294901760, %v5765_v59  ;;  %v2766_v33 = vpop.permute.xlu1 %2765 }
 0x3b1   :  { %3864 = vmatpush3.bf16.msra.mxu1 %v5879_v54  ;;  %v2532_v0 = vmul.f32 %v2531_v51, %v2529_v25  ;;  %v2676_v42 = vor.u32 %v2675_v44, %v2674_v6  ;;  %v2680_v19 = vshll.u32 %v4131_v2, %v2671_v21  ;;  %vm5908_vm8 = vcmp.le.f32.partialorder %v2449_v24, 0.7853982 }
 0x3b2   :  { %3865 = vmatprep.subr.bf16.mxu1 %v4135_v32  ;;  %v2619_v40 = vsub.s32 0, %v5895_v52  ;;  %v2683_v62 = vshll.u32 %v4132_v4, %v2671_v21  ;;  %v2684_v53 = vshrl.u32 %v4133_v7, %v2672_v45  ;;  %v2686_v63 = vshll.u32 %v4133_v7, %v2671_v21 }
 0x3b3   :  { %v2533_v13 = vxor.u32 2147483648, %v2532_v0  ;;  %v2687_v60 = vshrl.u32 %v4134_v14, %v2672_v45  ;;  %v2679_v41 = vor.u32 %v2678_v37, %v2677_v29  ;;  %v2682_v12 = vor.u32 %v2681_v38, %v2680_v19 }
 0x3b4   :  { %v3354_v28 = vmin.u32 %v2619_v40, %v5895_v52  ;;  %v2861_v17 = vand.u32 4294901760, %v2860_v48  ;;  %v2609_v2 = vadd.s32 %v5842_v26, %v5857_v43  ;;  %v2673_v24 = vshrl.u32 %v4129_v57, %v2672_v45 }
 0x3b5   :  { %v2685_v27 = vor.u32 %v2684_v53, %v2683_v62  ;;  %v2688_v16 = vor.u32 %v2687_v60, %v2686_v63  ;;  %v2534_v4 = vsel %vm2451_vm6, %v2533_v13, %v2532_v0  ;;  %vm2689_vm2 = vcmp.lt.s32.totalorder %v2670_v18, 1 }
 0x3b6   :  { %v2621_v58 = vclz %v3354_v28  ;;  %v2868_v7 = vand.u32 4294901760, %v2867_v5  ;;  %vm2690_vm9 = vcmp.lt.s32.totalorder %v2670_v18, 2  ;;  %vm2691_vm12 = vcmp.lt.s32.totalorder %v2670_v18, 3 }
 0x3b7   :  { %vm2692_vm13 = vcmp.lt.s32.totalorder %v2670_v18, 4  ;;  %v2693_v14 = vsel %vm2689_vm2, %v2673_v24, %v2676_v42  ;;  %v2697_v61 = vsel %vm2689_vm2, %v2676_v42, %v2679_v41  ;;  %v2701_v43 = vsel %vm2689_vm2, %v2679_v41, %v2682_v12 }
 0x3b8   :  { %v3355_v47 = vadd.s32 4294967294, %v2621_v58  ;;  %v2694_v39 = vsel %vm2692_vm13, %v2682_v12, 2102212464  ;;  %v2698_v8 = vsel %vm2692_vm13, %v2685_v27, 920167782  ;;  %v2874_v25 = vsub.f32 %v5765_v59, %v2873_v11 }
 0x3b9   :  { %v2695_v21 = vsel %vm2691_vm12, %v2679_v41, %v2694_v39  ;;  %v2699_v26 = vsel %vm2691_vm12, %v2682_v12, %v2698_v8  ;;  %v2702_v57 = vsel %vm2692_vm13, %v2688_v16, 1326507024  ;;  %v2537_v48 = vsel %vm5908_vm8, %v5564_v56, %v2534_v4 }
 0x3ba   :  { %vm3356_vm4 = vcmp.lt.s32.totalorder %v3355_v47, 0  ;;  %v2700_v31 = vsel %vm2690_vm9, %v2697_v61, %v2699_v26  ;;  %v2703_v45 = vsel %vm2691_vm12, %v2685_v27, %v2702_v57  ;;  %v2696_v38 = vsel %vm2690_vm9, %v2693_v14, %v2695_v21 }
 0x3bb   :  { %v2624_v51 = vsel %vm3356_vm4, 0, %v3355_v47  ;;  %v2704_v1 = vsel %vm2690_vm9, %v2701_v43, %v2703_v45  ;;  %v5926_v6 = vmul.u32.u64.low %v5889_v10, %v2700_v31  ;;  %v5927_v44 = vmul.u32.u64.high %v5889_v10, %v2700_v31, %v5926_v6 }
 0x3bc   :  { %v2625_v0 = vsub.s32 32, %v2624_v51  ;;  %v2629_v37 = vsub.s32 4294967266, %v2624_v51  ;;  %v2626_v29 = vshll.u32 %v5895_v52, %v2624_v51  ;;  %v5939_v40 = vpack.c.bf16 %v2868_v7, %v2861_v17 }
 0x3bd   :  { %v5936_v5 = vmul.u32.u64.low %v5889_v10, %v2704_v1  ;;  %v5937_v13 = vmul.u32.u64.high %v5889_v10, %v2704_v1, %v5936_v5  ;;  %v2880_v62 = vand.u32 4294901760, %v5881_v55  ;;  %v3881_v53 = vpack.c.bf16 %v5881_v55, %v5765_v59 }
 0x3be   :  { %v2627_v42 = vshrl.u32 %v2609_v2, %v2625_v0  ;;  %v2630_v19 = vadd.s32 127, %v2629_v37  ;;  %v2535_v63 = vsub.s32 4, %v5812_v46  ;;  %4114 = vcosq.f32 %v2537_v48 }
 0x3bf   :  { %v2715_v18 = vadd.s32 1, %v5927_v44  ;;  %v5950_v52 = vpack.c.bf16 %v2866_v50, %v2859_v35  ;;  %v2881_v41 = vsub.f32 %v5881_v55, %v2880_v62  ;;  %v5953_v12 = vpack.c.bf16 %v2880_v62, %v2873_v11 }
 0x3c0   :  { %v2628_v60 = vor.u32 %v2627_v42, %v2626_v29  ;;  %v2631_v28 = vshll.u32 %v2630_v19, 23  ;;  %4116 = vsinq.f32 %v2537_v48  ;;  %v2712_v17 = vmul.u32 %v5889_v10, %v2696_v38 }
 0x3c1   :  { %vm2714_vm7 = vc.u32 %v5937_v13, %v5926_v6  ;;  %v2875_v2 = vand.u32 4294901760, %v2874_v25  ;;  %v2536_v35 = vsel %vm2451_vm6, %v2535_v63, %v5812_v46  ;;  %v2882_v16 = vand.u32 4294901760, %v2881_v41 }
 0x3c2   :  { %v2632_v24 = vor.u32 4788187, %v2631_v28  ;;  %v2716_v27 = vsel %vm2714_vm7, %v2715_v18, %v5927_v44  ;;  %v2635_v58 = vcvt.s32.f32 %v2628_v60  ;;  %v2538_v10 = vsel %vm5908_vm8, 0, %v2536_v35 }
 0x3c3   :  { %v2717_v50 = vadd.s32 %v2716_v27, %v2712_v17  ;;  %v5962_v7 = vpack.c.bf16 %v2882_v16, %v2875_v2  ;;  %v2639_v47 = vsub.s32 4, %v5875_v49  ;;  %v2542_v21 = vadd.s32 3, %v2538_v10 }
 0x3c4   :  { %v2633_v4 = vand.u32 2147483647, %v2632_v24  ;;  %vm2555_vm3 = vcmp.lt.s32.totalorder %v5568_v20, 0  ;;  %vm2554_vm11 = vcmp.le.f32.partialorder %v2553_v22, 0.7853982  ;;  %vm2541_vm8 = vweird.f32 %v5564_v56 }
 0x3c5   :  { %v2718_v11 = vadd.s32 536870912, %v2717_v50  ;;  %v2640_v43 = vsel %vm2555_vm3, %v2639_v47, %v5875_v49  ;;  %v2543_v45 = vand.u32 3, %v2542_v21  ;;  %v2713_v18 = vadd.s32 %v5926_v6, %v5937_v13 }
 0x3c6   :  { %v2636_v14 = vmul.f32 %v2635_v58, %v2633_v4  ;;  %v2642_v25 = vsel %vm2554_vm11, 0, %v2640_v43  ;;  %vm2645_vm12 = vweird.f32 %v5568_v20  ;;  %vm2659_vm4 = vcmp.lt.s32.totalorder %v5814_v3, 0 }
 0x3c7   :  { %v5967_v39 = vshrl.u32 %v2718_v11, 30  ;;  %v2646_v0 = vadd.s32 3, %v2642_v25  ;;  %vm2545_vm1 = vcmp.eq.s32.totalorder %v2543_v45, 0  ;;  %vm2548_vm5 = vcmp.eq.s32.totalorder %v2543_v45, 2 }
 0x3c8   :  { %v2637_v61 = vxor.u32 2147483648, %v2636_v14  ;;  %v4115_v8 = vpop.eup %4114  ;;  %vm2544_vm10 = vcmp.lt.s32.totalorder %v2543_v45, 2  ;;  %vm2658_vm7 = vcmp.le.f32.partialorder %v2657_v15, 0.7853982 }
 0x3c9   :  { %v2720_v46 = vshll.u32 %v5967_v39, 30  ;;  %v2549_v44 = vxor.u32 2147483648, %v4115_v8  ;;  %v2647_v49 = vand.u32 3, %v2646_v0 }
 0x3ca   :  { %v2638_v26 = vsel %vm2555_vm3, %v2637_v61, %v2636_v14  ;;  %v4117_v36 = vpop.eup %4116 }
 0x3cb   :  { %v2641_v57 = vsel %vm2554_vm11, %v5568_v20, %v2638_v26  ;;  %v2721_v31 = vsub.s32 %v2717_v50, %v2720_v46  ;;  %v2546_v1 = vxor.u32 2147483648, %v4117_v36  ;;  %v2550_v38 = vsel %vm2548_vm5, %v2549_v44, %v4117_v36  ;;  %v2761_v20 = vld [vmem:[%s6075_s9] sm:$0xff] }
 0x3cc   :  { %4118 = vcosq.f32 %v2641_v57  ;;  %vm2649_vm2 = vcmp.eq.s32.totalorder %v2647_v49, 0  ;;  %vm2652_vm9 = vcmp.eq.s32.totalorder %v2647_v49, 2  ;;  %vm2648_vm13 = vcmp.lt.s32.totalorder %v2647_v49, 2 }
 0x3cd   :  { %4120 = vsinq.f32 %v2641_v57  ;;  %v2723_v51 = vsub.s32 0, %v2721_v31  ;;  %v2547_v22 = vsel %vm2545_vm1, %v4115_v8, %v2546_v1  ;;  %v2743_v8 = vsub.s32 4, %v5967_v39 }
 0x3ce   :  { %v2551_v5 = vsel %vm2544_vm10, %v2547_v22, %v2550_v38  ;;  %v2769_v43 = vsel %vm1074_vm14, %v2761_v20, 0  ;;  %vm2749_vm1 = vweird.f32 %v5814_v3 }
 0x3cf   :  { %v3358_v48 = vmin.u32 %v2723_v51, %v2721_v31  ;;  %v2552_v41 = vsel %vm2541_vm8, nan, %v2551_v5  ;;  %v2744_v26 = vsel %vm2659_vm4, %v2743_v8, %v5967_v39 }
 0x3d0   :  { %v2787_v16 = vand.u32 4294901760, %v2552_v41  ;;  %v2746_v57 = vsel %vm2658_vm7, 0, %v2744_v26 }
 0x3d1   :  { %v2725_v37 = vclz %v3358_v48  ;;  %v2750_v45 = vadd.s32 3, %v2746_v57 }
 0x3d2   :  { %v5999_v39 = vsub.f32 %v2552_v41, %v2787_v16 }
 0x3d3   :  { %v3359_v29 = vadd.s32 4294967294, %v2725_v37  ;;  %v2751_v51 = vand.u32 3, %v2750_v45 }
 0x3d5   :  { %vm3360_vm6 = vcmp.lt.s32.totalorder %v3359_v29, 0  ;;  %vm2756_vm14 = vcmp.eq.s32.totalorder %v2751_v51, 2  ;;  %vm2753_vm3 = vcmp.eq.s32.totalorder %v2751_v51, 0  ;;  %vm2752_vm11 = vcmp.lt.s32.totalorder %v2751_v51, 2 }
 0x3d6   :  { %v4119_v42 = vpop.eup %4118  ;;  %v2728_v19 = vsel %vm3360_vm6, 0, %v3359_v29 }
 0x3d7   :  { %v4121_v62 = vpop.eup %4120  ;;  %v2653_v63 = vxor.u32 2147483648, %v4119_v42  ;;  %v2729_v60 = vsub.s32 32, %v2728_v19  ;;  %v2733_v28 = vsub.s32 4294967266, %v2728_v19  ;;  %v2730_v24 = vshll.u32 %v2721_v31, %v2728_v19 }
 0x3d8   :  { %v2650_v17 = vxor.u32 2147483648, %v4121_v62  ;;  %v5993_v31 = vand.u32 4294901760, %v2769_v43 }
 0x3d9   :  { %v2654_v2 = vsel %vm2652_vm9, %v2653_v63, %v4121_v62  ;;  %v2731_v27 = vshrl.u32 %v2713_v18, %v2729_v60  ;;  %v2734_v35 = vadd.s32 127, %v2733_v28 }
 0x3da   :  { %v2651_v56 = vsel %vm2649_vm2, %v4119_v42, %v2650_v17  ;;  %v5996_v25 = vsub.f32 %v2769_v43, %v5993_v31  ;;  %v2887_v42 = vand.u32 4294901760, %v5999_v39 }
 0x3db   :  { %v2655_v50 = vsel %vm2648_vm13, %v2651_v56, %v2654_v2  ;;  %v2732_v4 = vor.u32 %v2731_v27, %v2730_v24  ;;  %v2735_v58 = vshll.u32 %v2734_v35, 23 }
 0x3dc   :  { %v2656_v11 = vsel %vm2645_vm12, nan, %v2655_v50  ;;  %v2848_v1 = vand.u32 4294901760, %v5996_v25  ;;  %v2888_v28 = vsub.f32 %v5999_v39, %v2887_v42 }
 0x3dd   :  { %v2790_v6 = vand.u32 4294901760, %v2656_v11  ;;  %v2736_v13 = vor.u32 4788187, %v2735_v58  ;;  %v2739_v47 = vcvt.s32.f32 %v2732_v4 }
 0x3de   :  { %v2849_v38 = vsub.f32 %v5996_v25, %v2848_v1 }
 0x3df   :  { %v5979_v10 = vpack.c.bf16 %v2790_v6, %v2787_v16  ;;  %v2737_v14 = vand.u32 2147483647, %v2736_v13  ;;  %v6001_v0 = vsub.f32 %v2656_v11, %v2790_v6 }
 0x3e0   :  { %v2850_v63 = vand.u32 4294901760, %v2849_v38 }
 0x3e1   :  { %3867 = vmatpush3.bf16.msra.mxu1 %v5979_v10  ;;  %v2740_v61 = vmul.f32 %v2739_v47, %v2737_v14  ;;  %v2894_v19 = vand.u32 4294901760, %v6001_v0 }
 0x3e2   :  { %3715 = vmatprep.subr.mxu1 %v4137_v23 }
 0x3e3   :  { %v2741_v21 = vxor.u32 2147483648, %v2740_v61  ;;  %v2895_v41 = vsub.f32 %v6001_v0, %v2894_v19  ;;  %v3902_v9 = vpack.c.bf16 %v2894_v19, %v2887_v42 }
 0x3e5   :  { %v2742_v46 = vsel %vm2659_vm4, %v2741_v21, %v2740_v61  ;;  %v2896_v17 = vand.u32 4294901760, %v2895_v41 }
 0x3e6   :  { %v2745_v36 = vsel %vm2658_vm7, %v5814_v3, %v2742_v46  ;;  %v2889_v3 = vand.u32 4294901760, %v2888_v28 }
 0x3e7   :  { %4122 = vcosq.f32 %v2745_v36 }
 0x3e8   :  { %4124 = vsinq.f32 %v2745_v36  ;;  %v3875_v24 = vpack.c.bf16 %v2896_v17, %v2889_v3 }
 0x3f1   :  { %v4123_v15 = vpop.eup %4122 }
 0x3f2   :  { %v4125_v44 = vpop.eup %4124  ;;  %v2757_v48 = vxor.u32 2147483648, %v4123_v15 }
 0x3f3   :  { %v2754_v37 = vxor.u32 2147483648, %v4125_v44 }
 0x3f4   :  { %v2758_v22 = vsel %vm2756_vm14, %v2757_v48, %v4125_v44 }
 0x3f5   :  { %v2755_v29 = vsel %vm2753_vm3, %v4123_v15, %v2754_v37 }
 0x3f6   :  { %v2759_v49 = vsel %vm2752_vm11, %v2755_v29, %v2758_v22 }
 0x3f7   :  { %v2760_v5 = vsel %vm2749_vm1, nan, %v2759_v49 }
 0x3f8   :  { %v2772_v62 = vsel %vm162_vm0, %v2760_v5, 0 }
 0x3f9   :  { %v2793_v18 = vand.u32 4294901760, %v2772_v62 }
 0x3fb   :  { %3716 = vmatpush3.msra.mxu1 %v2793_v18  ;;  %v2900_v60 = vsub.f32 %v2772_v62, %v2793_v18 }
 0x3fc   :  { %3868 = vmatprep.subr.bf16.mxu1 %v4135_v32  ;;  %3718 = vmatmul.mubr.f32.vlgmr.msra.gmra.mrb[22].mxu1 %v2850_v63 }
 0x3fd   :  { %3870 = vmatpush3.bf16.msra.mxu1 %v5939_v40  ;;  %3734 = vmatprep.mubr.msk.f32.mxu1 %vm4136_vm15, %v4137_v23  ;;  %v2901_v2 = vand.u32 4294901760, %v2900_v60  ;;  %v3884_v40 = vpack.c.bf16 %v6001_v0, %v5999_v39 }
 0x3fe   :  { %3871 = vmatprep.subr.bf16.mxu1 %v4135_v32 }
 0x3ff   :  { %v2902_v27 = vsub.f32 %v2900_v60, %v2901_v2 }
 0x401   :  { %3873 = vmatpush3.bf16.msra.mxu1 %v5962_v7  ;;  %v2903_v35 = vand.u32 4294901760, %v2902_v27 }
 0x402   :  { %3874 = vmatprep.subr.bf16.mxu1 %v4135_v32 }
 0x405   :  { %3876 = vmatpush3.bf16.msra.mxu1 %v3875_v24 }
 0x406   :  { %3732 = vmatprep.subr.mxu1 %v4137_v23 }
 0x409   :  { %3733 = vmatpush3.msra.mxu1 %v2903_v35 }
 0x40a   :  { %3877 = vmatprep.subr.bf16.mxu1 %v4135_v32  ;;  %3735 = vmatmul.mubr.f32.vlgmr.msra.gmra.mrb[22].mxu1 %v5993_v31 }
 0x40b   :  { %3879 = vmatpush3.bf16.msra.mxu1 %v3878_v30  ;;  %3751 = vmatprep.mubr.msk.f32.mxu1 %vm4136_vm15, %v4137_v23 }
 0x40c   :  { %3880 = vmatprep.subr.bf16.mxu1 %v4135_v32 }
 0x40f   :  { %3882 = vmatpush3.bf16.msra.mxu1 %v3881_v53 }
 0x410   :  { %3883 = vmatprep.subr.bf16.mxu1 %v4135_v32 }
 0x413   :  { %3885 = vmatpush3.bf16.msra.mxu1 %v3884_v40 }
 0x414   :  { %3749 = vmatprep.subr.mxu1 %v4137_v23 }
 0x417   :  { %3750 = vmatpush3.msra.mxu1 %v2900_v60 }
 0x418   :  { %3886 = vmatprep.subr.bf16.mxu1 %v4135_v32  ;;  %3752 = vmatmul.mubr.f32.vlgmr.msra.gmra.mrb[22].mxu1 %v5996_v25 }
 0x419   :  { %3888 = vmatpush3.bf16.msra.mxu1 %v5716_v34  ;;  %3768 = vmatprep.mubr.msk.f32.mxu1 %vm4136_vm15, %v4137_v23 }
 0x41a   :  { %3889 = vmatprep.subr.bf16.mxu1 %v4135_v32 }
 0x41d   :  { %3891 = vmatpush3.bf16.msra.mxu1 %v5879_v54 }
 0x41e   :  { %3892 = vmatprep.subr.bf16.mxu1 %v4135_v32 }
 0x421   :  { %3894 = vmatpush3.bf16.msra.mxu1 %v5979_v10 }
 0x422   :  { %3766 = vmatprep.subr.mxu1 %v4137_v23 }
 0x425   :  { %3767 = vmatpush3.msra.mxu1 %v2793_v18 }
 0x426   :  { %3895 = vmatprep.subr.bf16.mxu1 %v4135_v32  ;;  %3769 = vmatmul.mubr.f32.vlgmr.msra.gmra.mrb[22].mxu1 %v2848_v1 }
 0x427   :  { %3897 = vmatpush3.bf16.msra.mxu1 %v5950_v52  ;;  %3785 = vmatprep.mubr.msk.f32.mxu1 %vm4136_vm15, %v4137_v23 }
 0x428   :  { %3898 = vmatprep.subr.bf16.mxu1 %v4135_v32 }
 0x42b   :  { %3900 = vmatpush3.bf16.msra.mxu1 %v5953_v12 }
 0x42c   :  { %3901 = vmatprep.subr.bf16.mxu1 %v4135_v32 }
 0x42f   :  { %3903 = vmatpush3.bf16.msra.mxu1 %v3902_v9 }
 0x430   :  { %3783 = vmatprep.subr.mxu1 %v4137_v23 }
 0x433   :  { %3784 = vmatpush3.msra.mxu1 %v2901_v2 }
 0x434   :  { %3904 = vmatprep.subr.bf16.mxu1 %v4135_v32  ;;  %3786 = vmatmul.mubr.f32.vlgmr.msra.gmra.mrb[22].mxu1 %v5993_v31 }
 0x435   :  { %3906 = vmatpush3.bf16.msra.mxu1 %v5716_v34  ;;  %3802 = vmatprep.mubr.msk.f32.mxu1 %vm4136_vm15, %v4137_v23 }
 0x436   :  { %3907 = vmatprep.subr.bf16.mxu1 %v4135_v32 }
 0x439   :  { %3909 = vmatpush3.bf16.msra.mxu1 %v5879_v54 }
 0x43a   :  { %3910 = vmatprep.subr.bf16.mxu1 %v4135_v32 }
 0x43d   :  { %3912 = vmatpush3.bf16.msra.mxu1 %v5979_v10 }
 0x43e   :  { %3800 = vmatprep.subr.mxu1 %v4137_v23 }
 0x441   :  { %3801 = vmatpush3.msra.mxu1 %v2793_v18 }
 0x442   :  { %3803 = vmatmul.mubr.f32.vlgmr.msra.gmra.mrb[22].mxu1 %v5993_v31 }
 0x515   :  { %v3294_v59 = vpop.f32.mrb[22].mxu1 }
 0x516   :  { %v3939_v30 = vadd.f32 %v3294_v59, %v2766_v33  ;;  %v3804_v34 = vpop.f32.mrb[23].mxu1 }
 0x518   :  { %4126 = vtanh.f32 %v3939_v30 }
 0x522   :  { %v4127_v55 = vpop.eup %4126 }
 0x523   :  { %3299 = vst [vmem:[%s6076_s11] sm:$0xff] %v4127_v55 }

</bundles_post_ra>
